<compile_context>
chip_gen: v6e
topology: v6e:2x2x1
jax: 0.10.0
libtpu: 0.0.40
codegen_flags: <defaults>
</compile_context>

<pallas_src>
import functools

import jax
import jax.numpy as jnp
from jax import lax
from jax.experimental import pallas as pl
from jax.experimental.pallas import tpu as pltpu


# ----------------------------------------------------------------------------
# helpers
# ----------------------------------------------------------------------------
def _round_up(x, m):
    return ((x + m - 1) // m) * m


def _vmem_capacity_bytes():
    """Generation-aware VMEM capacity (128 MiB v5e/v6e, 64 MiB v7x)."""
    try:
        cap = int(pltpu.get_tpu_info().vmem_capacity_bytes)
        if cap > 0:
            return cap
    except Exception:
        pass
    return 64 * 1024 * 1024   # conservative fallback: fits every generation


_VMEM_CAP = _vmem_capacity_bytes()
_VMEM_LIMIT = (_VMEM_CAP * 3) // 4        # explicit Mosaic scoped-VMEM limit
_CHUNK_BUDGET = (_VMEM_CAP * 9) // 16     # target footprint for one LSTM time chunk
_FC_BUDGET = (_VMEM_CAP * 9) // 16        # target footprint for one fc tile


def _pick_time_chunk(T, Bs, Ein, Hp, budget_bytes):
    """Pick (Tc, Tpad).  Largest chunk that fits the VMEM budget; prefer an exact
    divisor of T (no tail masking), otherwise pad T to a multiple of Tc."""
    def footprint(tc):
        x_blk = tc * Bs * Ein * 2 * 2            # bf16 input block, double-buffered
        out_blk = tc * Bs * Hp * 2 * 2           # bf16 output block, double-buffered
        xg = tc * Bs * 4 * Hp * 4                # f32 gate scratch (single)
        weights = ((Ein + Hp) * 4 * Hp * 2 + 4 * Hp * 4) * 2   # dbl-buffered inputs
        state = (4 * Bs * Hp * 4) * 2 + 3 * Bs * Hp * 4 + Bs * Hp * 2
        return x_blk + out_blk + xg + weights + state

    cap = min(T, 4096)
    tc_max = 1
    for tc in range(1, cap + 1):
        if footprint(tc) <= budget_bytes:
            tc_max = tc

    best_div = 1
    for d in range(1, tc_max + 1):
        if T % d == 0:
            best_div = d
    if best_div * 2 >= tc_max:                   # divisor is close enough: no padding
        return best_div, T
    return tc_max, _round_up(T, tc_max)


# ----------------------------------------------------------------------------
# LSTM layer kernel: grid = (batch splits, time chunks), state carried in VMEM.
# ----------------------------------------------------------------------------
def lstm_layer_kernel(x_ref, wih_ref, whh_ref, b_ref, h0_ref, c0_ref,
                      out_ref, hN_ref, cN_ref,
                      xg_ref, h_s, c_s, hb_s,
                      *, hidden, t_real, unroll, mask_tail):
    # x_ref   : (Tc, Bs, Ein)  bf16 time-major input chunk
    # wih_ref : (Ein, 4H)      bf16 (pre-transposed)
    # whh_ref : (H, 4H)        bf16 (pre-transposed)
    # b_ref   : (1, 4H)        f32  (b_ih + b_hh)
    # h0/c0   : (Bs, H)        f32 initial state (this batch split)
    # out_ref : (Tc, Bs, H)    bf16 hidden states for this chunk
    # hN/cN   : (Bs, H)        f32 final state
    # xg_ref  : (Tc, Bs, 4H)   f32 scratch (chunk input projections)
    # h_s/c_s : (Bs, H)        f32 scratch (state carried across chunks)
    # hb_s    : (Bs, H)        bf16 scratch (recurrent matmul LHS, reused from out)
    Tc, Bs, Ein = x_ref.shape
    H = hidden

    @pl.when(pl.program_id(1) == 0)
    def _():
        h_s[...] = h0_ref[...]
        c_s[...] = c0_ref[...]
        hb_s[...] = h0_ref[...].astype(hb_s.dtype)

    # Chunk input projection: one big MXU matmul, bias folded in once per chunk.
    x2 = x_ref[...].reshape(Tc * Bs, Ein)
    xg = jnp.dot(x2, wih_ref[...], preferred_element_type=jnp.float32) + b_ref[...]
    xg_ref[...] = xg.reshape(Tc, Bs, 4 * H)

    t0 = pl.program_id(1) * Tc

    def step(t, carry):
        c = c_s[...]
        # bf16 LHS comes straight from the previous step's stored hidden (hb_s),
        # so no per-step cast sits on the recurrence critical path.
        g = xg_ref[t] + jnp.dot(hb_s[...], whh_ref[...],
                                preferred_element_type=jnp.float32)     # (Bs, 4H)
        # PyTorch gate order: i, f, g, o.  H multiple of 128 -> lane-aligned slices.
        i = jax.nn.sigmoid(g[:, 0 * H:1 * H])
        f = jax.nn.sigmoid(g[:, 1 * H:2 * H])
        gc = jnp.tanh(g[:, 2 * H:3 * H])
        o = jax.nn.sigmoid(g[:, 3 * H:4 * H])
        c_new = f * c + i * gc
        h_new = o * jnp.tanh(c_new)
        if mask_tail:                            # only compiled when T was padded
            valid = (t0 + t) < t_real
            c_new = jnp.where(valid, c_new, c)
            h_new = jnp.where(valid, h_new, h_s[...])
        hb = h_new.astype(out_ref.dtype)
        out_ref[t] = hb
        hb_s[...] = hb
        h_s[...] = h_new
        c_s[...] = c_new
        return carry

    lax.fori_loop(0, Tc, step, 0, unroll=unroll)

    hN_ref[...] = h_s[...]
    cN_ref[...] = c_s[...]


def lstm_layer(x, wih_t, whh_t, bias, h0, c0, t_real):
    # x: (T_in, Bp, Ein) bf16 ; wih_t: (Ein, 4Hp) bf16 ; whh_t: (Hp, 4Hp) bf16
    # bias: (1, 4Hp) f32 ; h0/c0: (Bp, Hp) f32 ; t_real: number of real time steps
    T_in, Bp, Ein = x.shape
    Hp = whh_t.shape[0]

    # Optional batch split across TensorCores (useful on v7x); inert when nsplit=1.
    nsplit = 2 if (Bp >= 32 and Bp % 32 == 0) else 1
    Bs = Bp // nsplit

    Tc, Tp = _pick_time_chunk(T_in, Bs, Ein, Hp, _CHUNK_BUDGET)
    if Tp != T_in:
        x = jnp.pad(x, ((0, Tp - T_in), (0, 0), (0, 0)))
    mask_tail = (Tp != t_real)

    kernel = functools.partial(lstm_layer_kernel, hidden=Hp, t_real=t_real,
                               unroll=min(Tc, 8), mask_tail=mask_tail)

    out, hN, cN = pl.pallas_call(
        kernel,
        grid=(nsplit, Tp // Tc),
        in_specs=[
            pl.BlockSpec((Tc, Bs, Ein), lambda s, t: (t, s, 0)),   # x chunk
            pl.BlockSpec((Ein, 4 * Hp), lambda s, t: (0, 0)),      # wih_t (resident)
            pl.BlockSpec((Hp, 4 * Hp), lambda s, t: (0, 0)),       # whh_t (resident)
            pl.BlockSpec((1, 4 * Hp), lambda s, t: (0, 0)),        # bias
            pl.BlockSpec((Bs, Hp), lambda s, t: (s, 0)),           # h0 (split slice)
            pl.BlockSpec((Bs, Hp), lambda s, t: (s, 0)),           # c0 (split slice)
        ],
        out_specs=(
            pl.BlockSpec((Tc, Bs, Hp), lambda s, t: (t, s, 0)),    # per-step hiddens
            pl.BlockSpec((Bs, Hp), lambda s, t: (s, 0)),           # h_N
            pl.BlockSpec((Bs, Hp), lambda s, t: (s, 0)),           # c_N
        ),
        out_shape=(
            jax.ShapeDtypeStruct((Tp, Bp, Hp), jnp.bfloat16),
            jax.ShapeDtypeStruct((Bp, Hp), jnp.float32),
            jax.ShapeDtypeStruct((Bp, Hp), jnp.float32),
        ),
        scratch_shapes=[
            pltpu.VMEM((Tc, Bs, 4 * Hp), jnp.float32),   # chunk gate projections
            pltpu.VMEM((Bs, Hp), jnp.float32),           # h carry (f32)
            pltpu.VMEM((Bs, Hp), jnp.float32),           # c carry (f32)
            pltpu.VMEM((Bs, Hp), jnp.bfloat16),          # h carry (bf16 matmul LHS)
        ],
        compiler_params=pltpu.CompilerParams(
            dimension_semantics=("parallel", "arbitrary"),  # batch split || time serial
            vmem_limit_bytes=_VMEM_LIMIT),
    )(x, wih_t, whh_t, bias, h0, c0)
    return out, hN, cN


# ----------------------------------------------------------------------------
# Final linear layer: tiled (rows x vocab) matmul, both grid axes parallel.
# Row tile is grown as large as VMEM allows so the (Hp, Vp) weight matrix is
# streamed from HBM as few times as possible (dominant traffic for big vocabs).
# ----------------------------------------------------------------------------
def fc_kernel(x_ref, w_ref, b_ref, o_ref):
    o_ref[...] = (jnp.dot(x_ref[...], w_ref[...],
                          preferred_element_type=jnp.float32) + b_ref[...])


def fc(x, w_t, b):
    # x: (N, Hp) bf16 ; w_t: (Hp, Vp) bf16 ; b: (1, Vp) f32
    N, Hp = x.shape
    Vp = w_t.shape[1]
    tn = 2048 if Vp >= 2048 else Vp              # Vp padded to a multiple of tn

    # Largest row tile (multiple of 16, <= 4096) whose blocks fit the VMEM budget.
    fixed = Hp * tn * 2 * 2 + tn * 4 * 2         # weight (dbuf) + bias blocks
    tm_cap = min(4096, _round_up(N, 16))
    tm = 16
    for cand in range(16, tm_cap + 1, 16):
        if cand * (Hp * 2 * 2 + tn * 4 * 2) + fixed <= _FC_BUDGET:
            tm = cand

    Np = _round_up(N, tm)
    if Np != N:
        x = jnp.pad(x, ((0, Np - N), (0, 0)))

    out = pl.pallas_call(
        fc_kernel,
        grid=(Np // tm, Vp // tn),
        in_specs=[
            pl.BlockSpec((tm, Hp), lambda i, j: (i, 0)),
            pl.BlockSpec((Hp, tn), lambda i, j: (0, j)),
            pl.BlockSpec((1, tn), lambda i, j: (0, j)),
        ],
        out_specs=pl.BlockSpec((tm, tn), lambda i, j: (i, j)),
        out_shape=jax.ShapeDtypeStruct((Np, Vp), jnp.float32),
        compiler_params=pltpu.CompilerParams(
            dimension_semantics=("parallel", "parallel"),
            vmem_limit_bytes=_VMEM_LIMIT),
    )(x, w_t, b)
    return out[:N]


# ----------------------------------------------------------------------------
# Parameter preparation: pad / transpose / cast ONCE (outside the hot forward).
# ----------------------------------------------------------------------------
def prepare_params(params, hidden_dim, num_layers, embedding_dim, vocab_size):
    Hp = _round_up(hidden_dim, 128)
    Ep = _round_up(embedding_dim, 128)
    v128 = _round_up(vocab_size, 128)
    Vp = _round_up(vocab_size, 2048) if v128 >= 2048 else v128   # multiple of fc tn

    def pad_gate_rows(w, in_pad):
        # (4H, in) -> (4Hp, in_pad); pad each gate block separately so padded
        # hidden channels see zero weights (and stay exactly zero).
        four_h, in_dim = w.shape
        w4 = w.reshape(4, hidden_dim, in_dim)
        w4 = jnp.pad(w4, ((0, 0), (0, Hp - hidden_dim), (0, in_pad - in_dim)))
        return w4.reshape(4 * Hp, in_pad)

    def pad_gate_bias(bv):
        b4 = bv.reshape(4, hidden_dim)
        b4 = jnp.pad(b4, ((0, 0), (0, Hp - hidden_dim)))
        return b4.reshape(4 * Hp)

    prep = {}
    # bf16 embedding table (matmul operands are bf16 anyway); gather yields bf16.
    prep["embedding"] = jnp.pad(
        params["embedding"], ((0, 0), (0, Ep - embedding_dim))).astype(jnp.bfloat16)

    wih_t, whh_t, bias = [], [], []
    for l in range(num_layers):
        in_pad = Ep if l == 0 else Hp
        wih = pad_gate_rows(params["w_ih"][l], in_pad)
        whh = pad_gate_rows(params["w_hh"][l], Hp)
        wih_t.append(jnp.transpose(wih).astype(jnp.bfloat16))    # (in_pad, 4Hp)
        whh_t.append(jnp.transpose(whh).astype(jnp.bfloat16))    # (Hp, 4Hp)
        bsum = pad_gate_bias(params["b_ih"][l]) + pad_gate_bias(params["b_hh"][l])
        bias.append(bsum.reshape(1, 4 * Hp).astype(jnp.float32))
    prep["wih_t"], prep["whh_t"], prep["bias"] = wih_t, whh_t, bias

    fc_w = jnp.pad(params["fc_w"],
                   ((0, Vp - vocab_size), (0, Hp - hidden_dim)))  # (Vp, Hp)
    prep["fc_wt"] = jnp.transpose(fc_w).astype(jnp.bfloat16)      # (Hp, Vp)
    prep["fc_b"] = jnp.pad(params["fc_b"],
                           (0, Vp - vocab_size)).reshape(1, Vp).astype(jnp.float32)
    return prep


# ----------------------------------------------------------------------------
# Full forward pass (matches LanguageModelWord2Vec.forward)
# ----------------------------------------------------------------------------
@functools.partial(jax.jit, static_argnames=("hidden_dim", "vocab_size"))
def language_model_forward(x_ids, h0, c0, prep, *, hidden_dim, vocab_size):
    # x_ids : (B, T) int32 ; h0/c0 : (num_layers, B, H) f32
    B, T = x_ids.shape
    num_layers = h0.shape[0]
    Bp = _round_up(B, 16)                       # bf16 sublane packing (16 rows/vreg)
    Hp = prep["whh_t"][0].shape[0]

    # Embedding gather (XLA glue): bf16 table + transposed ids -> (T, Bp, Ep) bf16
    # time-major activations directly (no f32 pass / transpose / cast).
    ids_p = jnp.pad(x_ids, ((0, Bp - B), (0, 0)))
    x = jnp.take(prep["embedding"], jnp.transpose(ids_p), axis=0)   # (T, Bp, Ep) bf16

    h0p = jnp.pad(h0, ((0, 0), (0, Bp - B), (0, Hp - hidden_dim))).astype(jnp.float32)
    c0p = jnp.pad(c0, ((0, 0), (0, Bp - B), (0, Hp - hidden_dim))).astype(jnp.float32)

    hN_list, cN_list = [], []
    for l in range(num_layers):
        x, hN, cN = lstm_layer(x, prep["wih_t"][l], prep["whh_t"][l],
                               prep["bias"][l], h0p[l], c0p[l], t_real=T)
        hN_list.append(hN)
        cN_list.append(cN)

    # TODO(synk): fold this small bf16 (T,Bp,H)->(Bp,T,H) relayout into the fc
    # kernel's store path (needs a 3-D non-minor in-VMEM transpose); kept as the
    # cheapest-point XLA transpose for lowering robustness.
    rows = jnp.transpose(x[:T], (1, 0, 2)).reshape(Bp * T, Hp)      # bf16 batch-major

    logits_full = fc(rows, prep["fc_wt"], prep["fc_b"])             # (Bp*T, Vp) f32
    logits = logits_full[:B * T, :vocab_size]

    h_n = jnp.stack(hN_list, axis=0)[:, :B, :hidden_dim]
    c_n = jnp.stack(cN_list, axis=0)[:, :B, :hidden_dim]
    return logits, (h_n, c_n)


# ----------------------------------------------------------------------------
# Deterministic parameter init (PyTorch-shaped, as in the module __init__)
# ----------------------------------------------------------------------------
def init_params(key, vocab_size, hidden_dim, num_layers, embedding_dim=150):
    keys = jax.random.split(key, 3 + num_layers)
    k = 1.0 / jnp.sqrt(hidden_dim)
    params = {}
    params["embedding"] = jax.random.normal(
        keys[0], (vocab_size, embedding_dim), dtype=jnp.float32)
    w_ih, w_hh, b_ih, b_hh = [], [], [], []
    for l in range(num_layers):
        in_dim = embedding_dim if l == 0 else hidden_dim
        kk = jax.random.split(keys[3 + l], 4)
        w_ih.append(jax.random.uniform(kk[0], (4 * hidden_dim, in_dim),
                                       minval=-k, maxval=k, dtype=jnp.float32))
        w_hh.append(jax.random.uniform(kk[1], (4 * hidden_dim, hidden_dim),
                                       minval=-k, maxval=k, dtype=jnp.float32))
        b_ih.append(jax.random.uniform(kk[2], (4 * hidden_dim,),
                                       minval=-k, maxval=k, dtype=jnp.float32))
        b_hh.append(jax.random.uniform(kk[3], (4 * hidden_dim,),
                                       minval=-k, maxval=k, dtype=jnp.float32))
    params["w_ih"], params["w_hh"] = w_ih, w_hh
    params["b_ih"], params["b_hh"] = b_ih, b_hh
    params["fc_w"] = jax.random.uniform(keys[1], (vocab_size, hidden_dim),
                                        minval=-k, maxval=k, dtype=jnp.float32)
    params["fc_b"] = jax.random.uniform(keys[2], (vocab_size,),
                                        minval=-k, maxval=k, dtype=jnp.float32)
    return params


if __name__ == "__main__":
    vocab_size = 64
    hidden_dim = 32
    num_layers = 2
    embedding_dim = 150
    batch = 2
    seq = 8

    key = jax.random.PRNGKey(0)
    k_param, k_ids = jax.random.split(key)
    params = init_params(k_param, vocab_size, hidden_dim, num_layers, embedding_dim)
    prep = prepare_params(params, hidden_dim, num_layers, embedding_dim, vocab_size)

    x_ids = jax.random.randint(k_ids, (batch, seq), 0, vocab_size, dtype=jnp.int32)
    h0 = jnp.zeros((num_layers, batch, hidden_dim), jnp.float32)
    c0 = jnp.zeros((num_layers, batch, hidden_dim), jnp.float32)

    logits, (h_n, c_n) = language_model_forward(
        x_ids, h0, c0, prep, hidden_dim=hidden_dim, vocab_size=vocab_size)
    jax.block_until_ready((logits, h_n, c_n))

    assert logits.shape == (batch * seq, vocab_size)
    assert h_n.shape == (num_layers, batch, hidden_dim)
    assert c_n.shape == (num_layers, batch, hidden_dim)
    assert bool(jnp.all(jnp.isfinite(logits)))
    assert bool(jnp.all(jnp.isfinite(h_n))) and bool(jnp.all(jnp.isfinite(c_n)))
    print("KERNEL_OK")
</pallas_src>

<mosaic_0001>
module attributes {stable_mosaic.version = 11 : i64} {
  func.func @lstm_layer_kernel(%arg0: i32, %arg1: i32, %arg2: memref<8x16x256xbf16, #tpu.memory_space<vmem>>, %arg3: memref<256x512xbf16, #tpu.memory_space<vmem>>, %arg4: memref<128x512xbf16, #tpu.memory_space<vmem>>, %arg5: memref<1x512xf32, #tpu.memory_space<vmem>>, %arg6: memref<16x128xf32, #tpu.memory_space<vmem>>, %arg7: memref<16x128xf32, #tpu.memory_space<vmem>>, %arg8: memref<8x16x128xbf16, #tpu.memory_space<vmem>>, %arg9: memref<16x128xf32, #tpu.memory_space<vmem>>, %arg10: memref<16x128xf32, #tpu.memory_space<vmem>>, %arg11: memref<8x16x512xf32, #tpu.memory_space<vmem>>, %arg12: memref<16x128xf32, #tpu.memory_space<vmem>>, %arg13: memref<16x128xf32, #tpu.memory_space<vmem>>, %arg14: memref<16x128xbf16, #tpu.memory_space<vmem>>) attributes {dimension_semantics = [#tpu.dimension_semantics<parallel>, #tpu.dimension_semantics<arbitrary>], iteration_bounds = array<i64: 1, 1>, scalar_prefetch = 0 : i64, scratch_operands = 4 : i64, tpu.core_type = #tpu.core_type<tc>, window_params = [{transform_indices = @transform_0, window_bounds = array<i64: 8, 16, 256>}, {pipeline_mode = #tpu.pipeline_mode<synchronous>, transform_indices = @transform_1, window_bounds = array<i64: 256, 512>}, {pipeline_mode = #tpu.pipeline_mode<synchronous>, transform_indices = @transform_2, window_bounds = array<i64: 128, 512>}, {pipeline_mode = #tpu.pipeline_mode<synchronous>, transform_indices = @transform_3, window_bounds = array<i64: 1, 512>}, {transform_indices = @transform_4, window_bounds = array<i64: 16, 128>}, {transform_indices = @transform_5, window_bounds = array<i64: 16, 128>}, {transform_indices = @transform_6, window_bounds = array<i64: 8, 16, 128>}, {transform_indices = @transform_7, window_bounds = array<i64: 16, 128>}, {transform_indices = @transform_8, window_bounds = array<i64: 16, 128>}]} {
    %c0_i32 = arith.constant 0 : i32
    %0 = arith.cmpi eq, %arg1, %c0_i32 : i32
    %1 = arith.extui %0 : i1 to i32
    %c0_i32_0 = arith.constant 0 : i32
    %2 = arith.cmpi ne, %1, %c0_i32_0 : i32
    scf.if %2 {
      %c0_179 = arith.constant 0 : index
      %c0_180 = arith.constant 0 : index
      %344 = vector.load %arg6[%c0_179, %c0_180] : memref<16x128xf32, #tpu.memory_space<vmem>>, vector<16x128xf32>
      %c0_181 = arith.constant 0 : index
      %c0_182 = arith.constant 0 : index
      %345 = vector.load %arg12[%c0_181, %c0_182] : memref<16x128xf32, #tpu.memory_space<vmem>>, vector<16x128xf32>
      tpu.vector_store %arg12[%c0_181, %c0_182], %344 {strides = array<i32>} : memref<16x128xf32, #tpu.memory_space<vmem>>, vector<16x128xf32>,
      %c0_183 = arith.constant 0 : index
      %c0_184 = arith.constant 0 : index
      %346 = vector.load %arg7[%c0_183, %c0_184] : memref<16x128xf32, #tpu.memory_space<vmem>>, vector<16x128xf32>
      %c0_185 = arith.constant 0 : index
      %c0_186 = arith.constant 0 : index
      %347 = vector.load %arg13[%c0_185, %c0_186] : memref<16x128xf32, #tpu.memory_space<vmem>>, vector<16x128xf32>
      tpu.vector_store %arg13[%c0_185, %c0_186], %346 {strides = array<i32>} : memref<16x128xf32, #tpu.memory_space<vmem>>, vector<16x128xf32>,
      %c0_187 = arith.constant 0 : index
      %c0_188 = arith.constant 0 : index
      %348 = vector.load %arg6[%c0_187, %c0_188] : memref<16x128xf32, #tpu.memory_space<vmem>>, vector<16x128xf32>
      %349 = arith.truncf %348 : vector<16x128xf32> to vector<16x128xbf16>
      %c0_189 = arith.constant 0 : index
      %c0_190 = arith.constant 0 : index
      %350 = vector.load %arg14[%c0_189, %c0_190] : memref<16x128xbf16, #tpu.memory_space<vmem>>, vector<16x128xbf16>
      tpu.vector_store %arg14[%c0_189, %c0_190], %349 {strides = array<i32>} : memref<16x128xbf16, #tpu.memory_space<vmem>>, vector<16x128xbf16>,
    } else {
    }
    %c0 = arith.constant 0 : index
    %c0_1 = arith.constant 0 : index
    %c0_2 = arith.constant 0 : index
    %3 = vector.load %arg2[%c0, %c0_1, %c0_2] : memref<8x16x256xbf16, #tpu.memory_space<vmem>>, vector<8x16x256xbf16>
    %4 = vector.shape_cast %3 : vector<8x16x256xbf16> to vector<128x256xbf16>
    %c0_3 = arith.constant 0 : index
    %c0_4 = arith.constant 0 : index
    %5 = vector.load %arg3[%c0_3, %c0_4] : memref<256x512xbf16, #tpu.memory_space<vmem>>, vector<256x512xbf16>
    %cst = arith.constant dense<0.000000e+00> : vector<128x512xf32>
    %6 = tpu.matmul %4, %5, %cst {dimension_numbers = #tpu.dot_dimension_numbers<[1], [0], [0], [1], [0, 0, 1, 1], [], []>} : vector<128x256xbf16>, vector<256x512xbf16>, vector<128x512xf32> -> vector<128x512xf32>
    %c0_5 = arith.constant 0 : index
    %c0_6 = arith.constant 0 : index
    %7 = vector.load %arg5[%c0_5, %c0_6] : memref<1x512xf32, #tpu.memory_space<vmem>>, vector<1x512xf32>
    %8 = vector.broadcast %7 : vector<1x512xf32> to vector<128x512xf32>
    %9 = arith.addf %6, %8 : vector<128x512xf32>
    %10 = vector.shape_cast %9 : vector<128x512xf32> to vector<8x16x512xf32>
    %c0_7 = arith.constant 0 : index
    %c0_8 = arith.constant 0 : index
    %c0_9 = arith.constant 0 : index
    %11 = vector.load %arg11[%c0_7, %c0_8, %c0_9] : memref<8x16x512xf32, #tpu.memory_space<vmem>>, vector<8x16x512xf32>
    tpu.vector_store %arg11[%c0_7, %c0_8, %c0_9], %10 {strides = array<i32>} : memref<8x16x512xf32, #tpu.memory_space<vmem>>, vector<8x16x512xf32>,
    %c0_i32_10 = arith.constant 0 : i32
    %c0_11 = arith.constant 0 : index
    %c0_12 = arith.constant 0 : index
    %12 = vector.load %arg13[%c0_11, %c0_12] : memref<16x128xf32, #tpu.memory_space<vmem>>, vector<16x128xf32>
    %13 = arith.index_cast %c0_i32_10 : i32 to index
    %c0_13 = arith.constant 0 : index
    %c0_14 = arith.constant 0 : index
    %14 = vector.load %arg11[%13, %c0_13, %c0_14] : memref<8x16x512xf32, #tpu.memory_space<vmem>>, vector<1x16x512xf32>
    %15 = vector.shape_cast %14 : vector<1x16x512xf32> to vector<16x512xf32>
    %c0_15 = arith.constant 0 : index
    %c0_16 = arith.constant 0 : index
    %16 = vector.load %arg14[%c0_15, %c0_16] : memref<16x128xbf16, #tpu.memory_space<vmem>>, vector<16x128xbf16>
    %c0_17 = arith.constant 0 : index
    %c0_18 = arith.constant 0 : index
    %17 = vector.load %arg4[%c0_17, %c0_18] : memref<128x512xbf16, #tpu.memory_space<vmem>>, vector<128x512xbf16>
    %cst_19 = arith.constant dense<0.000000e+00> : vector<16x512xf32>
    %18 = tpu.matmul %16, %17, %cst_19 {dimension_numbers = #tpu.dot_dimension_numbers<[1], [0], [0], [1], [0, 0, 1, 1], [], []>} : vector<16x128xbf16>, vector<128x512xbf16>, vector<16x512xf32> -> vector<16x512xf32>
    %19 = arith.addf %15, %18 : vector<16x512xf32>
    %20 = vector.extract_strided_slice %19 {offsets = [0, 0], sizes = [16, 128], strides = [1, 1]} : vector<16x512xf32> to vector<16x128xf32>
    %21 = arith.negf %20 : vector<16x128xf32>
    %22 = math.exp %21 : vector<16x128xf32>
    %cst_20 = arith.constant 1.000000e+00 : f32
    %23 = vector.broadcast %cst_20 : f32 to vector<16x128xf32>
    %24 = arith.addf %23, %22 : vector<16x128xf32>
    %25 = arith.divf %23, %24 : vector<16x128xf32>
    %26 = vector.extract_strided_slice %19 {offsets = [0, 128], sizes = [16, 128], strides = [1, 1]} : vector<16x512xf32> to vector<16x128xf32>
    %27 = arith.negf %26 : vector<16x128xf32>
    %28 = math.exp %27 : vector<16x128xf32>
    %cst_21 = arith.constant 1.000000e+00 : f32
    %29 = vector.broadcast %cst_21 : f32 to vector<16x128xf32>
    %30 = arith.addf %29, %28 : vector<16x128xf32>
    %31 = arith.divf %29, %30 : vector<16x128xf32>
    %32 = vector.extract_strided_slice %19 {offsets = [0, 256], sizes = [16, 128], strides = [1, 1]} : vector<16x512xf32> to vector<16x128xf32>
    %33 = math.tanh %32 : vector<16x128xf32>
    %34 = vector.extract_strided_slice %19 {offsets = [0, 384], sizes = [16, 128], strides = [1, 1]} : vector<16x512xf32> to vector<16x128xf32>
    %35 = arith.negf %34 : vector<16x128xf32>
    %36 = math.exp %35 : vector<16x128xf32>
    %cst_22 = arith.constant 1.000000e+00 : f32
    %37 = vector.broadcast %cst_22 : f32 to vector<16x128xf32>
    %38 = arith.addf %37, %36 : vector<16x128xf32>
    %39 = arith.divf %37, %38 : vector<16x128xf32>
    %40 = arith.mulf %31, %12 : vector<16x128xf32>
    %41 = arith.mulf %25, %33 : vector<16x128xf32>
    %42 = arith.addf %40, %41 : vector<16x128xf32>
    %43 = math.tanh %42 : vector<16x128xf32>
    %44 = arith.mulf %39, %43 : vector<16x128xf32>
    %45 = arith.truncf %44 : vector<16x128xf32> to vector<16x128xbf16>
    %46 = arith.index_cast %c0_i32_10 : i32 to index
    %c0_23 = arith.constant 0 : index
    %c0_24 = arith.constant 0 : index
    %47 = vector.load %arg8[%46, %c0_23, %c0_24] : memref<8x16x128xbf16, #tpu.memory_space<vmem>>, vector<1x16x128xbf16>
    %48 = vector.shape_cast %47 : vector<1x16x128xbf16> to vector<16x128xbf16>
    %49 = vector.shape_cast %45 : vector<16x128xbf16> to vector<1x16x128xbf16>
    tpu.vector_store %arg8[%46, %c0_23, %c0_24], %49 {strides = array<i32>} : memref<8x16x128xbf16, #tpu.memory_space<vmem>>, vector<1x16x128xbf16>,
    %c0_25 = arith.constant 0 : index
    %c0_26 = arith.constant 0 : index
    %50 = vector.load %arg14[%c0_25, %c0_26] : memref<16x128xbf16, #tpu.memory_space<vmem>>, vector<16x128xbf16>
    tpu.vector_store %arg14[%c0_25, %c0_26], %45 {strides = array<i32>} : memref<16x128xbf16, #tpu.memory_space<vmem>>, vector<16x128xbf16>,
    %c0_27 = arith.constant 0 : index
    %c0_28 = arith.constant 0 : index
    %51 = vector.load %arg12[%c0_27, %c0_28] : memref<16x128xf32, #tpu.memory_space<vmem>>, vector<16x128xf32>
    tpu.vector_store %arg12[%c0_27, %c0_28], %44 {strides = array<i32>} : memref<16x128xf32, #tpu.memory_space<vmem>>, vector<16x128xf32>,
    %c0_29 = arith.constant 0 : index
    %c0_30 = arith.constant 0 : index
    %52 = vector.load %arg13[%c0_29, %c0_30] : memref<16x128xf32, #tpu.memory_space<vmem>>, vector<16x128xf32>
    tpu.vector_store %arg13[%c0_29, %c0_30], %42 {strides = array<i32>} : memref<16x128xf32, #tpu.memory_space<vmem>>, vector<16x128xf32>,
    %c1_i32 = arith.constant 1 : i32
    %c0_31 = arith.constant 0 : index
    %c0_32 = arith.constant 0 : index
    %53 = vector.load %arg13[%c0_31, %c0_32] : memref<16x128xf32, #tpu.memory_space<vmem>>, vector<16x128xf32>
    %54 = arith.index_cast %c1_i32 : i32 to index
    %c0_33 = arith.constant 0 : index
    %c0_34 = arith.constant 0 : index
    %55 = vector.load %arg11[%54, %c0_33, %c0_34] : memref<8x16x512xf32, #tpu.memory_space<vmem>>, vector<1x16x512xf32>
    %56 = vector.shape_cast %55 : vector<1x16x512xf32> to vector<16x512xf32>
    %c0_35 = arith.constant 0 : index
    %c0_36 = arith.constant 0 : index
    %57 = vector.load %arg14[%c0_35, %c0_36] : memref<16x128xbf16, #tpu.memory_space<vmem>>, vector<16x128xbf16>
    %c0_37 = arith.constant 0 : index
    %c0_38 = arith.constant 0 : index
    %58 = vector.load %arg4[%c0_37, %c0_38] : memref<128x512xbf16, #tpu.memory_space<vmem>>, vector<128x512xbf16>
    %cst_39 = arith.constant dense<0.000000e+00> : vector<16x512xf32>
    %59 = tpu.matmul %57, %58, %cst_39 {dimension_numbers = #tpu.dot_dimension_numbers<[1], [0], [0], [1], [0, 0, 1, 1], [], []>} : vector<16x128xbf16>, vector<128x512xbf16>, vector<16x512xf32> -> vector<16x512xf32>
    %60 = arith.addf %56, %59 : vector<16x512xf32>
    %61 = vector.extract_strided_slice %60 {offsets = [0, 0], sizes = [16, 128], strides = [1, 1]} : vector<16x512xf32> to vector<16x128xf32>
    %62 = arith.negf %61 : vector<16x128xf32>
    %63 = math.exp %62 : vector<16x128xf32>
    %cst_40 = arith.constant 1.000000e+00 : f32
    %64 = vector.broadcast %cst_40 : f32 to vector<16x128xf32>
    %65 = arith.addf %64, %63 : vector<16x128xf32>
    %66 = arith.divf %64, %65 : vector<16x128xf32>
    %67 = vector.extract_strided_slice %60 {offsets = [0, 128], sizes = [16, 128], strides = [1, 1]} : vector<16x512xf32> to vector<16x128xf32>
    %68 = arith.negf %67 : vector<16x128xf32>
    %69 = math.exp %68 : vector<16x128xf32>
    %cst_41 = arith.constant 1.000000e+00 : f32
    %70 = vector.broadcast %cst_41 : f32 to vector<16x128xf32>
    %71 = arith.addf %70, %69 : vector<16x128xf32>
    %72 = arith.divf %70, %71 : vector<16x128xf32>
    %73 = vector.extract_strided_slice %60 {offsets = [0, 256], sizes = [16, 128], strides = [1, 1]} : vector<16x512xf32> to vector<16x128xf32>
    %74 = math.tanh %73 : vector<16x128xf32>
    %75 = vector.extract_strided_slice %60 {offsets = [0, 384], sizes = [16, 128], strides = [1, 1]} : vector<16x512xf32> to vector<16x128xf32>
    %76 = arith.negf %75 : vector<16x128xf32>
    %77 = math.exp %76 : vector<16x128xf32>
    %cst_42 = arith.constant 1.000000e+00 : f32
    %78 = vector.broadcast %cst_42 : f32 to vector<16x128xf32>
    %79 = arith.addf %78, %77 : vector<16x128xf32>
    %80 = arith.divf %78, %79 : vector<16x128xf32>
    %81 = arith.mulf %72, %53 : vector<16x128xf32>
    %82 = arith.mulf %66, %74 : vector<16x128xf32>
    %83 = arith.addf %81, %82 : vector<16x128xf32>
    %84 = math.tanh %83 : vector<16x128xf32>
    %85 = arith.mulf %80, %84 : vector<16x128xf32>
    %86 = arith.truncf %85 : vector<16x128xf32> to vector<16x128xbf16>
    %87 = arith.index_cast %c1_i32 : i32 to index
    %c0_43 = arith.constant 0 : index
    %c0_44 = arith.constant 0 : index
    %88 = vector.load %arg8[%87, %c0_43, %c0_44] : memref<8x16x128xbf16, #tpu.memory_space<vmem>>, vector<1x16x128xbf16>
    %89 = vector.shape_cast %88 : vector<1x16x128xbf16> to vector<16x128xbf16>
    %90 = vector.shape_cast %86 : vector<16x128xbf16> to vector<1x16x128xbf16>
    tpu.vector_store %arg8[%87, %c0_43, %c0_44], %90 {strides = array<i32>} : memref<8x16x128xbf16, #tpu.memory_space<vmem>>, vector<1x16x128xbf16>,
    %c0_45 = arith.constant 0 : index
    %c0_46 = arith.constant 0 : index
    %91 = vector.load %arg14[%c0_45, %c0_46] : memref<16x128xbf16, #tpu.memory_space<vmem>>, vector<16x128xbf16>
    tpu.vector_store %arg14[%c0_45, %c0_46], %86 {strides = array<i32>} : memref<16x128xbf16, #tpu.memory_space<vmem>>, vector<16x128xbf16>,
    %c0_47 = arith.constant 0 : index
    %c0_48 = arith.constant 0 : index
    %92 = vector.load %arg12[%c0_47, %c0_48] : memref<16x128xf32, #tpu.memory_space<vmem>>, vector<16x128xf32>
    tpu.vector_store %arg12[%c0_47, %c0_48], %85 {strides = array<i32>} : memref<16x128xf32, #tpu.memory_space<vmem>>, vector<16x128xf32>,
    %c0_49 = arith.constant 0 : index
    %c0_50 = arith.constant 0 : index
    %93 = vector.load %arg13[%c0_49, %c0_50] : memref<16x128xf32, #tpu.memory_space<vmem>>, vector<16x128xf32>
    tpu.vector_store %arg13[%c0_49, %c0_50], %83 {strides = array<i32>} : memref<16x128xf32, #tpu.memory_space<vmem>>, vector<16x128xf32>,
    %c2_i32 = arith.constant 2 : i32
    %c0_51 = arith.constant 0 : index
    %c0_52 = arith.constant 0 : index
    %94 = vector.load %arg13[%c0_51, %c0_52] : memref<16x128xf32, #tpu.memory_space<vmem>>, vector<16x128xf32>
    %95 = arith.index_cast %c2_i32 : i32 to index
    %c0_53 = arith.constant 0 : index
    %c0_54 = arith.constant 0 : index
    %96 = vector.load %arg11[%95, %c0_53, %c0_54] : memref<8x16x512xf32, #tpu.memory_space<vmem>>, vector<1x16x512xf32>
    %97 = vector.shape_cast %96 : vector<1x16x512xf32> to vector<16x512xf32>
    %c0_55 = arith.constant 0 : index
    %c0_56 = arith.constant 0 : index
    %98 = vector.load %arg14[%c0_55, %c0_56] : memref<16x128xbf16, #tpu.memory_space<vmem>>, vector<16x128xbf16>
    %c0_57 = arith.constant 0 : index
    %c0_58 = arith.constant 0 : index
    %99 = vector.load %arg4[%c0_57, %c0_58] : memref<128x512xbf16, #tpu.memory_space<vmem>>, vector<128x512xbf16>
    %cst_59 = arith.constant dense<0.000000e+00> : vector<16x512xf32>
    %100 = tpu.matmul %98, %99, %cst_59 {dimension_numbers = #tpu.dot_dimension_numbers<[1], [0], [0], [1], [0, 0, 1, 1], [], []>} : vector<16x128xbf16>, vector<128x512xbf16>, vector<16x512xf32> -> vector<16x512xf32>
    %101 = arith.addf %97, %100 : vector<16x512xf32>
    %102 = vector.extract_strided_slice %101 {offsets = [0, 0], sizes = [16, 128], strides = [1, 1]} : vector<16x512xf32> to vector<16x128xf32>
    %103 = arith.negf %102 : vector<16x128xf32>
    %104 = math.exp %103 : vector<16x128xf32>
    %cst_60 = arith.constant 1.000000e+00 : f32
    %105 = vector.broadcast %cst_60 : f32 to vector<16x128xf32>
    %106 = arith.addf %105, %104 : vector<16x128xf32>
    %107 = arith.divf %105, %106 : vector<16x128xf32>
    %108 = vector.extract_strided_slice %101 {offsets = [0, 128], sizes = [16, 128], strides = [1, 1]} : vector<16x512xf32> to vector<16x128xf32>
    %109 = arith.negf %108 : vector<16x128xf32>
    %110 = math.exp %109 : vector<16x128xf32>
    %cst_61 = arith.constant 1.000000e+00 : f32
    %111 = vector.broadcast %cst_61 : f32 to vector<16x128xf32>
    %112 = arith.addf %111, %110 : vector<16x128xf32>
    %113 = arith.divf %111, %112 : vector<16x128xf32>
    %114 = vector.extract_strided_slice %101 {offsets = [0, 256], sizes = [16, 128], strides = [1, 1]} : vector<16x512xf32> to vector<16x128xf32>
    %115 = math.tanh %114 : vector<16x128xf32>
    %116 = vector.extract_strided_slice %101 {offsets = [0, 384], sizes = [16, 128], strides = [1, 1]} : vector<16x512xf32> to vector<16x128xf32>
    %117 = arith.negf %116 : vector<16x128xf32>
    %118 = math.exp %117 : vector<16x128xf32>
    %cst_62 = arith.constant 1.000000e+00 : f32
    %119 = vector.broadcast %cst_62 : f32 to vector<16x128xf32>
    %120 = arith.addf %119, %118 : vector<16x128xf32>
    %121 = arith.divf %119, %120 : vector<16x128xf32>
    %122 = arith.mulf %113, %94 : vector<16x128xf32>
    %123 = arith.mulf %107, %115 : vector<16x128xf32>
    %124 = arith.addf %122, %123 : vector<16x128xf32>
    %125 = math.tanh %124 : vector<16x128xf32>
    %126 = arith.mulf %121, %125 : vector<16x128xf32>
    %127 = arith.truncf %126 : vector<16x128xf32> to vector<16x128xbf16>
    %128 = arith.index_cast %c2_i32 : i32 to index
    %c0_63 = arith.constant 0 : index
    %c0_64 = arith.constant 0 : index
    %129 = vector.load %arg8[%128, %c0_63, %c0_64] : memref<8x16x128xbf16, #tpu.memory_space<vmem>>, vector<1x16x128xbf16>
    %130 = vector.shape_cast %129 : vector<1x16x128xbf16> to vector<16x128xbf16>
    %131 = vector.shape_cast %127 : vector<16x128xbf16> to vector<1x16x128xbf16>
    tpu.vector_store %arg8[%128, %c0_63, %c0_64], %131 {strides = array<i32>} : memref<8x16x128xbf16, #tpu.memory_space<vmem>>, vector<1x16x128xbf16>,
    %c0_65 = arith.constant 0 : index
    %c0_66 = arith.constant 0 : index
    %132 = vector.load %arg14[%c0_65, %c0_66] : memref<16x128xbf16, #tpu.memory_space<vmem>>, vector<16x128xbf16>
    tpu.vector_store %arg14[%c0_65, %c0_66], %127 {strides = array<i32>} : memref<16x128xbf16, #tpu.memory_space<vmem>>, vector<16x128xbf16>,
    %c0_67 = arith.constant 0 : index
    %c0_68 = arith.constant 0 : index
    %133 = vector.load %arg12[%c0_67, %c0_68] : memref<16x128xf32, #tpu.memory_space<vmem>>, vector<16x128xf32>
    tpu.vector_store %arg12[%c0_67, %c0_68], %126 {strides = array<i32>} : memref<16x128xf32, #tpu.memory_space<vmem>>, vector<16x128xf32>,
    %c0_69 = arith.constant 0 : index
    %c0_70 = arith.constant 0 : index
    %134 = vector.load %arg13[%c0_69, %c0_70] : memref<16x128xf32, #tpu.memory_space<vmem>>, vector<16x128xf32>
    tpu.vector_store %arg13[%c0_69, %c0_70], %124 {strides = array<i32>} : memref<16x128xf32, #tpu.memory_space<vmem>>, vector<16x128xf32>,
    %c3_i32 = arith.constant 3 : i32
    %c0_71 = arith.constant 0 : index
    %c0_72 = arith.constant 0 : index
    %135 = vector.load %arg13[%c0_71, %c0_72] : memref<16x128xf32, #tpu.memory_space<vmem>>, vector<16x128xf32>
    %136 = arith.index_cast %c3_i32 : i32 to index
    %c0_73 = arith.constant 0 : index
    %c0_74 = arith.constant 0 : index
    %137 = vector.load %arg11[%136, %c0_73, %c0_74] : memref<8x16x512xf32, #tpu.memory_space<vmem>>, vector<1x16x512xf32>
    %138 = vector.shape_cast %137 : vector<1x16x512xf32> to vector<16x512xf32>
    %c0_75 = arith.constant 0 : index
    %c0_76 = arith.constant 0 : index
    %139 = vector.load %arg14[%c0_75, %c0_76] : memref<16x128xbf16, #tpu.memory_space<vmem>>, vector<16x128xbf16>
    %c0_77 = arith.constant 0 : index
    %c0_78 = arith.constant 0 : index
    %140 = vector.load %arg4[%c0_77, %c0_78] : memref<128x512xbf16, #tpu.memory_space<vmem>>, vector<128x512xbf16>
    %cst_79 = arith.constant dense<0.000000e+00> : vector<16x512xf32>
    %141 = tpu.matmul %139, %140, %cst_79 {dimension_numbers = #tpu.dot_dimension_numbers<[1], [0], [0], [1], [0, 0, 1, 1], [], []>} : vector<16x128xbf16>, vector<128x512xbf16>, vector<16x512xf32> -> vector<16x512xf32>
    %142 = arith.addf %138, %141 : vector<16x512xf32>
    %143 = vector.extract_strided_slice %142 {offsets = [0, 0], sizes = [16, 128], strides = [1, 1]} : vector<16x512xf32> to vector<16x128xf32>
    %144 = arith.negf %143 : vector<16x128xf32>
    %145 = math.exp %144 : vector<16x128xf32>
    %cst_80 = arith.constant 1.000000e+00 : f32
    %146 = vector.broadcast %cst_80 : f32 to vector<16x128xf32>
    %147 = arith.addf %146, %145 : vector<16x128xf32>
    %148 = arith.divf %146, %147 : vector<16x128xf32>
    %149 = vector.extract_strided_slice %142 {offsets = [0, 128], sizes = [16, 128], strides = [1, 1]} : vector<16x512xf32> to vector<16x128xf32>
    %150 = arith.negf %149 : vector<16x128xf32>
    %151 = math.exp %150 : vector<16x128xf32>
    %cst_81 = arith.constant 1.000000e+00 : f32
    %152 = vector.broadcast %cst_81 : f32 to vector<16x128xf32>
    %153 = arith.addf %152, %151 : vector<16x128xf32>
    %154 = arith.divf %152, %153 : vector<16x128xf32>
    %155 = vector.extract_strided_slice %142 {offsets = [0, 256], sizes = [16, 128], strides = [1, 1]} : vector<16x512xf32> to vector<16x128xf32>
    %156 = math.tanh %155 : vector<16x128xf32>
    %157 = vector.extract_strided_slice %142 {offsets = [0, 384], sizes = [16, 128], strides = [1, 1]} : vector<16x512xf32> to vector<16x128xf32>
    %158 = arith.negf %157 : vector<16x128xf32>
    %159 = math.exp %158 : vector<16x128xf32>
    %cst_82 = arith.constant 1.000000e+00 : f32
    %160 = vector.broadcast %cst_82 : f32 to vector<16x128xf32>
    %161 = arith.addf %160, %159 : vector<16x128xf32>
    %162 = arith.divf %160, %161 : vector<16x128xf32>
    %163 = arith.mulf %154, %135 : vector<16x128xf32>
    %164 = arith.mulf %148, %156 : vector<16x128xf32>
    %165 = arith.addf %163, %164 : vector<16x128xf32>
    %166 = math.tanh %165 : vector<16x128xf32>
    %167 = arith.mulf %162, %166 : vector<16x128xf32>
    %168 = arith.truncf %167 : vector<16x128xf32> to vector<16x128xbf16>
    %169 = arith.index_cast %c3_i32 : i32 to index
    %c0_83 = arith.constant 0 : index
    %c0_84 = arith.constant 0 : index
    %170 = vector.load %arg8[%169, %c0_83, %c0_84] : memref<8x16x128xbf16, #tpu.memory_space<vmem>>, vector<1x16x128xbf16>
    %171 = vector.shape_cast %170 : vector<1x16x128xbf16> to vector<16x128xbf16>
    %172 = vector.shape_cast %168 : vector<16x128xbf16> to vector<1x16x128xbf16>
    tpu.vector_store %arg8[%169, %c0_83, %c0_84], %172 {strides = array<i32>} : memref<8x16x128xbf16, #tpu.memory_space<vmem>>, vector<1x16x128xbf16>,
    %c0_85 = arith.constant 0 : index
    %c0_86 = arith.constant 0 : index
    %173 = vector.load %arg14[%c0_85, %c0_86] : memref<16x128xbf16, #tpu.memory_space<vmem>>, vector<16x128xbf16>
    tpu.vector_store %arg14[%c0_85, %c0_86], %168 {strides = array<i32>} : memref<16x128xbf16, #tpu.memory_space<vmem>>, vector<16x128xbf16>,
    %c0_87 = arith.constant 0 : index
    %c0_88 = arith.constant 0 : index
    %174 = vector.load %arg12[%c0_87, %c0_88] : memref<16x128xf32, #tpu.memory_space<vmem>>, vector<16x128xf32>
    tpu.vector_store %arg12[%c0_87, %c0_88], %167 {strides = array<i32>} : memref<16x128xf32, #tpu.memory_space<vmem>>, vector<16x128xf32>,
    %c0_89 = arith.constant 0 : index
    %c0_90 = arith.constant 0 : index
    %175 = vector.load %arg13[%c0_89, %c0_90] : memref<16x128xf32, #tpu.memory_space<vmem>>, vector<16x128xf32>
    tpu.vector_store %arg13[%c0_89, %c0_90], %165 {strides = array<i32>} : memref<16x128xf32, #tpu.memory_space<vmem>>, vector<16x128xf32>,
    %c4_i32 = arith.constant 4 : i32
    %c0_91 = arith.constant 0 : index
    %c0_92 = arith.constant 0 : index
    %176 = vector.load %arg13[%c0_91, %c0_92] : memref<16x128xf32, #tpu.memory_space<vmem>>, vector<16x128xf32>
    %177 = arith.index_cast %c4_i32 : i32 to index
    %c0_93 = arith.constant 0 : index
    %c0_94 = arith.constant 0 : index
    %178 = vector.load %arg11[%177, %c0_93, %c0_94] : memref<8x16x512xf32, #tpu.memory_space<vmem>>, vector<1x16x512xf32>
    %179 = vector.shape_cast %178 : vector<1x16x512xf32> to vector<16x512xf32>
    %c0_95 = arith.constant 0 : index
    %c0_96 = arith.constant 0 : index
    %180 = vector.load %arg14[%c0_95, %c0_96] : memref<16x128xbf16, #tpu.memory_space<vmem>>, vector<16x128xbf16>
    %c0_97 = arith.constant 0 : index
    %c0_98 = arith.constant 0 : index
    %181 = vector.load %arg4[%c0_97, %c0_98] : memref<128x512xbf16, #tpu.memory_space<vmem>>, vector<128x512xbf16>
    %cst_99 = arith.constant dense<0.000000e+00> : vector<16x512xf32>
    %182 = tpu.matmul %180, %181, %cst_99 {dimension_numbers = #tpu.dot_dimension_numbers<[1], [0], [0], [1], [0, 0, 1, 1], [], []>} : vector<16x128xbf16>, vector<128x512xbf16>, vector<16x512xf32> -> vector<16x512xf32>
    %183 = arith.addf %179, %182 : vector<16x512xf32>
    %184 = vector.extract_strided_slice %183 {offsets = [0, 0], sizes = [16, 128], strides = [1, 1]} : vector<16x512xf32> to vector<16x128xf32>
    %185 = arith.negf %184 : vector<16x128xf32>
    %186 = math.exp %185 : vector<16x128xf32>
    %cst_100 = arith.constant 1.000000e+00 : f32
    %187 = vector.broadcast %cst_100 : f32 to vector<16x128xf32>
    %188 = arith.addf %187, %186 : vector<16x128xf32>
    %189 = arith.divf %187, %188 : vector<16x128xf32>
    %190 = vector.extract_strided_slice %183 {offsets = [0, 128], sizes = [16, 128], strides = [1, 1]} : vector<16x512xf32> to vector<16x128xf32>
    %191 = arith.negf %190 : vector<16x128xf32>
    %192 = math.exp %191 : vector<16x128xf32>
    %cst_101 = arith.constant 1.000000e+00 : f32
    %193 = vector.broadcast %cst_101 : f32 to vector<16x128xf32>
    %194 = arith.addf %193, %192 : vector<16x128xf32>
    %195 = arith.divf %193, %194 : vector<16x128xf32>
    %196 = vector.extract_strided_slice %183 {offsets = [0, 256], sizes = [16, 128], strides = [1, 1]} : vector<16x512xf32> to vector<16x128xf32>
    %197 = math.tanh %196 : vector<16x128xf32>
    %198 = vector.extract_strided_slice %183 {offsets = [0, 384], sizes = [16, 128], strides = [1, 1]} : vector<16x512xf32> to vector<16x128xf32>
    %199 = arith.negf %198 : vector<16x128xf32>
    %200 = math.exp %199 : vector<16x128xf32>
    %cst_102 = arith.constant 1.000000e+00 : f32
    %201 = vector.broadcast %cst_102 : f32 to vector<16x128xf32>
    %202 = arith.addf %201, %200 : vector<16x128xf32>
    %203 = arith.divf %201, %202 : vector<16x128xf32>
    %204 = arith.mulf %195, %176 : vector<16x128xf32>
    %205 = arith.mulf %189, %197 : vector<16x128xf32>
    %206 = arith.addf %204, %205 : vector<16x128xf32>
    %207 = math.tanh %206 : vector<16x128xf32>
    %208 = arith.mulf %203, %207 : vector<16x128xf32>
    %209 = arith.truncf %208 : vector<16x128xf32> to vector<16x128xbf16>
    %210 = arith.index_cast %c4_i32 : i32 to index
    %c0_103 = arith.constant 0 : index
    %c0_104 = arith.constant 0 : index
    %211 = vector.load %arg8[%210, %c0_103, %c0_104] : memref<8x16x128xbf16, #tpu.memory_space<vmem>>, vector<1x16x128xbf16>
    %212 = vector.shape_cast %211 : vector<1x16x128xbf16> to vector<16x128xbf16>
    %213 = vector.shape_cast %209 : vector<16x128xbf16> to vector<1x16x128xbf16>
    tpu.vector_store %arg8[%210, %c0_103, %c0_104], %213 {strides = array<i32>} : memref<8x16x128xbf16, #tpu.memory_space<vmem>>, vector<1x16x128xbf16>,
    %c0_105 = arith.constant 0 : index
    %c0_106 = arith.constant 0 : index
    %214 = vector.load %arg14[%c0_105, %c0_106] : memref<16x128xbf16, #tpu.memory_space<vmem>>, vector<16x128xbf16>
    tpu.vector_store %arg14[%c0_105, %c0_106], %209 {strides = array<i32>} : memref<16x128xbf16, #tpu.memory_space<vmem>>, vector<16x128xbf16>,
    %c0_107 = arith.constant 0 : index
    %c0_108 = arith.constant 0 : index
    %215 = vector.load %arg12[%c0_107, %c0_108] : memref<16x128xf32, #tpu.memory_space<vmem>>, vector<16x128xf32>
    tpu.vector_store %arg12[%c0_107, %c0_108], %208 {strides = array<i32>} : memref<16x128xf32, #tpu.memory_space<vmem>>, vector<16x128xf32>,
    %c0_109 = arith.constant 0 : index
    %c0_110 = arith.constant 0 : index
    %216 = vector.load %arg13[%c0_109, %c0_110] : memref<16x128xf32, #tpu.memory_space<vmem>>, vector<16x128xf32>
    tpu.vector_store %arg13[%c0_109, %c0_110], %206 {strides = array<i32>} : memref<16x128xf32, #tpu.memory_space<vmem>>, vector<16x128xf32>,
    %c5_i32 = arith.constant 5 : i32
    %c0_111 = arith.constant 0 : index
    %c0_112 = arith.constant 0 : index
    %217 = vector.load %arg13[%c0_111, %c0_112] : memref<16x128xf32, #tpu.memory_space<vmem>>, vector<16x128xf32>
    %218 = arith.index_cast %c5_i32 : i32 to index
    %c0_113 = arith.constant 0 : index
    %c0_114 = arith.constant 0 : index
    %219 = vector.load %arg11[%218, %c0_113, %c0_114] : memref<8x16x512xf32, #tpu.memory_space<vmem>>, vector<1x16x512xf32>
    %220 = vector.shape_cast %219 : vector<1x16x512xf32> to vector<16x512xf32>
    %c0_115 = arith.constant 0 : index
    %c0_116 = arith.constant 0 : index
    %221 = vector.load %arg14[%c0_115, %c0_116] : memref<16x128xbf16, #tpu.memory_space<vmem>>, vector<16x128xbf16>
    %c0_117 = arith.constant 0 : index
    %c0_118 = arith.constant 0 : index
    %222 = vector.load %arg4[%c0_117, %c0_118] : memref<128x512xbf16, #tpu.memory_space<vmem>>, vector<128x512xbf16>
    %cst_119 = arith.constant dense<0.000000e+00> : vector<16x512xf32>
    %223 = tpu.matmul %221, %222, %cst_119 {dimension_numbers = #tpu.dot_dimension_numbers<[1], [0], [0], [1], [0, 0, 1, 1], [], []>} : vector<16x128xbf16>, vector<128x512xbf16>, vector<16x512xf32> -> vector<16x512xf32>
    %224 = arith.addf %220, %223 : vector<16x512xf32>
    %225 = vector.extract_strided_slice %224 {offsets = [0, 0], sizes = [16, 128], strides = [1, 1]} : vector<16x512xf32> to vector<16x128xf32>
    %226 = arith.negf %225 : vector<16x128xf32>
    %227 = math.exp %226 : vector<16x128xf32>
    %cst_120 = arith.constant 1.000000e+00 : f32
    %228 = vector.broadcast %cst_120 : f32 to vector<16x128xf32>
    %229 = arith.addf %228, %227 : vector<16x128xf32>
    %230 = arith.divf %228, %229 : vector<16x128xf32>
    %231 = vector.extract_strided_slice %224 {offsets = [0, 128], sizes = [16, 128], strides = [1, 1]} : vector<16x512xf32> to vector<16x128xf32>
    %232 = arith.negf %231 : vector<16x128xf32>
    %233 = math.exp %232 : vector<16x128xf32>
    %cst_121 = arith.constant 1.000000e+00 : f32
    %234 = vector.broadcast %cst_121 : f32 to vector<16x128xf32>
    %235 = arith.addf %234, %233 : vector<16x128xf32>
    %236 = arith.divf %234, %235 : vector<16x128xf32>
    %237 = vector.extract_strided_slice %224 {offsets = [0, 256], sizes = [16, 128], strides = [1, 1]} : vector<16x512xf32> to vector<16x128xf32>
    %238 = math.tanh %237 : vector<16x128xf32>
    %239 = vector.extract_strided_slice %224 {offsets = [0, 384], sizes = [16, 128], strides = [1, 1]} : vector<16x512xf32> to vector<16x128xf32>
    %240 = arith.negf %239 : vector<16x128xf32>
    %241 = math.exp %240 : vector<16x128xf32>
    %cst_122 = arith.constant 1.000000e+00 : f32
    %242 = vector.broadcast %cst_122 : f32 to vector<16x128xf32>
    %243 = arith.addf %242, %241 : vector<16x128xf32>
    %244 = arith.divf %242, %243 : vector<16x128xf32>
    %245 = arith.mulf %236, %217 : vector<16x128xf32>
    %246 = arith.mulf %230, %238 : vector<16x128xf32>
    %247 = arith.addf %245, %246 : vector<16x128xf32>
    %248 = math.tanh %247 : vector<16x128xf32>
    %249 = arith.mulf %244, %248 : vector<16x128xf32>
    %250 = arith.truncf %249 : vector<16x128xf32> to vector<16x128xbf16>
    %251 = arith.index_cast %c5_i32 : i32 to index
    %c0_123 = arith.constant 0 : index
    %c0_124 = arith.constant 0 : index
    %252 = vector.load %arg8[%251, %c0_123, %c0_124] : memref<8x16x128xbf16, #tpu.memory_space<vmem>>, vector<1x16x128xbf16>
    %253 = vector.shape_cast %252 : vector<1x16x128xbf16> to vector<16x128xbf16>
    %254 = vector.shape_cast %250 : vector<16x128xbf16> to vector<1x16x128xbf16>
    tpu.vector_store %arg8[%251, %c0_123, %c0_124], %254 {strides = array<i32>} : memref<8x16x128xbf16, #tpu.memory_space<vmem>>, vector<1x16x128xbf16>,
    %c0_125 = arith.constant 0 : index
    %c0_126 = arith.constant 0 : index
    %255 = vector.load %arg14[%c0_125, %c0_126] : memref<16x128xbf16, #tpu.memory_space<vmem>>, vector<16x128xbf16>
    tpu.vector_store %arg14[%c0_125, %c0_126], %250 {strides = array<i32>} : memref<16x128xbf16, #tpu.memory_space<vmem>>, vector<16x128xbf16>,
    %c0_127 = arith.constant 0 : index
    %c0_128 = arith.constant 0 : index
    %256 = vector.load %arg12[%c0_127, %c0_128] : memref<16x128xf32, #tpu.memory_space<vmem>>, vector<16x128xf32>
    tpu.vector_store %arg12[%c0_127, %c0_128], %249 {strides = array<i32>} : memref<16x128xf32, #tpu.memory_space<vmem>>, vector<16x128xf32>,
    %c0_129 = arith.constant 0 : index
    %c0_130 = arith.constant 0 : index
    %257 = vector.load %arg13[%c0_129, %c0_130] : memref<16x128xf32, #tpu.memory_space<vmem>>, vector<16x128xf32>
    tpu.vector_store %arg13[%c0_129, %c0_130], %247 {strides = array<i32>} : memref<16x128xf32, #tpu.memory_space<vmem>>, vector<16x128xf32>,
    %c6_i32 = arith.constant 6 : i32
    %c0_131 = arith.constant 0 : index
    %c0_132 = arith.constant 0 : index
    %258 = vector.load %arg13[%c0_131, %c0_132] : memref<16x128xf32, #tpu.memory_space<vmem>>, vector<16x128xf32>
    %259 = arith.index_cast %c6_i32 : i32 to index
    %c0_133 = arith.constant 0 : index
    %c0_134 = arith.constant 0 : index
    %260 = vector.load %arg11[%259, %c0_133, %c0_134] : memref<8x16x512xf32, #tpu.memory_space<vmem>>, vector<1x16x512xf32>
    %261 = vector.shape_cast %260 : vector<1x16x512xf32> to vector<16x512xf32>
    %c0_135 = arith.constant 0 : index
    %c0_136 = arith.constant 0 : index
    %262 = vector.load %arg14[%c0_135, %c0_136] : memref<16x128xbf16, #tpu.memory_space<vmem>>, vector<16x128xbf16>
    %c0_137 = arith.constant 0 : index
    %c0_138 = arith.constant 0 : index
    %263 = vector.load %arg4[%c0_137, %c0_138] : memref<128x512xbf16, #tpu.memory_space<vmem>>, vector<128x512xbf16>
    %cst_139 = arith.constant dense<0.000000e+00> : vector<16x512xf32>
    %264 = tpu.matmul %262, %263, %cst_139 {dimension_numbers = #tpu.dot_dimension_numbers<[1], [0], [0], [1], [0, 0, 1, 1], [], []>} : vector<16x128xbf16>, vector<128x512xbf16>, vector<16x512xf32> -> vector<16x512xf32>
    %265 = arith.addf %261, %264 : vector<16x512xf32>
    %266 = vector.extract_strided_slice %265 {offsets = [0, 0], sizes = [16, 128], strides = [1, 1]} : vector<16x512xf32> to vector<16x128xf32>
    %267 = arith.negf %266 : vector<16x128xf32>
    %268 = math.exp %267 : vector<16x128xf32>
    %cst_140 = arith.constant 1.000000e+00 : f32
    %269 = vector.broadcast %cst_140 : f32 to vector<16x128xf32>
    %270 = arith.addf %269, %268 : vector<16x128xf32>
    %271 = arith.divf %269, %270 : vector<16x128xf32>
    %272 = vector.extract_strided_slice %265 {offsets = [0, 128], sizes = [16, 128], strides = [1, 1]} : vector<16x512xf32> to vector<16x128xf32>
    %273 = arith.negf %272 : vector<16x128xf32>
    %274 = math.exp %273 : vector<16x128xf32>
    %cst_141 = arith.constant 1.000000e+00 : f32
    %275 = vector.broadcast %cst_141 : f32 to vector<16x128xf32>
    %276 = arith.addf %275, %274 : vector<16x128xf32>
    %277 = arith.divf %275, %276 : vector<16x128xf32>
    %278 = vector.extract_strided_slice %265 {offsets = [0, 256], sizes = [16, 128], strides = [1, 1]} : vector<16x512xf32> to vector<16x128xf32>
    %279 = math.tanh %278 : vector<16x128xf32>
    %280 = vector.extract_strided_slice %265 {offsets = [0, 384], sizes = [16, 128], strides = [1, 1]} : vector<16x512xf32> to vector<16x128xf32>
    %281 = arith.negf %280 : vector<16x128xf32>
    %282 = math.exp %281 : vector<16x128xf32>
    %cst_142 = arith.constant 1.000000e+00 : f32
    %283 = vector.broadcast %cst_142 : f32 to vector<16x128xf32>
    %284 = arith.addf %283, %282 : vector<16x128xf32>
    %285 = arith.divf %283, %284 : vector<16x128xf32>
    %286 = arith.mulf %277, %258 : vector<16x128xf32>
    %287 = arith.mulf %271, %279 : vector<16x128xf32>
    %288 = arith.addf %286, %287 : vector<16x128xf32>
    %289 = math.tanh %288 : vector<16x128xf32>
    %290 = arith.mulf %285, %289 : vector<16x128xf32>
    %291 = arith.truncf %290 : vector<16x128xf32> to vector<16x128xbf16>
    %292 = arith.index_cast %c6_i32 : i32 to index
    %c0_143 = arith.constant 0 : index
    %c0_144 = arith.constant 0 : index
    %293 = vector.load %arg8[%292, %c0_143, %c0_144] : memref<8x16x128xbf16, #tpu.memory_space<vmem>>, vector<1x16x128xbf16>
    %294 = vector.shape_cast %293 : vector<1x16x128xbf16> to vector<16x128xbf16>
    %295 = vector.shape_cast %291 : vector<16x128xbf16> to vector<1x16x128xbf16>
    tpu.vector_store %arg8[%292, %c0_143, %c0_144], %295 {strides = array<i32>} : memref<8x16x128xbf16, #tpu.memory_space<vmem>>, vector<1x16x128xbf16>,
    %c0_145 = arith.constant 0 : index
    %c0_146 = arith.constant 0 : index
    %296 = vector.load %arg14[%c0_145, %c0_146] : memref<16x128xbf16, #tpu.memory_space<vmem>>, vector<16x128xbf16>
    tpu.vector_store %arg14[%c0_145, %c0_146], %291 {strides = array<i32>} : memref<16x128xbf16, #tpu.memory_space<vmem>>, vector<16x128xbf16>,
    %c0_147 = arith.constant 0 : index
    %c0_148 = arith.constant 0 : index
    %297 = vector.load %arg12[%c0_147, %c0_148] : memref<16x128xf32, #tpu.memory_space<vmem>>, vector<16x128xf32>
    tpu.vector_store %arg12[%c0_147, %c0_148], %290 {strides = array<i32>} : memref<16x128xf32, #tpu.memory_space<vmem>>, vector<16x128xf32>,
    %c0_149 = arith.constant 0 : index
    %c0_150 = arith.constant 0 : index
    %298 = vector.load %arg13[%c0_149, %c0_150] : memref<16x128xf32, #tpu.memory_space<vmem>>, vector<16x128xf32>
    tpu.vector_store %arg13[%c0_149, %c0_150], %288 {strides = array<i32>} : memref<16x128xf32, #tpu.memory_space<vmem>>, vector<16x128xf32>,
    %c7_i32 = arith.constant 7 : i32
    %c0_151 = arith.constant 0 : index
    %c0_152 = arith.constant 0 : index
    %299 = vector.load %arg13[%c0_151, %c0_152] : memref<16x128xf32, #tpu.memory_space<vmem>>, vector<16x128xf32>
    %300 = arith.index_cast %c7_i32 : i32 to index
    %c0_153 = arith.constant 0 : index
    %c0_154 = arith.constant 0 : index
    %301 = vector.load %arg11[%300, %c0_153, %c0_154] : memref<8x16x512xf32, #tpu.memory_space<vmem>>, vector<1x16x512xf32>
    %302 = vector.shape_cast %301 : vector<1x16x512xf32> to vector<16x512xf32>
    %c0_155 = arith.constant 0 : index
    %c0_156 = arith.constant 0 : index
    %303 = vector.load %arg14[%c0_155, %c0_156] : memref<16x128xbf16, #tpu.memory_space<vmem>>, vector<16x128xbf16>
    %c0_157 = arith.constant 0 : index
    %c0_158 = arith.constant 0 : index
    %304 = vector.load %arg4[%c0_157, %c0_158] : memref<128x512xbf16, #tpu.memory_space<vmem>>, vector<128x512xbf16>
    %cst_159 = arith.constant dense<0.000000e+00> : vector<16x512xf32>
    %305 = tpu.matmul %303, %304, %cst_159 {dimension_numbers = #tpu.dot_dimension_numbers<[1], [0], [0], [1], [0, 0, 1, 1], [], []>} : vector<16x128xbf16>, vector<128x512xbf16>, vector<16x512xf32> -> vector<16x512xf32>
    %306 = arith.addf %302, %305 : vector<16x512xf32>
    %307 = vector.extract_strided_slice %306 {offsets = [0, 0], sizes = [16, 128], strides = [1, 1]} : vector<16x512xf32> to vector<16x128xf32>
    %308 = arith.negf %307 : vector<16x128xf32>
    %309 = math.exp %308 : vector<16x128xf32>
    %cst_160 = arith.constant 1.000000e+00 : f32
    %310 = vector.broadcast %cst_160 : f32 to vector<16x128xf32>
    %311 = arith.addf %310, %309 : vector<16x128xf32>
    %312 = arith.divf %310, %311 : vector<16x128xf32>
    %313 = vector.extract_strided_slice %306 {offsets = [0, 128], sizes = [16, 128], strides = [1, 1]} : vector<16x512xf32> to vector<16x128xf32>
    %314 = arith.negf %313 : vector<16x128xf32>
    %315 = math.exp %314 : vector<16x128xf32>
    %cst_161 = arith.constant 1.000000e+00 : f32
    %316 = vector.broadcast %cst_161 : f32 to vector<16x128xf32>
    %317 = arith.addf %316, %315 : vector<16x128xf32>
    %318 = arith.divf %316, %317 : vector<16x128xf32>
    %319 = vector.extract_strided_slice %306 {offsets = [0, 256], sizes = [16, 128], strides = [1, 1]} : vector<16x512xf32> to vector<16x128xf32>
    %320 = math.tanh %319 : vector<16x128xf32>
    %321 = vector.extract_strided_slice %306 {offsets = [0, 384], sizes = [16, 128], strides = [1, 1]} : vector<16x512xf32> to vector<16x128xf32>
    %322 = arith.negf %321 : vector<16x128xf32>
    %323 = math.exp %322 : vector<16x128xf32>
    %cst_162 = arith.constant 1.000000e+00 : f32
    %324 = vector.broadcast %cst_162 : f32 to vector<16x128xf32>
    %325 = arith.addf %324, %323 : vector<16x128xf32>
    %326 = arith.divf %324, %325 : vector<16x128xf32>
    %327 = arith.mulf %318, %299 : vector<16x128xf32>
    %328 = arith.mulf %312, %320 : vector<16x128xf32>
    %329 = arith.addf %327, %328 : vector<16x128xf32>
    %330 = math.tanh %329 : vector<16x128xf32>
    %331 = arith.mulf %326, %330 : vector<16x128xf32>
    %332 = arith.truncf %331 : vector<16x128xf32> to vector<16x128xbf16>
    %333 = arith.index_cast %c7_i32 : i32 to index
    %c0_163 = arith.constant 0 : index
    %c0_164 = arith.constant 0 : index
    %334 = vector.load %arg8[%333, %c0_163, %c0_164] : memref<8x16x128xbf16, #tpu.memory_space<vmem>>, vector<1x16x128xbf16>
    %335 = vector.shape_cast %334 : vector<1x16x128xbf16> to vector<16x128xbf16>
    %336 = vector.shape_cast %332 : vector<16x128xbf16> to vector<1x16x128xbf16>
    tpu.vector_store %arg8[%333, %c0_163, %c0_164], %336 {strides = array<i32>} : memref<8x16x128xbf16, #tpu.memory_space<vmem>>, vector<1x16x128xbf16>,
    %c0_165 = arith.constant 0 : index
    %c0_166 = arith.constant 0 : index
    %337 = vector.load %arg14[%c0_165, %c0_166] : memref<16x128xbf16, #tpu.memory_space<vmem>>, vector<16x128xbf16>
    tpu.vector_store %arg14[%c0_165, %c0_166], %332 {strides = array<i32>} : memref<16x128xbf16, #tpu.memory_space<vmem>>, vector<16x128xbf16>,
    %c0_167 = arith.constant 0 : index
    %c0_168 = arith.constant 0 : index
    %338 = vector.load %arg12[%c0_167, %c0_168] : memref<16x128xf32, #tpu.memory_space<vmem>>, vector<16x128xf32>
    tpu.vector_store %arg12[%c0_167, %c0_168], %331 {strides = array<i32>} : memref<16x128xf32, #tpu.memory_space<vmem>>, vector<16x128xf32>,
    %c0_169 = arith.constant 0 : index
    %c0_170 = arith.constant 0 : index
    %339 = vector.load %arg13[%c0_169, %c0_170] : memref<16x128xf32, #tpu.memory_space<vmem>>, vector<16x128xf32>
    tpu.vector_store %arg13[%c0_169, %c0_170], %329 {strides = array<i32>} : memref<16x128xf32, #tpu.memory_space<vmem>>, vector<16x128xf32>,
    %c8_i32 = arith.constant 8 : i32
    %c0_171 = arith.constant 0 : index
    %c0_172 = arith.constant 0 : index
    %340 = vector.load %arg12[%c0_171, %c0_172] : memref<16x128xf32, #tpu.memory_space<vmem>>, vector<16x128xf32>
    %c0_173 = arith.constant 0 : index
    %c0_174 = arith.constant 0 : index
    %341 = vector.load %arg9[%c0_173, %c0_174] : memref<16x128xf32, #tpu.memory_space<vmem>>, vector<16x128xf32>
    tpu.vector_store %arg9[%c0_173, %c0_174], %340 {strides = array<i32>} : memref<16x128xf32, #tpu.memory_space<vmem>>, vector<16x128xf32>,
    %c0_175 = arith.constant 0 : index
    %c0_176 = arith.constant 0 : index
    %342 = vector.load %arg13[%c0_175, %c0_176] : memref<16x128xf32, #tpu.memory_space<vmem>>, vector<16x128xf32>
    %c0_177 = arith.constant 0 : index
    %c0_178 = arith.constant 0 : index
    %343 = vector.load %arg10[%c0_177, %c0_178] : memref<16x128xf32, #tpu.memory_space<vmem>>, vector<16x128xf32>
    tpu.vector_store %arg10[%c0_177, %c0_178], %342 {strides = array<i32>} : memref<16x128xf32, #tpu.memory_space<vmem>>, vector<16x128xf32>,
    return
  }
  func.func @transform_0(%arg0: i32, %arg1: i32) -> (i32, i32, i32) {
    %c0_i32 = arith.constant 0 : i32
    %c0_i32_0 = arith.constant 0 : i32
    return %arg1, %arg0, %c0_i32 : i32, i32, i32
  }
  func.func @transform_1(%arg0: i32, %arg1: i32) -> (i32, i32) {
    %c0_i32 = arith.constant 0 : i32
    %c0_i32_0 = arith.constant 0 : i32
    %c0_i32_1 = arith.constant 0 : i32
    return %c0_i32, %c0_i32_0 : i32, i32
  }
  func.func @transform_2(%arg0: i32, %arg1: i32) -> (i32, i32) {
    %c0_i32 = arith.constant 0 : i32
    %c0_i32_0 = arith.constant 0 : i32
    %c0_i32_1 = arith.constant 0 : i32
    return %c0_i32, %c0_i32_0 : i32, i32
  }
  func.func @transform_3(%arg0: i32, %arg1: i32) -> (i32, i32) {
    %c0_i32 = arith.constant 0 : i32
    %c0_i32_0 = arith.constant 0 : i32
    %c0_i32_1 = arith.constant 0 : i32
    return %c0_i32, %c0_i32_0 : i32, i32
  }
  func.func @transform_4(%arg0: i32, %arg1: i32) -> (i32, i32) {
    %c0_i32 = arith.constant 0 : i32
    %c0_i32_0 = arith.constant 0 : i32
    return %arg0, %c0_i32 : i32, i32
  }
  func.func @transform_5(%arg0: i32, %arg1: i32) -> (i32, i32) {
    %c0_i32 = arith.constant 0 : i32
    %c0_i32_0 = arith.constant 0 : i32
    return %arg0, %c0_i32 : i32, i32
  }
  func.func @transform_6(%arg0: i32, %arg1: i32) -> (i32, i32, i32) {
    %c0_i32 = arith.constant 0 : i32
    %c0_i32_0 = arith.constant 0 : i32
    return %arg1, %arg0, %c0_i32 : i32, i32, i32
  }
  func.func @transform_7(%arg0: i32, %arg1: i32) -> (i32, i32) {
    %c0_i32 = arith.constant 0 : i32
    %c0_i32_0 = arith.constant 0 : i32
    return %arg0, %c0_i32 : i32, i32
  }
  func.func @transform_8(%arg0: i32, %arg1: i32) -> (i32, i32) {
    %c0_i32 = arith.constant 0 : i32
    %c0_i32_0 = arith.constant 0 : i32
    return %arg0, %c0_i32 : i32, i32
  }
}

module attributes {stable_mosaic.version = 11 : i64} {
  func.func @lstm_layer_kernel(%arg0: i32, %arg1: i32, %arg2: memref<8x16x128xbf16, #tpu.memory_space<vmem>>, %arg3: memref<128x512xbf16, #tpu.memory_space<vmem>>, %arg4: memref<128x512xbf16, #tpu.memory_space<vmem>>, %arg5: memref<1x512xf32, #tpu.memory_space<vmem>>, %arg6: memref<16x128xf32, #tpu.memory_space<vmem>>, %arg7: memref<16x128xf32, #tpu.memory_space<vmem>>, %arg8: memref<8x16x128xbf16, #tpu.memory_space<vmem>>, %arg9: memref<16x128xf32, #tpu.memory_space<vmem>>, %arg10: memref<16x128xf32, #tpu.memory_space<vmem>>, %arg11: memref<8x16x512xf32, #tpu.memory_space<vmem>>, %arg12: memref<16x128xf32, #tpu.memory_space<vmem>>, %arg13: memref<16x128xf32, #tpu.memory_space<vmem>>, %arg14: memref<16x128xbf16, #tpu.memory_space<vmem>>) attributes {dimension_semantics = [#tpu.dimension_semantics<parallel>, #tpu.dimension_semantics<arbitrary>], iteration_bounds = array<i64: 1, 1>, scalar_prefetch = 0 : i64, scratch_operands = 4 : i64, tpu.core_type = #tpu.core_type<tc>, window_params = [{transform_indices = @transform_0, window_bounds = array<i64: 8, 16, 128>}, {pipeline_mode = #tpu.pipeline_mode<synchronous>, transform_indices = @transform_1, window_bounds = array<i64: 128, 512>}, {pipeline_mode = #tpu.pipeline_mode<synchronous>, transform_indices = @transform_2, window_bounds = array<i64: 128, 512>}, {pipeline_mode = #tpu.pipeline_mode<synchronous>, transform_indices = @transform_3, window_bounds = array<i64: 1, 512>}, {transform_indices = @transform_4, window_bounds = array<i64: 16, 128>}, {transform_indices = @transform_5, window_bounds = array<i64: 16, 128>}, {transform_indices = @transform_6, window_bounds = array<i64: 8, 16, 128>}, {transform_indices = @transform_7, window_bounds = array<i64: 16, 128>}, {transform_indices = @transform_8, window_bounds = array<i64: 16, 128>}]} {
    %c0_i32 = arith.constant 0 : i32
    %0 = arith.cmpi eq, %arg1, %c0_i32 : i32
    %1 = arith.extui %0 : i1 to i32
    %c0_i32_0 = arith.constant 0 : i32
    %2 = arith.cmpi ne, %1, %c0_i32_0 : i32
    scf.if %2 {
      %c0_179 = arith.constant 0 : index
      %c0_180 = arith.constant 0 : index
      %344 = vector.load %arg6[%c0_179, %c0_180] : memref<16x128xf32, #tpu.memory_space<vmem>>, vector<16x128xf32>
      %c0_181 = arith.constant 0 : index
      %c0_182 = arith.constant 0 : index
      %345 = vector.load %arg12[%c0_181, %c0_182] : memref<16x128xf32, #tpu.memory_space<vmem>>, vector<16x128xf32>
      tpu.vector_store %arg12[%c0_181, %c0_182], %344 {strides = array<i32>} : memref<16x128xf32, #tpu.memory_space<vmem>>, vector<16x128xf32>,
      %c0_183 = arith.constant 0 : index
      %c0_184 = arith.constant 0 : index
      %346 = vector.load %arg7[%c0_183, %c0_184] : memref<16x128xf32, #tpu.memory_space<vmem>>, vector<16x128xf32>
      %c0_185 = arith.constant 0 : index
      %c0_186 = arith.constant 0 : index
      %347 = vector.load %arg13[%c0_185, %c0_186] : memref<16x128xf32, #tpu.memory_space<vmem>>, vector<16x128xf32>
      tpu.vector_store %arg13[%c0_185, %c0_186], %346 {strides = array<i32>} : memref<16x128xf32, #tpu.memory_space<vmem>>, vector<16x128xf32>,
      %c0_187 = arith.constant 0 : index
      %c0_188 = arith.constant 0 : index
      %348 = vector.load %arg6[%c0_187, %c0_188] : memref<16x128xf32, #tpu.memory_space<vmem>>, vector<16x128xf32>
      %349 = arith.truncf %348 : vector<16x128xf32> to vector<16x128xbf16>
      %c0_189 = arith.constant 0 : index
      %c0_190 = arith.constant 0 : index
      %350 = vector.load %arg14[%c0_189, %c0_190] : memref<16x128xbf16, #tpu.memory_space<vmem>>, vector<16x128xbf16>
      tpu.vector_store %arg14[%c0_189, %c0_190], %349 {strides = array<i32>} : memref<16x128xbf16, #tpu.memory_space<vmem>>, vector<16x128xbf16>,
    } else {
    }
    %c0 = arith.constant 0 : index
    %c0_1 = arith.constant 0 : index
    %c0_2 = arith.constant 0 : index
    %3 = vector.load %arg2[%c0, %c0_1, %c0_2] : memref<8x16x128xbf16, #tpu.memory_space<vmem>>, vector<8x16x128xbf16>
    %4 = vector.shape_cast %3 : vector<8x16x128xbf16> to vector<128x128xbf16>
    %c0_3 = arith.constant 0 : index
    %c0_4 = arith.constant 0 : index
    %5 = vector.load %arg3[%c0_3, %c0_4] : memref<128x512xbf16, #tpu.memory_space<vmem>>, vector<128x512xbf16>
    %cst = arith.constant dense<0.000000e+00> : vector<128x512xf32>
    %6 = tpu.matmul %4, %5, %cst {dimension_numbers = #tpu.dot_dimension_numbers<[1], [0], [0], [1], [0, 0, 1, 1], [], []>} : vector<128x128xbf16>, vector<128x512xbf16>, vector<128x512xf32> -> vector<128x512xf32>
    %c0_5 = arith.constant 0 : index
    %c0_6 = arith.constant 0 : index
    %7 = vector.load %arg5[%c0_5, %c0_6] : memref<1x512xf32, #tpu.memory_space<vmem>>, vector<1x512xf32>
    %8 = vector.broadcast %7 : vector<1x512xf32> to vector<128x512xf32>
    %9 = arith.addf %6, %8 : vector<128x512xf32>
    %10 = vector.shape_cast %9 : vector<128x512xf32> to vector<8x16x512xf32>
    %c0_7 = arith.constant 0 : index
    %c0_8 = arith.constant 0 : index
    %c0_9 = arith.constant 0 : index
    %11 = vector.load %arg11[%c0_7, %c0_8, %c0_9] : memref<8x16x512xf32, #tpu.memory_space<vmem>>, vector<8x16x512xf32>
    tpu.vector_store %arg11[%c0_7, %c0_8, %c0_9], %10 {strides = array<i32>} : memref<8x16x512xf32, #tpu.memory_space<vmem>>, vector<8x16x512xf32>,
    %c0_i32_10 = arith.constant 0 : i32
    %c0_11 = arith.constant 0 : index
    %c0_12 = arith.constant 0 : index
    %12 = vector.load %arg13[%c0_11, %c0_12] : memref<16x128xf32, #tpu.memory_space<vmem>>, vector<16x128xf32>
    %13 = arith.index_cast %c0_i32_10 : i32 to index
    %c0_13 = arith.constant 0 : index
    %c0_14 = arith.constant 0 : index
    %14 = vector.load %arg11[%13, %c0_13, %c0_14] : memref<8x16x512xf32, #tpu.memory_space<vmem>>, vector<1x16x512xf32>
    %15 = vector.shape_cast %14 : vector<1x16x512xf32> to vector<16x512xf32>
    %c0_15 = arith.constant 0 : index
    %c0_16 = arith.constant 0 : index
    %16 = vector.load %arg14[%c0_15, %c0_16] : memref<16x128xbf16, #tpu.memory_space<vmem>>, vector<16x128xbf16>
    %c0_17 = arith.constant 0 : index
    %c0_18 = arith.constant 0 : index
    %17 = vector.load %arg4[%c0_17, %c0_18] : memref<128x512xbf16, #tpu.memory_space<vmem>>, vector<128x512xbf16>
    %cst_19 = arith.constant dense<0.000000e+00> : vector<16x512xf32>
    %18 = tpu.matmul %16, %17, %cst_19 {dimension_numbers = #tpu.dot_dimension_numbers<[1], [0], [0], [1], [0, 0, 1, 1], [], []>} : vector<16x128xbf16>, vector<128x512xbf16>, vector<16x512xf32> -> vector<16x512xf32>
    %19 = arith.addf %15, %18 : vector<16x512xf32>
    %20 = vector.extract_strided_slice %19 {offsets = [0, 0], sizes = [16, 128], strides = [1, 1]} : vector<16x512xf32> to vector<16x128xf32>
    %21 = arith.negf %20 : vector<16x128xf32>
    %22 = math.exp %21 : vector<16x128xf32>
    %cst_20 = arith.constant 1.000000e+00 : f32
    %23 = vector.broadcast %cst_20 : f32 to vector<16x128xf32>
    %24 = arith.addf %23, %22 : vector<16x128xf32>
    %25 = arith.divf %23, %24 : vector<16x128xf32>
    %26 = vector.extract_strided_slice %19 {offsets = [0, 128], sizes = [16, 128], strides = [1, 1]} : vector<16x512xf32> to vector<16x128xf32>
    %27 = arith.negf %26 : vector<16x128xf32>
    %28 = math.exp %27 : vector<16x128xf32>
    %cst_21 = arith.constant 1.000000e+00 : f32
    %29 = vector.broadcast %cst_21 : f32 to vector<16x128xf32>
    %30 = arith.addf %29, %28 : vector<16x128xf32>
    %31 = arith.divf %29, %30 : vector<16x128xf32>
    %32 = vector.extract_strided_slice %19 {offsets = [0, 256], sizes = [16, 128], strides = [1, 1]} : vector<16x512xf32> to vector<16x128xf32>
    %33 = math.tanh %32 : vector<16x128xf32>
    %34 = vector.extract_strided_slice %19 {offsets = [0, 384], sizes = [16, 128], strides = [1, 1]} : vector<16x512xf32> to vector<16x128xf32>
    %35 = arith.negf %34 : vector<16x128xf32>
    %36 = math.exp %35 : vector<16x128xf32>
    %cst_22 = arith.constant 1.000000e+00 : f32
    %37 = vector.broadcast %cst_22 : f32 to vector<16x128xf32>
    %38 = arith.addf %37, %36 : vector<16x128xf32>
    %39 = arith.divf %37, %38 : vector<16x128xf32>
    %40 = arith.mulf %31, %12 : vector<16x128xf32>
    %41 = arith.mulf %25, %33 : vector<16x128xf32>
    %42 = arith.addf %40, %41 : vector<16x128xf32>
    %43 = math.tanh %42 : vector<16x128xf32>
    %44 = arith.mulf %39, %43 : vector<16x128xf32>
    %45 = arith.truncf %44 : vector<16x128xf32> to vector<16x128xbf16>
    %46 = arith.index_cast %c0_i32_10 : i32 to index
    %c0_23 = arith.constant 0 : index
    %c0_24 = arith.constant 0 : index
    %47 = vector.load %arg8[%46, %c0_23, %c0_24] : memref<8x16x128xbf16, #tpu.memory_space<vmem>>, vector<1x16x128xbf16>
    %48 = vector.shape_cast %47 : vector<1x16x128xbf16> to vector<16x128xbf16>
    %49 = vector.shape_cast %45 : vector<16x128xbf16> to vector<1x16x128xbf16>
    tpu.vector_store %arg8[%46, %c0_23, %c0_24], %49 {strides = array<i32>} : memref<8x16x128xbf16, #tpu.memory_space<vmem>>, vector<1x16x128xbf16>,
    %c0_25 = arith.constant 0 : index
    %c0_26 = arith.constant 0 : index
    %50 = vector.load %arg14[%c0_25, %c0_26] : memref<16x128xbf16, #tpu.memory_space<vmem>>, vector<16x128xbf16>
    tpu.vector_store %arg14[%c0_25, %c0_26], %45 {strides = array<i32>} : memref<16x128xbf16, #tpu.memory_space<vmem>>, vector<16x128xbf16>,
    %c0_27 = arith.constant 0 : index
    %c0_28 = arith.constant 0 : index
    %51 = vector.load %arg12[%c0_27, %c0_28] : memref<16x128xf32, #tpu.memory_space<vmem>>, vector<16x128xf32>
    tpu.vector_store %arg12[%c0_27, %c0_28], %44 {strides = array<i32>} : memref<16x128xf32, #tpu.memory_space<vmem>>, vector<16x128xf32>,
    %c0_29 = arith.constant 0 : index
    %c0_30 = arith.constant 0 : index
    %52 = vector.load %arg13[%c0_29, %c0_30] : memref<16x128xf32, #tpu.memory_space<vmem>>, vector<16x128xf32>
    tpu.vector_store %arg13[%c0_29, %c0_30], %42 {strides = array<i32>} : memref<16x128xf32, #tpu.memory_space<vmem>>, vector<16x128xf32>,
    %c1_i32 = arith.constant 1 : i32
    %c0_31 = arith.constant 0 : index
    %c0_32 = arith.constant 0 : index
    %53 = vector.load %arg13[%c0_31, %c0_32] : memref<16x128xf32, #tpu.memory_space<vmem>>, vector<16x128xf32>
    %54 = arith.index_cast %c1_i32 : i32 to index
    %c0_33 = arith.constant 0 : index
    %c0_34 = arith.constant 0 : index
    %55 = vector.load %arg11[%54, %c0_33, %c0_34] : memref<8x16x512xf32, #tpu.memory_space<vmem>>, vector<1x16x512xf32>
    %56 = vector.shape_cast %55 : vector<1x16x512xf32> to vector<16x512xf32>
    %c0_35 = arith.constant 0 : index
    %c0_36 = arith.constant 0 : index
    %57 = vector.load %arg14[%c0_35, %c0_36] : memref<16x128xbf16, #tpu.memory_space<vmem>>, vector<16x128xbf16>
    %c0_37 = arith.constant 0 : index
    %c0_38 = arith.constant 0 : index
    %58 = vector.load %arg4[%c0_37, %c0_38] : memref<128x512xbf16, #tpu.memory_space<vmem>>, vector<128x512xbf16>
    %cst_39 = arith.constant dense<0.000000e+00> : vector<16x512xf32>
    %59 = tpu.matmul %57, %58, %cst_39 {dimension_numbers = #tpu.dot_dimension_numbers<[1], [0], [0], [1], [0, 0, 1, 1], [], []>} : vector<16x128xbf16>, vector<128x512xbf16>, vector<16x512xf32> -> vector<16x512xf32>
    %60 = arith.addf %56, %59 : vector<16x512xf32>
    %61 = vector.extract_strided_slice %60 {offsets = [0, 0], sizes = [16, 128], strides = [1, 1]} : vector<16x512xf32> to vector<16x128xf32>
    %62 = arith.negf %61 : vector<16x128xf32>
    %63 = math.exp %62 : vector<16x128xf32>
    %cst_40 = arith.constant 1.000000e+00 : f32
    %64 = vector.broadcast %cst_40 : f32 to vector<16x128xf32>
    %65 = arith.addf %64, %63 : vector<16x128xf32>
    %66 = arith.divf %64, %65 : vector<16x128xf32>
    %67 = vector.extract_strided_slice %60 {offsets = [0, 128], sizes = [16, 128], strides = [1, 1]} : vector<16x512xf32> to vector<16x128xf32>
    %68 = arith.negf %67 : vector<16x128xf32>
    %69 = math.exp %68 : vector<16x128xf32>
    %cst_41 = arith.constant 1.000000e+00 : f32
    %70 = vector.broadcast %cst_41 : f32 to vector<16x128xf32>
    %71 = arith.addf %70, %69 : vector<16x128xf32>
    %72 = arith.divf %70, %71 : vector<16x128xf32>
    %73 = vector.extract_strided_slice %60 {offsets = [0, 256], sizes = [16, 128], strides = [1, 1]} : vector<16x512xf32> to vector<16x128xf32>
    %74 = math.tanh %73 : vector<16x128xf32>
    %75 = vector.extract_strided_slice %60 {offsets = [0, 384], sizes = [16, 128], strides = [1, 1]} : vector<16x512xf32> to vector<16x128xf32>
    %76 = arith.negf %75 : vector<16x128xf32>
    %77 = math.exp %76 : vector<16x128xf32>
    %cst_42 = arith.constant 1.000000e+00 : f32
    %78 = vector.broadcast %cst_42 : f32 to vector<16x128xf32>
    %79 = arith.addf %78, %77 : vector<16x128xf32>
    %80 = arith.divf %78, %79 : vector<16x128xf32>
    %81 = arith.mulf %72, %53 : vector<16x128xf32>
    %82 = arith.mulf %66, %74 : vector<16x128xf32>
    %83 = arith.addf %81, %82 : vector<16x128xf32>
    %84 = math.tanh %83 : vector<16x128xf32>
    %85 = arith.mulf %80, %84 : vector<16x128xf32>
    %86 = arith.truncf %85 : vector<16x128xf32> to vector<16x128xbf16>
    %87 = arith.index_cast %c1_i32 : i32 to index
    %c0_43 = arith.constant 0 : index
    %c0_44 = arith.constant 0 : index
    %88 = vector.load %arg8[%87, %c0_43, %c0_44] : memref<8x16x128xbf16, #tpu.memory_space<vmem>>, vector<1x16x128xbf16>
    %89 = vector.shape_cast %88 : vector<1x16x128xbf16> to vector<16x128xbf16>
    %90 = vector.shape_cast %86 : vector<16x128xbf16> to vector<1x16x128xbf16>
    tpu.vector_store %arg8[%87, %c0_43, %c0_44], %90 {strides = array<i32>} : memref<8x16x128xbf16, #tpu.memory_space<vmem>>, vector<1x16x128xbf16>,
    %c0_45 = arith.constant 0 : index
    %c0_46 = arith.constant 0 : index
    %91 = vector.load %arg14[%c0_45, %c0_46] : memref<16x128xbf16, #tpu.memory_space<vmem>>, vector<16x128xbf16>
    tpu.vector_store %arg14[%c0_45, %c0_46], %86 {strides = array<i32>} : memref<16x128xbf16, #tpu.memory_space<vmem>>, vector<16x128xbf16>,
    %c0_47 = arith.constant 0 : index
    %c0_48 = arith.constant 0 : index
    %92 = vector.load %arg12[%c0_47, %c0_48] : memref<16x128xf32, #tpu.memory_space<vmem>>, vector<16x128xf32>
    tpu.vector_store %arg12[%c0_47, %c0_48], %85 {strides = array<i32>} : memref<16x128xf32, #tpu.memory_space<vmem>>, vector<16x128xf32>,
    %c0_49 = arith.constant 0 : index
    %c0_50 = arith.constant 0 : index
    %93 = vector.load %arg13[%c0_49, %c0_50] : memref<16x128xf32, #tpu.memory_space<vmem>>, vector<16x128xf32>
    tpu.vector_store %arg13[%c0_49, %c0_50], %83 {strides = array<i32>} : memref<16x128xf32, #tpu.memory_space<vmem>>, vector<16x128xf32>,
    %c2_i32 = arith.constant 2 : i32
    %c0_51 = arith.constant 0 : index
    %c0_52 = arith.constant 0 : index
    %94 = vector.load %arg13[%c0_51, %c0_52] : memref<16x128xf32, #tpu.memory_space<vmem>>, vector<16x128xf32>
    %95 = arith.index_cast %c2_i32 : i32 to index
    %c0_53 = arith.constant 0 : index
    %c0_54 = arith.constant 0 : index
    %96 = vector.load %arg11[%95, %c0_53, %c0_54] : memref<8x16x512xf32, #tpu.memory_space<vmem>>, vector<1x16x512xf32>
    %97 = vector.shape_cast %96 : vector<1x16x512xf32> to vector<16x512xf32>
    %c0_55 = arith.constant 0 : index
    %c0_56 = arith.constant 0 : index
    %98 = vector.load %arg14[%c0_55, %c0_56] : memref<16x128xbf16, #tpu.memory_space<vmem>>, vector<16x128xbf16>
    %c0_57 = arith.constant 0 : index
    %c0_58 = arith.constant 0 : index
    %99 = vector.load %arg4[%c0_57, %c0_58] : memref<128x512xbf16, #tpu.memory_space<vmem>>, vector<128x512xbf16>
    %cst_59 = arith.constant dense<0.000000e+00> : vector<16x512xf32>
    %100 = tpu.matmul %98, %99, %cst_59 {dimension_numbers = #tpu.dot_dimension_numbers<[1], [0], [0], [1], [0, 0, 1, 1], [], []>} : vector<16x128xbf16>, vector<128x512xbf16>, vector<16x512xf32> -> vector<16x512xf32>
    %101 = arith.addf %97, %100 : vector<16x512xf32>
    %102 = vector.extract_strided_slice %101 {offsets = [0, 0], sizes = [16, 128], strides = [1, 1]} : vector<16x512xf32> to vector<16x128xf32>
    %103 = arith.negf %102 : vector<16x128xf32>
    %104 = math.exp %103 : vector<16x128xf32>
    %cst_60 = arith.constant 1.000000e+00 : f32
    %105 = vector.broadcast %cst_60 : f32 to vector<16x128xf32>
    %106 = arith.addf %105, %104 : vector<16x128xf32>
    %107 = arith.divf %105, %106 : vector<16x128xf32>
    %108 = vector.extract_strided_slice %101 {offsets = [0, 128], sizes = [16, 128], strides = [1, 1]} : vector<16x512xf32> to vector<16x128xf32>
    %109 = arith.negf %108 : vector<16x128xf32>
    %110 = math.exp %109 : vector<16x128xf32>
    %cst_61 = arith.constant 1.000000e+00 : f32
    %111 = vector.broadcast %cst_61 : f32 to vector<16x128xf32>
    %112 = arith.addf %111, %110 : vector<16x128xf32>
    %113 = arith.divf %111, %112 : vector<16x128xf32>
    %114 = vector.extract_strided_slice %101 {offsets = [0, 256], sizes = [16, 128], strides = [1, 1]} : vector<16x512xf32> to vector<16x128xf32>
    %115 = math.tanh %114 : vector<16x128xf32>
    %116 = vector.extract_strided_slice %101 {offsets = [0, 384], sizes = [16, 128], strides = [1, 1]} : vector<16x512xf32> to vector<16x128xf32>
    %117 = arith.negf %116 : vector<16x128xf32>
    %118 = math.exp %117 : vector<16x128xf32>
    %cst_62 = arith.constant 1.000000e+00 : f32
    %119 = vector.broadcast %cst_62 : f32 to vector<16x128xf32>
    %120 = arith.addf %119, %118 : vector<16x128xf32>
    %121 = arith.divf %119, %120 : vector<16x128xf32>
    %122 = arith.mulf %113, %94 : vector<16x128xf32>
    %123 = arith.mulf %107, %115 : vector<16x128xf32>
    %124 = arith.addf %122, %123 : vector<16x128xf32>
    %125 = math.tanh %124 : vector<16x128xf32>
    %126 = arith.mulf %121, %125 : vector<16x128xf32>
    %127 = arith.truncf %126 : vector<16x128xf32> to vector<16x128xbf16>
    %128 = arith.index_cast %c2_i32 : i32 to index
    %c0_63 = arith.constant 0 : index
    %c0_64 = arith.constant 0 : index
    %129 = vector.load %arg8[%128, %c0_63, %c0_64] : memref<8x16x128xbf16, #tpu.memory_space<vmem>>, vector<1x16x128xbf16>
    %130 = vector.shape_cast %129 : vector<1x16x128xbf16> to vector<16x128xbf16>
    %131 = vector.shape_cast %127 : vector<16x128xbf16> to vector<1x16x128xbf16>
    tpu.vector_store %arg8[%128, %c0_63, %c0_64], %131 {strides = array<i32>} : memref<8x16x128xbf16, #tpu.memory_space<vmem>>, vector<1x16x128xbf16>,
    %c0_65 = arith.constant 0 : index
    %c0_66 = arith.constant 0 : index
    %132 = vector.load %arg14[%c0_65, %c0_66] : memref<16x128xbf16, #tpu.memory_space<vmem>>, vector<16x128xbf16>
    tpu.vector_store %arg14[%c0_65, %c0_66], %127 {strides = array<i32>} : memref<16x128xbf16, #tpu.memory_space<vmem>>, vector<16x128xbf16>,
    %c0_67 = arith.constant 0 : index
    %c0_68 = arith.constant 0 : index
    %133 = vector.load %arg12[%c0_67, %c0_68] : memref<16x128xf32, #tpu.memory_space<vmem>>, vector<16x128xf32>
    tpu.vector_store %arg12[%c0_67, %c0_68], %126 {strides = array<i32>} : memref<16x128xf32, #tpu.memory_space<vmem>>, vector<16x128xf32>,
    %c0_69 = arith.constant 0 : index
    %c0_70 = arith.constant 0 : index
    %134 = vector.load %arg13[%c0_69, %c0_70] : memref<16x128xf32, #tpu.memory_space<vmem>>, vector<16x128xf32>
    tpu.vector_store %arg13[%c0_69, %c0_70], %124 {strides = array<i32>} : memref<16x128xf32, #tpu.memory_space<vmem>>, vector<16x128xf32>,
    %c3_i32 = arith.constant 3 : i32
    %c0_71 = arith.constant 0 : index
    %c0_72 = arith.constant 0 : index
    %135 = vector.load %arg13[%c0_71, %c0_72] : memref<16x128xf32, #tpu.memory_space<vmem>>, vector<16x128xf32>
    %136 = arith.index_cast %c3_i32 : i32 to index
    %c0_73 = arith.constant 0 : index
    %c0_74 = arith.constant 0 : index
    %137 = vector.load %arg11[%136, %c0_73, %c0_74] : memref<8x16x512xf32, #tpu.memory_space<vmem>>, vector<1x16x512xf32>
    %138 = vector.shape_cast %137 : vector<1x16x512xf32> to vector<16x512xf32>
    %c0_75 = arith.constant 0 : index
    %c0_76 = arith.constant 0 : index
    %139 = vector.load %arg14[%c0_75, %c0_76] : memref<16x128xbf16, #tpu.memory_space<vmem>>, vector<16x128xbf16>
    %c0_77 = arith.constant 0 : index
    %c0_78 = arith.constant 0 : index
    %140 = vector.load %arg4[%c0_77, %c0_78] : memref<128x512xbf16, #tpu.memory_space<vmem>>, vector<128x512xbf16>
    %cst_79 = arith.constant dense<0.000000e+00> : vector<16x512xf32>
    %141 = tpu.matmul %139, %140, %cst_79 {dimension_numbers = #tpu.dot_dimension_numbers<[1], [0], [0], [1], [0, 0, 1, 1], [], []>} : vector<16x128xbf16>, vector<128x512xbf16>, vector<16x512xf32> -> vector<16x512xf32>
    %142 = arith.addf %138, %141 : vector<16x512xf32>
    %143 = vector.extract_strided_slice %142 {offsets = [0, 0], sizes = [16, 128], strides = [1, 1]} : vector<16x512xf32> to vector<16x128xf32>
    %144 = arith.negf %143 : vector<16x128xf32>
    %145 = math.exp %144 : vector<16x128xf32>
    %cst_80 = arith.constant 1.000000e+00 : f32
    %146 = vector.broadcast %cst_80 : f32 to vector<16x128xf32>
    %147 = arith.addf %146, %145 : vector<16x128xf32>
    %148 = arith.divf %146, %147 : vector<16x128xf32>
    %149 = vector.extract_strided_slice %142 {offsets = [0, 128], sizes = [16, 128], strides = [1, 1]} : vector<16x512xf32> to vector<16x128xf32>
    %150 = arith.negf %149 : vector<16x128xf32>
    %151 = math.exp %150 : vector<16x128xf32>
    %cst_81 = arith.constant 1.000000e+00 : f32
    %152 = vector.broadcast %cst_81 : f32 to vector<16x128xf32>
    %153 = arith.addf %152, %151 : vector<16x128xf32>
    %154 = arith.divf %152, %153 : vector<16x128xf32>
    %155 = vector.extract_strided_slice %142 {offsets = [0, 256], sizes = [16, 128], strides = [1, 1]} : vector<16x512xf32> to vector<16x128xf32>
    %156 = math.tanh %155 : vector<16x128xf32>
    %157 = vector.extract_strided_slice %142 {offsets = [0, 384], sizes = [16, 128], strides = [1, 1]} : vector<16x512xf32> to vector<16x128xf32>
    %158 = arith.negf %157 : vector<16x128xf32>
    %159 = math.exp %158 : vector<16x128xf32>
    %cst_82 = arith.constant 1.000000e+00 : f32
    %160 = vector.broadcast %cst_82 : f32 to vector<16x128xf32>
    %161 = arith.addf %160, %159 : vector<16x128xf32>
    %162 = arith.divf %160, %161 : vector<16x128xf32>
    %163 = arith.mulf %154, %135 : vector<16x128xf32>
    %164 = arith.mulf %148, %156 : vector<16x128xf32>
    %165 = arith.addf %163, %164 : vector<16x128xf32>
    %166 = math.tanh %165 : vector<16x128xf32>
    %167 = arith.mulf %162, %166 : vector<16x128xf32>
    %168 = arith.truncf %167 : vector<16x128xf32> to vector<16x128xbf16>
    %169 = arith.index_cast %c3_i32 : i32 to index
    %c0_83 = arith.constant 0 : index
    %c0_84 = arith.constant 0 : index
    %170 = vector.load %arg8[%169, %c0_83, %c0_84] : memref<8x16x128xbf16, #tpu.memory_space<vmem>>, vector<1x16x128xbf16>
    %171 = vector.shape_cast %170 : vector<1x16x128xbf16> to vector<16x128xbf16>
    %172 = vector.shape_cast %168 : vector<16x128xbf16> to vector<1x16x128xbf16>
    tpu.vector_store %arg8[%169, %c0_83, %c0_84], %172 {strides = array<i32>} : memref<8x16x128xbf16, #tpu.memory_space<vmem>>, vector<1x16x128xbf16>,
    %c0_85 = arith.constant 0 : index
    %c0_86 = arith.constant 0 : index
    %173 = vector.load %arg14[%c0_85, %c0_86] : memref<16x128xbf16, #tpu.memory_space<vmem>>, vector<16x128xbf16>
    tpu.vector_store %arg14[%c0_85, %c0_86], %168 {strides = array<i32>} : memref<16x128xbf16, #tpu.memory_space<vmem>>, vector<16x128xbf16>,
    %c0_87 = arith.constant 0 : index
    %c0_88 = arith.constant 0 : index
    %174 = vector.load %arg12[%c0_87, %c0_88] : memref<16x128xf32, #tpu.memory_space<vmem>>, vector<16x128xf32>
    tpu.vector_store %arg12[%c0_87, %c0_88], %167 {strides = array<i32>} : memref<16x128xf32, #tpu.memory_space<vmem>>, vector<16x128xf32>,
    %c0_89 = arith.constant 0 : index
    %c0_90 = arith.constant 0 : index
    %175 = vector.load %arg13[%c0_89, %c0_90] : memref<16x128xf32, #tpu.memory_space<vmem>>, vector<16x128xf32>
    tpu.vector_store %arg13[%c0_89, %c0_90], %165 {strides = array<i32>} : memref<16x128xf32, #tpu.memory_space<vmem>>, vector<16x128xf32>,
    %c4_i32 = arith.constant 4 : i32
    %c0_91 = arith.constant 0 : index
    %c0_92 = arith.constant 0 : index
    %176 = vector.load %arg13[%c0_91, %c0_92] : memref<16x128xf32, #tpu.memory_space<vmem>>, vector<16x128xf32>
    %177 = arith.index_cast %c4_i32 : i32 to index
    %c0_93 = arith.constant 0 : index
    %c0_94 = arith.constant 0 : index
    %178 = vector.load %arg11[%177, %c0_93, %c0_94] : memref<8x16x512xf32, #tpu.memory_space<vmem>>, vector<1x16x512xf32>
    %179 = vector.shape_cast %178 : vector<1x16x512xf32> to vector<16x512xf32>
    %c0_95 = arith.constant 0 : index
    %c0_96 = arith.constant 0 : index
    %180 = vector.load %arg14[%c0_95, %c0_96] : memref<16x128xbf16, #tpu.memory_space<vmem>>, vector<16x128xbf16>
    %c0_97 = arith.constant 0 : index
    %c0_98 = arith.constant 0 : index
    %181 = vector.load %arg4[%c0_97, %c0_98] : memref<128x512xbf16, #tpu.memory_space<vmem>>, vector<128x512xbf16>
    %cst_99 = arith.constant dense<0.000000e+00> : vector<16x512xf32>
    %182 = tpu.matmul %180, %181, %cst_99 {dimension_numbers = #tpu.dot_dimension_numbers<[1], [0], [0], [1], [0, 0, 1, 1], [], []>} : vector<16x128xbf16>, vector<128x512xbf16>, vector<16x512xf32> -> vector<16x512xf32>
    %183 = arith.addf %179, %182 : vector<16x512xf32>
    %184 = vector.extract_strided_slice %183 {offsets = [0, 0], sizes = [16, 128], strides = [1, 1]} : vector<16x512xf32> to vector<16x128xf32>
    %185 = arith.negf %184 : vector<16x128xf32>
    %186 = math.exp %185 : vector<16x128xf32>
    %cst_100 = arith.constant 1.000000e+00 : f32
    %187 = vector.broadcast %cst_100 : f32 to vector<16x128xf32>
    %188 = arith.addf %187, %186 : vector<16x128xf32>
    %189 = arith.divf %187, %188 : vector<16x128xf32>
    %190 = vector.extract_strided_slice %183 {offsets = [0, 128], sizes = [16, 128], strides = [1, 1]} : vector<16x512xf32> to vector<16x128xf32>
    %191 = arith.negf %190 : vector<16x128xf32>
    %192 = math.exp %191 : vector<16x128xf32>
    %cst_101 = arith.constant 1.000000e+00 : f32
    %193 = vector.broadcast %cst_101 : f32 to vector<16x128xf32>
    %194 = arith.addf %193, %192 : vector<16x128xf32>
    %195 = arith.divf %193, %194 : vector<16x128xf32>
    %196 = vector.extract_strided_slice %183 {offsets = [0, 256], sizes = [16, 128], strides = [1, 1]} : vector<16x512xf32> to vector<16x128xf32>
    %197 = math.tanh %196 : vector<16x128xf32>
    %198 = vector.extract_strided_slice %183 {offsets = [0, 384], sizes = [16, 128], strides = [1, 1]} : vector<16x512xf32> to vector<16x128xf32>
    %199 = arith.negf %198 : vector<16x128xf32>
    %200 = math.exp %199 : vector<16x128xf32>
    %cst_102 = arith.constant 1.000000e+00 : f32
    %201 = vector.broadcast %cst_102 : f32 to vector<16x128xf32>
    %202 = arith.addf %201, %200 : vector<16x128xf32>
    %203 = arith.divf %201, %202 : vector<16x128xf32>
    %204 = arith.mulf %195, %176 : vector<16x128xf32>
    %205 = arith.mulf %189, %197 : vector<16x128xf32>
    %206 = arith.addf %204, %205 : vector<16x128xf32>
    %207 = math.tanh %206 : vector<16x128xf32>
    %208 = arith.mulf %203, %207 : vector<16x128xf32>
    %209 = arith.truncf %208 : vector<16x128xf32> to vector<16x128xbf16>
    %210 = arith.index_cast %c4_i32 : i32 to index
    %c0_103 = arith.constant 0 : index
    %c0_104 = arith.constant 0 : index
    %211 = vector.load %arg8[%210, %c0_103, %c0_104] : memref<8x16x128xbf16, #tpu.memory_space<vmem>>, vector<1x16x128xbf16>
    %212 = vector.shape_cast %211 : vector<1x16x128xbf16> to vector<16x128xbf16>
    %213 = vector.shape_cast %209 : vector<16x128xbf16> to vector<1x16x128xbf16>
    tpu.vector_store %arg8[%210, %c0_103, %c0_104], %213 {strides = array<i32>} : memref<8x16x128xbf16, #tpu.memory_space<vmem>>, vector<1x16x128xbf16>,
    %c0_105 = arith.constant 0 : index
    %c0_106 = arith.constant 0 : index
    %214 = vector.load %arg14[%c0_105, %c0_106] : memref<16x128xbf16, #tpu.memory_space<vmem>>, vector<16x128xbf16>
    tpu.vector_store %arg14[%c0_105, %c0_106], %209 {strides = array<i32>} : memref<16x128xbf16, #tpu.memory_space<vmem>>, vector<16x128xbf16>,
    %c0_107 = arith.constant 0 : index
    %c0_108 = arith.constant 0 : index
    %215 = vector.load %arg12[%c0_107, %c0_108] : memref<16x128xf32, #tpu.memory_space<vmem>>, vector<16x128xf32>
    tpu.vector_store %arg12[%c0_107, %c0_108], %208 {strides = array<i32>} : memref<16x128xf32, #tpu.memory_space<vmem>>, vector<16x128xf32>,
    %c0_109 = arith.constant 0 : index
    %c0_110 = arith.constant 0 : index
    %216 = vector.load %arg13[%c0_109, %c0_110] : memref<16x128xf32, #tpu.memory_space<vmem>>, vector<16x128xf32>
    tpu.vector_store %arg13[%c0_109, %c0_110], %206 {strides = array<i32>} : memref<16x128xf32, #tpu.memory_space<vmem>>, vector<16x128xf32>,
    %c5_i32 = arith.constant 5 : i32
    %c0_111 = arith.constant 0 : index
    %c0_112 = arith.constant 0 : index
    %217 = vector.load %arg13[%c0_111, %c0_112] : memref<16x128xf32, #tpu.memory_space<vmem>>, vector<16x128xf32>
    %218 = arith.index_cast %c5_i32 : i32 to index
    %c0_113 = arith.constant 0 : index
    %c0_114 = arith.constant 0 : index
    %219 = vector.load %arg11[%218, %c0_113, %c0_114] : memref<8x16x512xf32, #tpu.memory_space<vmem>>, vector<1x16x512xf32>
    %220 = vector.shape_cast %219 : vector<1x16x512xf32> to vector<16x512xf32>
    %c0_115 = arith.constant 0 : index
    %c0_116 = arith.constant 0 : index
    %221 = vector.load %arg14[%c0_115, %c0_116] : memref<16x128xbf16, #tpu.memory_space<vmem>>, vector<16x128xbf16>
    %c0_117 = arith.constant 0 : index
    %c0_118 = arith.constant 0 : index
    %222 = vector.load %arg4[%c0_117, %c0_118] : memref<128x512xbf16, #tpu.memory_space<vmem>>, vector<128x512xbf16>
    %cst_119 = arith.constant dense<0.000000e+00> : vector<16x512xf32>
    %223 = tpu.matmul %221, %222, %cst_119 {dimension_numbers = #tpu.dot_dimension_numbers<[1], [0], [0], [1], [0, 0, 1, 1], [], []>} : vector<16x128xbf16>, vector<128x512xbf16>, vector<16x512xf32> -> vector<16x512xf32>
    %224 = arith.addf %220, %223 : vector<16x512xf32>
    %225 = vector.extract_strided_slice %224 {offsets = [0, 0], sizes = [16, 128], strides = [1, 1]} : vector<16x512xf32> to vector<16x128xf32>
    %226 = arith.negf %225 : vector<16x128xf32>
    %227 = math.exp %226 : vector<16x128xf32>
    %cst_120 = arith.constant 1.000000e+00 : f32
    %228 = vector.broadcast %cst_120 : f32 to vector<16x128xf32>
    %229 = arith.addf %228, %227 : vector<16x128xf32>
    %230 = arith.divf %228, %229 : vector<16x128xf32>
    %231 = vector.extract_strided_slice %224 {offsets = [0, 128], sizes = [16, 128], strides = [1, 1]} : vector<16x512xf32> to vector<16x128xf32>
    %232 = arith.negf %231 : vector<16x128xf32>
    %233 = math.exp %232 : vector<16x128xf32>
    %cst_121 = arith.constant 1.000000e+00 : f32
    %234 = vector.broadcast %cst_121 : f32 to vector<16x128xf32>
    %235 = arith.addf %234, %233 : vector<16x128xf32>
    %236 = arith.divf %234, %235 : vector<16x128xf32>
    %237 = vector.extract_strided_slice %224 {offsets = [0, 256], sizes = [16, 128], strides = [1, 1]} : vector<16x512xf32> to vector<16x128xf32>
    %238 = math.tanh %237 : vector<16x128xf32>
    %239 = vector.extract_strided_slice %224 {offsets = [0, 384], sizes = [16, 128], strides = [1, 1]} : vector<16x512xf32> to vector<16x128xf32>
    %240 = arith.negf %239 : vector<16x128xf32>
    %241 = math.exp %240 : vector<16x128xf32>
    %cst_122 = arith.constant 1.000000e+00 : f32
    %242 = vector.broadcast %cst_122 : f32 to vector<16x128xf32>
    %243 = arith.addf %242, %241 : vector<16x128xf32>
    %244 = arith.divf %242, %243 : vector<16x128xf32>
    %245 = arith.mulf %236, %217 : vector<16x128xf32>
    %246 = arith.mulf %230, %238 : vector<16x128xf32>
    %247 = arith.addf %245, %246 : vector<16x128xf32>
    %248 = math.tanh %247 : vector<16x128xf32>
    %249 = arith.mulf %244, %248 : vector<16x128xf32>
    %250 = arith.truncf %249 : vector<16x128xf32> to vector<16x128xbf16>
    %251 = arith.index_cast %c5_i32 : i32 to index
    %c0_123 = arith.constant 0 : index
    %c0_124 = arith.constant 0 : index
    %252 = vector.load %arg8[%251, %c0_123, %c0_124] : memref<8x16x128xbf16, #tpu.memory_space<vmem>>, vector<1x16x128xbf16>
    %253 = vector.shape_cast %252 : vector<1x16x128xbf16> to vector<16x128xbf16>
    %254 = vector.shape_cast %250 : vector<16x128xbf16> to vector<1x16x128xbf16>
    tpu.vector_store %arg8[%251, %c0_123, %c0_124], %254 {strides = array<i32>} : memref<8x16x128xbf16, #tpu.memory_space<vmem>>, vector<1x16x128xbf16>,
    %c0_125 = arith.constant 0 : index
    %c0_126 = arith.constant 0 : index
    %255 = vector.load %arg14[%c0_125, %c0_126] : memref<16x128xbf16, #tpu.memory_space<vmem>>, vector<16x128xbf16>
    tpu.vector_store %arg14[%c0_125, %c0_126], %250 {strides = array<i32>} : memref<16x128xbf16, #tpu.memory_space<vmem>>, vector<16x128xbf16>,
    %c0_127 = arith.constant 0 : index
    %c0_128 = arith.constant 0 : index
    %256 = vector.load %arg12[%c0_127, %c0_128] : memref<16x128xf32, #tpu.memory_space<vmem>>, vector<16x128xf32>
    tpu.vector_store %arg12[%c0_127, %c0_128], %249 {strides = array<i32>} : memref<16x128xf32, #tpu.memory_space<vmem>>, vector<16x128xf32>,
    %c0_129 = arith.constant 0 : index
    %c0_130 = arith.constant 0 : index
    %257 = vector.load %arg13[%c0_129, %c0_130] : memref<16x128xf32, #tpu.memory_space<vmem>>, vector<16x128xf32>
    tpu.vector_store %arg13[%c0_129, %c0_130], %247 {strides = array<i32>} : memref<16x128xf32, #tpu.memory_space<vmem>>, vector<16x128xf32>,
    %c6_i32 = arith.constant 6 : i32
    %c0_131 = arith.constant 0 : index
    %c0_132 = arith.constant 0 : index
    %258 = vector.load %arg13[%c0_131, %c0_132] : memref<16x128xf32, #tpu.memory_space<vmem>>, vector<16x128xf32>
    %259 = arith.index_cast %c6_i32 : i32 to index
    %c0_133 = arith.constant 0 : index
    %c0_134 = arith.constant 0 : index
    %260 = vector.load %arg11[%259, %c0_133, %c0_134] : memref<8x16x512xf32, #tpu.memory_space<vmem>>, vector<1x16x512xf32>
    %261 = vector.shape_cast %260 : vector<1x16x512xf32> to vector<16x512xf32>
    %c0_135 = arith.constant 0 : index
    %c0_136 = arith.constant 0 : index
    %262 = vector.load %arg14[%c0_135, %c0_136] : memref<16x128xbf16, #tpu.memory_space<vmem>>, vector<16x128xbf16>
    %c0_137 = arith.constant 0 : index
    %c0_138 = arith.constant 0 : index
    %263 = vector.load %arg4[%c0_137, %c0_138] : memref<128x512xbf16, #tpu.memory_space<vmem>>, vector<128x512xbf16>
    %cst_139 = arith.constant dense<0.000000e+00> : vector<16x512xf32>
    %264 = tpu.matmul %262, %263, %cst_139 {dimension_numbers = #tpu.dot_dimension_numbers<[1], [0], [0], [1], [0, 0, 1, 1], [], []>} : vector<16x128xbf16>, vector<128x512xbf16>, vector<16x512xf32> -> vector<16x512xf32>
    %265 = arith.addf %261, %264 : vector<16x512xf32>
    %266 = vector.extract_strided_slice %265 {offsets = [0, 0], sizes = [16, 128], strides = [1, 1]} : vector<16x512xf32> to vector<16x128xf32>
    %267 = arith.negf %266 : vector<16x128xf32>
    %268 = math.exp %267 : vector<16x128xf32>
    %cst_140 = arith.constant 1.000000e+00 : f32
    %269 = vector.broadcast %cst_140 : f32 to vector<16x128xf32>
    %270 = arith.addf %269, %268 : vector<16x128xf32>
    %271 = arith.divf %269, %270 : vector<16x128xf32>
    %272 = vector.extract_strided_slice %265 {offsets = [0, 128], sizes = [16, 128], strides = [1, 1]} : vector<16x512xf32> to vector<16x128xf32>
    %273 = arith.negf %272 : vector<16x128xf32>
    %274 = math.exp %273 : vector<16x128xf32>
    %cst_141 = arith.constant 1.000000e+00 : f32
    %275 = vector.broadcast %cst_141 : f32 to vector<16x128xf32>
    %276 = arith.addf %275, %274 : vector<16x128xf32>
    %277 = arith.divf %275, %276 : vector<16x128xf32>
    %278 = vector.extract_strided_slice %265 {offsets = [0, 256], sizes = [16, 128], strides = [1, 1]} : vector<16x512xf32> to vector<16x128xf32>
    %279 = math.tanh %278 : vector<16x128xf32>
    %280 = vector.extract_strided_slice %265 {offsets = [0, 384], sizes = [16, 128], strides = [1, 1]} : vector<16x512xf32> to vector<16x128xf32>
    %281 = arith.negf %280 : vector<16x128xf32>
    %282 = math.exp %281 : vector<16x128xf32>
    %cst_142 = arith.constant 1.000000e+00 : f32
    %283 = vector.broadcast %cst_142 : f32 to vector<16x128xf32>
    %284 = arith.addf %283, %282 : vector<16x128xf32>
    %285 = arith.divf %283, %284 : vector<16x128xf32>
    %286 = arith.mulf %277, %258 : vector<16x128xf32>
    %287 = arith.mulf %271, %279 : vector<16x128xf32>
    %288 = arith.addf %286, %287 : vector<16x128xf32>
    %289 = math.tanh %288 : vector<16x128xf32>
    %290 = arith.mulf %285, %289 : vector<16x128xf32>
    %291 = arith.truncf %290 : vector<16x128xf32> to vector<16x128xbf16>
    %292 = arith.index_cast %c6_i32 : i32 to index
    %c0_143 = arith.constant 0 : index
    %c0_144 = arith.constant 0 : index
    %293 = vector.load %arg8[%292, %c0_143, %c0_144] : memref<8x16x128xbf16, #tpu.memory_space<vmem>>, vector<1x16x128xbf16>
    %294 = vector.shape_cast %293 : vector<1x16x128xbf16> to vector<16x128xbf16>
    %295 = vector.shape_cast %291 : vector<16x128xbf16> to vector<1x16x128xbf16>
    tpu.vector_store %arg8[%292, %c0_143, %c0_144], %295 {strides = array<i32>} : memref<8x16x128xbf16, #tpu.memory_space<vmem>>, vector<1x16x128xbf16>,
    %c0_145 = arith.constant 0 : index
    %c0_146 = arith.constant 0 : index
    %296 = vector.load %arg14[%c0_145, %c0_146] : memref<16x128xbf16, #tpu.memory_space<vmem>>, vector<16x128xbf16>
    tpu.vector_store %arg14[%c0_145, %c0_146], %291 {strides = array<i32>} : memref<16x128xbf16, #tpu.memory_space<vmem>>, vector<16x128xbf16>,
    %c0_147 = arith.constant 0 : index
    %c0_148 = arith.constant 0 : index
    %297 = vector.load %arg12[%c0_147, %c0_148] : memref<16x128xf32, #tpu.memory_space<vmem>>, vector<16x128xf32>
    tpu.vector_store %arg12[%c0_147, %c0_148], %290 {strides = array<i32>} : memref<16x128xf32, #tpu.memory_space<vmem>>, vector<16x128xf32>,
    %c0_149 = arith.constant 0 : index
    %c0_150 = arith.constant 0 : index
    %298 = vector.load %arg13[%c0_149, %c0_150] : memref<16x128xf32, #tpu.memory_space<vmem>>, vector<16x128xf32>
    tpu.vector_store %arg13[%c0_149, %c0_150], %288 {strides = array<i32>} : memref<16x128xf32, #tpu.memory_space<vmem>>, vector<16x128xf32>,
    %c7_i32 = arith.constant 7 : i32
    %c0_151 = arith.constant 0 : index
    %c0_152 = arith.constant 0 : index
    %299 = vector.load %arg13[%c0_151, %c0_152] : memref<16x128xf32, #tpu.memory_space<vmem>>, vector<16x128xf32>
    %300 = arith.index_cast %c7_i32 : i32 to index
    %c0_153 = arith.constant 0 : index
    %c0_154 = arith.constant 0 : index
    %301 = vector.load %arg11[%300, %c0_153, %c0_154] : memref<8x16x512xf32, #tpu.memory_space<vmem>>, vector<1x16x512xf32>
    %302 = vector.shape_cast %301 : vector<1x16x512xf32> to vector<16x512xf32>
    %c0_155 = arith.constant 0 : index
    %c0_156 = arith.constant 0 : index
    %303 = vector.load %arg14[%c0_155, %c0_156] : memref<16x128xbf16, #tpu.memory_space<vmem>>, vector<16x128xbf16>
    %c0_157 = arith.constant 0 : index
    %c0_158 = arith.constant 0 : index
    %304 = vector.load %arg4[%c0_157, %c0_158] : memref<128x512xbf16, #tpu.memory_space<vmem>>, vector<128x512xbf16>
    %cst_159 = arith.constant dense<0.000000e+00> : vector<16x512xf32>
    %305 = tpu.matmul %303, %304, %cst_159 {dimension_numbers = #tpu.dot_dimension_numbers<[1], [0], [0], [1], [0, 0, 1, 1], [], []>} : vector<16x128xbf16>, vector<128x512xbf16>, vector<16x512xf32> -> vector<16x512xf32>
    %306 = arith.addf %302, %305 : vector<16x512xf32>
    %307 = vector.extract_strided_slice %306 {offsets = [0, 0], sizes = [16, 128], strides = [1, 1]} : vector<16x512xf32> to vector<16x128xf32>
    %308 = arith.negf %307 : vector<16x128xf32>
    %309 = math.exp %308 : vector<16x128xf32>
    %cst_160 = arith.constant 1.000000e+00 : f32
    %310 = vector.broadcast %cst_160 : f32 to vector<16x128xf32>
    %311 = arith.addf %310, %309 : vector<16x128xf32>
    %312 = arith.divf %310, %311 : vector<16x128xf32>
    %313 = vector.extract_strided_slice %306 {offsets = [0, 128], sizes = [16, 128], strides = [1, 1]} : vector<16x512xf32> to vector<16x128xf32>
    %314 = arith.negf %313 : vector<16x128xf32>
    %315 = math.exp %314 : vector<16x128xf32>
    %cst_161 = arith.constant 1.000000e+00 : f32
    %316 = vector.broadcast %cst_161 : f32 to vector<16x128xf32>
    %317 = arith.addf %316, %315 : vector<16x128xf32>
    %318 = arith.divf %316, %317 : vector<16x128xf32>
    %319 = vector.extract_strided_slice %306 {offsets = [0, 256], sizes = [16, 128], strides = [1, 1]} : vector<16x512xf32> to vector<16x128xf32>
    %320 = math.tanh %319 : vector<16x128xf32>
    %321 = vector.extract_strided_slice %306 {offsets = [0, 384], sizes = [16, 128], strides = [1, 1]} : vector<16x512xf32> to vector<16x128xf32>
    %322 = arith.negf %321 : vector<16x128xf32>
    %323 = math.exp %322 : vector<16x128xf32>
    %cst_162 = arith.constant 1.000000e+00 : f32
    %324 = vector.broadcast %cst_162 : f32 to vector<16x128xf32>
    %325 = arith.addf %324, %323 : vector<16x128xf32>
    %326 = arith.divf %324, %325 : vector<16x128xf32>
    %327 = arith.mulf %318, %299 : vector<16x128xf32>
    %328 = arith.mulf %312, %320 : vector<16x128xf32>
    %329 = arith.addf %327, %328 : vector<16x128xf32>
    %330 = math.tanh %329 : vector<16x128xf32>
    %331 = arith.mulf %326, %330 : vector<16x128xf32>
    %332 = arith.truncf %331 : vector<16x128xf32> to vector<16x128xbf16>
    %333 = arith.index_cast %c7_i32 : i32 to index
    %c0_163 = arith.constant 0 : index
    %c0_164 = arith.constant 0 : index
    %334 = vector.load %arg8[%333, %c0_163, %c0_164] : memref<8x16x128xbf16, #tpu.memory_space<vmem>>, vector<1x16x128xbf16>
    %335 = vector.shape_cast %334 : vector<1x16x128xbf16> to vector<16x128xbf16>
    %336 = vector.shape_cast %332 : vector<16x128xbf16> to vector<1x16x128xbf16>
    tpu.vector_store %arg8[%333, %c0_163, %c0_164], %336 {strides = array<i32>} : memref<8x16x128xbf16, #tpu.memory_space<vmem>>, vector<1x16x128xbf16>,
    %c0_165 = arith.constant 0 : index
    %c0_166 = arith.constant 0 : index
    %337 = vector.load %arg14[%c0_165, %c0_166] : memref<16x128xbf16, #tpu.memory_space<vmem>>, vector<16x128xbf16>
    tpu.vector_store %arg14[%c0_165, %c0_166], %332 {strides = array<i32>} : memref<16x128xbf16, #tpu.memory_space<vmem>>, vector<16x128xbf16>,
    %c0_167 = arith.constant 0 : index
    %c0_168 = arith.constant 0 : index
    %338 = vector.load %arg12[%c0_167, %c0_168] : memref<16x128xf32, #tpu.memory_space<vmem>>, vector<16x128xf32>
    tpu.vector_store %arg12[%c0_167, %c0_168], %331 {strides = array<i32>} : memref<16x128xf32, #tpu.memory_space<vmem>>, vector<16x128xf32>,
    %c0_169 = arith.constant 0 : index
    %c0_170 = arith.constant 0 : index
    %339 = vector.load %arg13[%c0_169, %c0_170] : memref<16x128xf32, #tpu.memory_space<vmem>>, vector<16x128xf32>
    tpu.vector_store %arg13[%c0_169, %c0_170], %329 {strides = array<i32>} : memref<16x128xf32, #tpu.memory_space<vmem>>, vector<16x128xf32>,
    %c8_i32 = arith.constant 8 : i32
    %c0_171 = arith.constant 0 : index
    %c0_172 = arith.constant 0 : index
    %340 = vector.load %arg12[%c0_171, %c0_172] : memref<16x128xf32, #tpu.memory_space<vmem>>, vector<16x128xf32>
    %c0_173 = arith.constant 0 : index
    %c0_174 = arith.constant 0 : index
    %341 = vector.load %arg9[%c0_173, %c0_174] : memref<16x128xf32, #tpu.memory_space<vmem>>, vector<16x128xf32>
    tpu.vector_store %arg9[%c0_173, %c0_174], %340 {strides = array<i32>} : memref<16x128xf32, #tpu.memory_space<vmem>>, vector<16x128xf32>,
    %c0_175 = arith.constant 0 : index
    %c0_176 = arith.constant 0 : index
    %342 = vector.load %arg13[%c0_175, %c0_176] : memref<16x128xf32, #tpu.memory_space<vmem>>, vector<16x128xf32>
    %c0_177 = arith.constant 0 : index
    %c0_178 = arith.constant 0 : index
    %343 = vector.load %arg10[%c0_177, %c0_178] : memref<16x128xf32, #tpu.memory_space<vmem>>, vector<16x128xf32>
    tpu.vector_store %arg10[%c0_177, %c0_178], %342 {strides = array<i32>} : memref<16x128xf32, #tpu.memory_space<vmem>>, vector<16x128xf32>,
    return
  }
  func.func @transform_0(%arg0: i32, %arg1: i32) -> (i32, i32, i32) {
    %c0_i32 = arith.constant 0 : i32
    %c0_i32_0 = arith.constant 0 : i32
    return %arg1, %arg0, %c0_i32 : i32, i32, i32
  }
  func.func @transform_1(%arg0: i32, %arg1: i32) -> (i32, i32) {
    %c0_i32 = arith.constant 0 : i32
    %c0_i32_0 = arith.constant 0 : i32
    %c0_i32_1 = arith.constant 0 : i32
    return %c0_i32, %c0_i32_0 : i32, i32
  }
  func.func @transform_2(%arg0: i32, %arg1: i32) -> (i32, i32) {
    %c0_i32 = arith.constant 0 : i32
    %c0_i32_0 = arith.constant 0 : i32
    %c0_i32_1 = arith.constant 0 : i32
    return %c0_i32, %c0_i32_0 : i32, i32
  }
  func.func @transform_3(%arg0: i32, %arg1: i32) -> (i32, i32) {
    %c0_i32 = arith.constant 0 : i32
    %c0_i32_0 = arith.constant 0 : i32
    %c0_i32_1 = arith.constant 0 : i32
    return %c0_i32, %c0_i32_0 : i32, i32
  }
  func.func @transform_4(%arg0: i32, %arg1: i32) -> (i32, i32) {
    %c0_i32 = arith.constant 0 : i32
    %c0_i32_0 = arith.constant 0 : i32
    return %arg0, %c0_i32 : i32, i32
  }
  func.func @transform_5(%arg0: i32, %arg1: i32) -> (i32, i32) {
    %c0_i32 = arith.constant 0 : i32
    %c0_i32_0 = arith.constant 0 : i32
    return %arg0, %c0_i32 : i32, i32
  }
  func.func @transform_6(%arg0: i32, %arg1: i32) -> (i32, i32, i32) {
    %c0_i32 = arith.constant 0 : i32
    %c0_i32_0 = arith.constant 0 : i32
    return %arg1, %arg0, %c0_i32 : i32, i32, i32
  }
  func.func @transform_7(%arg0: i32, %arg1: i32) -> (i32, i32) {
    %c0_i32 = arith.constant 0 : i32
    %c0_i32_0 = arith.constant 0 : i32
    return %arg0, %c0_i32 : i32, i32
  }
  func.func @transform_8(%arg0: i32, %arg1: i32) -> (i32, i32) {
    %c0_i32 = arith.constant 0 : i32
    %c0_i32_0 = arith.constant 0 : i32
    return %arg0, %c0_i32 : i32, i32
  }
}

module attributes {stable_mosaic.version = 11 : i64} {
  func.func @fc_kernel(%arg0: i32, %arg1: i32, %arg2: memref<128x128xbf16, #tpu.memory_space<vmem>>, %arg3: memref<128x128xbf16, #tpu.memory_space<vmem>>, %arg4: memref<1x128xf32, #tpu.memory_space<vmem>>, %arg5: memref<128x128xf32, #tpu.memory_space<vmem>>) attributes {dimension_semantics = [#tpu.dimension_semantics<parallel>, #tpu.dimension_semantics<parallel>], iteration_bounds = array<i64: 1, 1>, scalar_prefetch = 0 : i64, scratch_operands = 0 : i64, tpu.core_type = #tpu.core_type<tc>, window_params = [{transform_indices = @transform_0, window_bounds = array<i64: 128, 128>}, {transform_indices = @transform_1, window_bounds = array<i64: 128, 128>}, {transform_indices = @transform_2, window_bounds = array<i64: 1, 128>}, {transform_indices = @transform_3, window_bounds = array<i64: 128, 128>}]} {
    %c0 = arith.constant 0 : index
    %c0_0 = arith.constant 0 : index
    %0 = vector.load %arg2[%c0, %c0_0] : memref<128x128xbf16, #tpu.memory_space<vmem>>, vector<128x128xbf16>
    %c0_1 = arith.constant 0 : index
    %c0_2 = arith.constant 0 : index
    %1 = vector.load %arg3[%c0_1, %c0_2] : memref<128x128xbf16, #tpu.memory_space<vmem>>, vector<128x128xbf16>
    %cst = arith.constant dense<0.000000e+00> : vector<128x128xf32>
    %2 = tpu.matmul %0, %1, %cst {dimension_numbers = #tpu.dot_dimension_numbers<[1], [0], [0], [1], [0, 0, 1, 1], [], []>} : vector<128x128xbf16>, vector<128x128xbf16>, vector<128x128xf32> -> vector<128x128xf32>
    %c0_3 = arith.constant 0 : index
    %c0_4 = arith.constant 0 : index
    %3 = vector.load %arg4[%c0_3, %c0_4] : memref<1x128xf32, #tpu.memory_space<vmem>>, vector<1x128xf32>
    %4 = vector.broadcast %3 : vector<1x128xf32> to vector<128x128xf32>
    %5 = arith.addf %2, %4 : vector<128x128xf32>
    %c0_5 = arith.constant 0 : index
    %c0_6 = arith.constant 0 : index
    %6 = vector.load %arg5[%c0_5, %c0_6] : memref<128x128xf32, #tpu.memory_space<vmem>>, vector<128x128xf32>
    tpu.vector_store %arg5[%c0_5, %c0_6], %5 {strides = array<i32>} : memref<128x128xf32, #tpu.memory_space<vmem>>, vector<128x128xf32>,
    return
  }
  func.func @transform_0(%arg0: i32, %arg1: i32) -> (i32, i32) {
    %c0_i32 = arith.constant 0 : i32
    %c0_i32_0 = arith.constant 0 : i32
    return %arg0, %c0_i32 : i32, i32
  }
  func.func @transform_1(%arg0: i32, %arg1: i32) -> (i32, i32) {
    %c0_i32 = arith.constant 0 : i32
    %c0_i32_0 = arith.constant 0 : i32
    return %c0_i32, %arg1 : i32, i32
  }
  func.func @transform_2(%arg0: i32, %arg1: i32) -> (i32, i32) {
    %c0_i32 = arith.constant 0 : i32
    %c0_i32_0 = arith.constant 0 : i32
    return %c0_i32, %arg1 : i32, i32
  }
  func.func @transform_3(%arg0: i32, %arg1: i32) -> (i32, i32) {
    %c0_i32 = arith.constant 0 : i32
    return %arg0, %arg1 : i32, i32
  }
}

</mosaic_0001>

<bundles_post_ra>
// kernel: language_model_forward.5
= control target key start
LH: loop header
LB: loop body
LE: loop exit
PB: predicated region body
PF: predicated region fallthrough
CT: control target
= control target key end

     0   :  { %s483_s1 = inlined_call_operand.vmem [shape: bf16[128,128], index: 1, kind: input, shape index: {}]   ;;  %s484_s0 = inlined_call_operand.vmem [shape: bf16[128,128], index: 0, kind: input, shape index: {}]   ;;  %s485_s2 = inlined_call_operand.vmem [shape: f32[1,128], index: 2, kind: input, shape index: {}]   ;;  %s486_s3 = inlined_call_operand.vmem [shape: f32[128,128], index: 3, kind: output, shape index: {}]  }
   0x1   :  { %v348_v0 = vld [vmem:[%s483_s1 + $0x38] sm:$0xff]   ;;  %v349_v1 = vld [vmem:[%s483_s1 + $0x30] sm:$0xff]   ;;  %v350_v2 = vld [vmem:[%s483_s1 + $0x28] sm:$0xff]  }
   0x2   :  { %300 = vmatprep.subr.bf16.mxu0 %v348_v0  ;;  %332 = vmatprep.subr.bf16.mxu1 %v348_v0  ;;  %v351_v3 = vld [vmem:[%s483_s1 + $0x20] sm:$0xff]   ;;  %v352_v6 = vld [vmem:[%s483_s1 + $0x18] sm:$0xff]   ;;  %v353_v7 = vld [vmem:[%s483_s1 + $0x10] sm:$0xff]  }
   0x3   :  { %301 = vmatpush3.bf16.msra.mxu0 %v348_v0  ;;  %340 = vmatpush3.bf16.msra.mxu1 %v348_v0  ;;  %v356_v4 = vld [vmem:[%s484_s0] sm:$0xff]   ;;  %v354_v8 = vld [vmem:[%s483_s1 + $0x8] sm:$0xff]   ;;  %v360_v12 = vld [vmem:[%s484_s0 + $0x10] sm:$0xff]  }
   0x4   :  { %302 = vmatprep.subr.bf16.mxu0 %v349_v1  ;;  %333 = vmatprep.subr.bf16.mxu1 %v349_v1  ;;  %v357_v5 = vld [vmem:[%s484_s0 + $0x20] sm:$0xff]   ;;  %v358_v10 = vld [vmem:[%s484_s0 + $0x8] sm:$0xff]   ;;  %v361_v13 = vld [vmem:[%s484_s0 + $0x30] sm:$0xff]  }
   0x5   :  { %316 = vmatprep.mubr.bf16.mxu0 %v356_v4  ;;  %324 = vmatprep.mubr.bf16.mxu1 %v357_v5  ;;  %v355_v9 = vld [vmem:[%s483_s1] sm:$0xff]   ;;  %v359_v11 = vld [vmem:[%s484_s0 + $0x28] sm:$0xff]   ;;  %v362_v14 = vld [vmem:[%s484_s0 + $0x18] sm:$0xff]  }
   0x6   :  { %v363_v15 = vld [vmem:[%s484_s0 + $0x38] sm:$0xff]   ;;  %v267_v16 = vld [vmem:[%s485_s2] ss:$0 sm:$0xff] }
   0x7   :  { %303 = vmatpush3.bf16.msra.mxu0 %v349_v1  ;;  %341 = vmatpush3.bf16.msra.mxu1 %v349_v1 }
   0x8   :  { %304 = vmatprep.subr.bf16.mxu0 %v350_v2  ;;  %334 = vmatprep.subr.bf16.mxu1 %v350_v2 }
   0xb   :  { %305 = vmatpush3.bf16.msra.mxu0 %v350_v2  ;;  %342 = vmatpush3.bf16.msra.mxu1 %v350_v2 }
   0xc   :  { %306 = vmatprep.subr.bf16.mxu0 %v351_v3  ;;  %335 = vmatprep.subr.bf16.mxu1 %v351_v3 }
   0xf   :  { %307 = vmatpush3.bf16.msra.mxu0 %v351_v3  ;;  %343 = vmatpush3.bf16.msra.mxu1 %v351_v3 }
  0x10   :  { %308 = vmatprep.subr.bf16.mxu0 %v352_v6  ;;  %336 = vmatprep.subr.bf16.mxu1 %v352_v6 }
  0x13   :  { %309 = vmatpush3.bf16.msra.mxu0 %v352_v6  ;;  %344 = vmatpush3.bf16.msra.mxu1 %v352_v6 }
  0x14   :  { %310 = vmatprep.subr.bf16.mxu0 %v353_v7  ;;  %337 = vmatprep.subr.bf16.mxu1 %v353_v7 }
  0x17   :  { %311 = vmatpush3.bf16.msra.mxu0 %v353_v7  ;;  %345 = vmatpush3.bf16.msra.mxu1 %v353_v7 }
  0x18   :  { %312 = vmatprep.subr.bf16.mxu0 %v354_v8  ;;  %338 = vmatprep.subr.bf16.mxu1 %v354_v8 }
  0x1b   :  { %313 = vmatpush3.bf16.msra.mxu0 %v354_v8  ;;  %346 = vmatpush3.bf16.msra.mxu1 %v354_v8 }
  0x1c   :  { %314 = vmatprep.subr.bf16.mxu0 %v355_v9  ;;  %339 = vmatprep.subr.bf16.mxu1 %v355_v9 }
  0x1f   :  { %315 = vmatpush3.bf16.msra.mxu0 %v355_v9  ;;  %347 = vmatpush3.bf16.msra.mxu1 %v355_v9 }
  0x22   :  { %317 = vmatmul.mubr.bf16.vlgmr.msra.gmra.mxu0 %v358_v10  ;;  %325 = vmatmul.mubr.bf16.vlgmr.msra.gmra.mxu1 %v359_v11 }
  0x23   :  { %320 = vmatprep.mubr.bf16.mxu0 %v360_v12  ;;  %328 = vmatprep.mubr.bf16.mxu1 %v361_v13 }
  0x2a   :  { %321 = vmatmul.mubr.bf16.gmra.mxu0 %v362_v14  ;;  %329 = vmatmul.mubr.bf16.gmra.mxu1 %v363_v15 }
  0xe2   :  { %v318_v17 = vpop.f32.mrf.mxu0  ;;  %v326_v18 = vpop.f32.mrf.mxu1 }
  0xe3   :  { %v193_v19 = vadd.f32 %v318_v17, %v267_v16  ;;  %v225_v20 = vadd.f32 %v326_v18, %v267_v16 }
  0xe4   :  { %v184_v21 = vpop.f32.mrf.mxu0  ;;  %v216_v22 = vpop.f32.mrf.mxu1 }
  0xe5   :  { %249 = vst [vmem:[%s486_s3 + $0x10] sm:$0xff] %v193_v19  ;;  %257 = vst [vmem:[%s486_s3 + $0x50] sm:$0xff] %v225_v20  ;;  %v185_v23 = vadd.f32 %v267_v16, %v184_v21  ;;  %v217_v24 = vadd.f32 %v267_v16, %v216_v22 }
  0xe6   :  { %v319_v25 = vpop.f32.mrf.mxu0  ;;  %v327_v26 = vpop.f32.mrf.mxu1 }
  0xe7   :  { %247 = vst [vmem:[%s486_s3] sm:$0xff] %v185_v23  ;;  %255 = vst [vmem:[%s486_s3 + $0x40] sm:$0xff] %v217_v24  ;;  %v196_v27 = vadd.f32 %v319_v25, %v267_v16  ;;  %v228_v28 = vadd.f32 %v327_v26, %v267_v16 }
  0xe8   :  { %v187_v29 = vpop.f32.mrf.mxu0  ;;  %v219_v30 = vpop.f32.mrf.mxu1 }
  0xe9   :  { %250 = vst [vmem:[%s486_s3 + $0x18] sm:$0xff] %v196_v27  ;;  %258 = vst [vmem:[%s486_s3 + $0x58] sm:$0xff] %v228_v28  ;;  %v188_v31 = vadd.f32 %v267_v16, %v187_v29  ;;  %v220_v32 = vadd.f32 %v267_v16, %v219_v30 }
  0xea   :  { %v322_v33 = vpop.f32.mrf.mxu0  ;;  %v330_v34 = vpop.f32.mrf.mxu1 }
  0xeb   :  { %248 = vst [vmem:[%s486_s3 + $0x8] sm:$0xff] %v188_v31  ;;  %256 = vst [vmem:[%s486_s3 + $0x48] sm:$0xff] %v220_v32  ;;  %v209_v35 = vadd.f32 %v322_v33, %v267_v16  ;;  %v241_v36 = vadd.f32 %v330_v34, %v267_v16 }
  0xec   :  { %v200_v37 = vpop.f32.mrf.mxu0  ;;  %v232_v38 = vpop.f32.mrf.mxu1 }
  0xed   :  { %253 = vst [vmem:[%s486_s3 + $0x30] sm:$0xff] %v209_v35  ;;  %261 = vst [vmem:[%s486_s3 + $0x70] sm:$0xff] %v241_v36  ;;  %v201_v39 = vadd.f32 %v267_v16, %v200_v37  ;;  %v233_v40 = vadd.f32 %v267_v16, %v232_v38 }
  0xee   :  { %v323_v41 = vpop.f32.mrf.mxu0  ;;  %v331_v42 = vpop.f32.mrf.mxu1 }
  0xef   :  { %251 = vst [vmem:[%s486_s3 + $0x20] sm:$0xff] %v201_v39  ;;  %259 = vst [vmem:[%s486_s3 + $0x60] sm:$0xff] %v233_v40  ;;  %v212_v43 = vadd.f32 %v323_v41, %v267_v16  ;;  %v244_v44 = vadd.f32 %v331_v42, %v267_v16 }
  0xf0   :  { %v203_v45 = vpop.f32.mrf.mxu0  ;;  %v235_v46 = vpop.f32.mrf.mxu1 }
  0xf1   :  { %254 = vst [vmem:[%s486_s3 + $0x38] sm:$0xff] %v212_v43  ;;  %262 = vst [vmem:[%s486_s3 + $0x78] sm:$0xff] %v244_v44  ;;  %v204_v47 = vadd.f32 %v267_v16, %v203_v45  ;;  %v236_v48 = vadd.f32 %v267_v16, %v235_v46 }
  0xf3   :  { %252 = vst [vmem:[%s486_s3 + $0x28] sm:$0xff] %v204_v47  ;;  %260 = vst [vmem:[%s486_s3 + $0x68] sm:$0xff] %v236_v48 }

// kernel: language_model_forward.4
= control target key start
LH: loop header
LB: loop body
LE: loop exit
PB: predicated region body
PF: predicated region fallthrough
CT: control target
= control target key end

     0   :  { %v5782_v1 = vmov 0   ;;  %s5773_s1 = inlined_call_operand.vmem [shape: bf16[128,512], index: 1, kind: input, shape index: {}]   ;;  %s5774_s0 = inlined_call_operand.vmem [shape: bf16[8,16,128], index: 0, kind: input, shape index: {}]   ;;  %s5775_s2 = inlined_call_operand.vmem [shape: bf16[128,512], index: 2, kind: input, shape index: {}]   ;;  %s5776_s4 = inlined_call_operand.vmem [shape: f32[16,128], index: 4, kind: input, shape index: {}]   ;;  %s5777_s3 = inlined_call_operand.vmem [shape: f32[1,512], index: 3, kind: input, shape index: {}]   ;;  %s5778_s5 = inlined_call_operand.vmem [shape: f32[16,128], index: 5, kind: input, shape index: {}]   ;;  %s5779_s6 = inlined_call_operand.vmem [shape: bf16[8,16,128], index: 6, kind: output, shape index: {0}]   ;;  %s5780_s8 = inlined_call_operand.vmem [shape: f32[16,128], index: 8, kind: output, shape index: {2}]   ;;  %s5781_s7 = inlined_call_operand.vmem [shape: f32[16,128], index: 7, kind: output, shape index: {1}]  }
   0x1   :  { %v4092_v0 = vld [vmem:[%s5773_s1 + $0xe4] ss:$16 sps:$4 sm:$0xff]   ;;  %361 = vmatprep.mubr.bf16.mxu0 %v5782_v1  ;;  %474 = vmatprep.mubr.bf16.mxu1 %v5782_v1  ;;  %v4094_v2 = vld [vmem:[%s5773_s1 + $0xec] ss:$16 sps:$4 sm:$0xff]   ;;  %v4096_v3 = vld [vmem:[%s5773_s1 + $0xe0] ss:$16 sps:$4 sm:$0xff]  }
   0x2   :  { %329 = vmatprep.subr.bf16.mxu0 %v4092_v0  ;;  %v4097_v4 = vld [vmem:[%s5773_s1 + $0xe8] ss:$16 sps:$4 sm:$0xff]   ;;  %442 = vmatprep.subr.bf16.mxu1 %v4094_v2  ;;  %v4098_v5 = vld [vmem:[%s5773_s1 + $0xc4] ss:$16 sps:$4 sm:$0xff]   ;;  %v4100_v6 = vld [vmem:[%s5773_s1 + $0xcc] ss:$16 sps:$4 sm:$0xff]  }
   0x3   :  { %330 = vmatpush1.bf16.msra.mxu0 %v4096_v3  ;;  %443 = vmatpush1.bf16.msra.mxu1 %v4097_v4  ;;  %v4102_v7 = vld [vmem:[%s5773_s1 + $0xc0] ss:$16 sps:$4 sm:$0xff]   ;;  %v4103_v8 = vld [vmem:[%s5773_s1 + $0xc8] ss:$16 sps:$4 sm:$0xff]   ;;  %v4104_v9 = vld [vmem:[%s5773_s1 + $0xa4] ss:$16 sps:$4 sm:$0xff]  }
   0x4   :  { %331 = vmatprep.subr.bf16.mxu0 %v4098_v5  ;;  %444 = vmatprep.subr.bf16.mxu1 %v4100_v6  ;;  %v4106_v10 = vld [vmem:[%s5773_s1 + $0xac] ss:$16 sps:$4 sm:$0xff]   ;;  %v4108_v11 = vld [vmem:[%s5773_s1 + $0xa0] ss:$16 sps:$4 sm:$0xff]   ;;  %v4109_v12 = vld [vmem:[%s5773_s1 + $0xa8] ss:$16 sps:$4 sm:$0xff]  }
   0x5   :  { %v4110_v13 = vld [vmem:[%s5773_s1 + $0x84] ss:$16 sps:$4 sm:$0xff]   ;;  %v4112_v14 = vld [vmem:[%s5773_s1 + $0x8c] ss:$16 sps:$4 sm:$0xff]   ;;  %v4114_v15 = vld [vmem:[%s5773_s1 + $0x80] ss:$16 sps:$4 sm:$0xff]  }
   0x6   :  { %v4115_v16 = vld [vmem:[%s5773_s1 + $0x88] ss:$16 sps:$4 sm:$0xff]   ;;  %v4116_v17 = vld [vmem:[%s5773_s1 + $0x64] ss:$16 sps:$4 sm:$0xff]   ;;  %v4118_v18 = vld [vmem:[%s5773_s1 + $0x6c] ss:$16 sps:$4 sm:$0xff]  }
   0x7   :  { %332 = vmatpush1.bf16.msra.mxu0 %v4102_v7  ;;  %445 = vmatpush1.bf16.msra.mxu1 %v4103_v8  ;;  %v4120_v19 = vld [vmem:[%s5773_s1 + $0x60] ss:$16 sps:$4 sm:$0xff]   ;;  %v4121_v20 = vld [vmem:[%s5773_s1 + $0x68] ss:$16 sps:$4 sm:$0xff]   ;;  %v4122_v21 = vld [vmem:[%s5773_s1 + $0x44] ss:$16 sps:$4 sm:$0xff]  }
   0x8   :  { %333 = vmatprep.subr.bf16.mxu0 %v4104_v9  ;;  %446 = vmatprep.subr.bf16.mxu1 %v4106_v10  ;;  %v4124_v22 = vld [vmem:[%s5773_s1 + $0x4c] ss:$16 sps:$4 sm:$0xff]   ;;  %v4126_v23 = vld [vmem:[%s5773_s1 + $0x40] ss:$16 sps:$4 sm:$0xff]   ;;  %v4127_v24 = vld [vmem:[%s5773_s1 + $0x48] ss:$16 sps:$4 sm:$0xff]  }
   0x9   :  { %v4128_v25 = vld [vmem:[%s5773_s1 + $0x24] ss:$16 sps:$4 sm:$0xff]   ;;  %v4130_v26 = vld [vmem:[%s5773_s1 + $0x2c] ss:$16 sps:$4 sm:$0xff]   ;;  %v4132_v27 = vld [vmem:[%s5773_s1 + $0x20] ss:$16 sps:$4 sm:$0xff]  }
   0xa   :  { %v4133_v28 = vld [vmem:[%s5773_s1 + $0x28] ss:$16 sps:$4 sm:$0xff]   ;;  %v4134_v29 = vld [vmem:[%s5773_s1 + $0x4] ss:$16 sps:$4 sm:$0xff]   ;;  %v4136_v30 = vld [vmem:[%s5773_s1 + $0xc] ss:$16 sps:$4 sm:$0xff]  }
   0xb   :  { %334 = vmatpush1.bf16.msra.mxu0 %v4108_v11  ;;  %447 = vmatpush1.bf16.msra.mxu1 %v4109_v12  ;;  %v4138_v31 = vld [vmem:[%s5773_s1] ss:$16 sps:$4 sm:$0xff]   ;;  %v4139_v32 = vld [vmem:[%s5773_s1 + $0x8] ss:$16 sps:$4 sm:$0xff]   ;;  %v4703_v33 = vld [vmem:[%s5775_s2 + $0xe4] ss:$16 sps:$4 sm:$0xff]  }
   0xc   :  { %335 = vmatprep.subr.bf16.mxu0 %v4110_v13  ;;  %448 = vmatprep.subr.bf16.mxu1 %v4112_v14  ;;  %v4708_v34 = vld [vmem:[%s5775_s2 + $0xec] ss:$16 sps:$4 sm:$0xff]   ;;  %v4140_v35 = vld [vmem:[%s5774_s0] sm:$0xff]   ;;  %v4728_v38 = vld [vmem:[%s5775_s2 + $0xe8] ss:$16 sps:$4 sm:$0xff]   ;;  %v101_v14 = vlaneseq }
   0xd   :  { %v4716_v36 = vld [vmem:[%s5775_s2 + $0xe0] ss:$16 sps:$4 sm:$0xff]   ;;  %v4722_v37 = vld [vmem:[%s5775_s2 + $0xc4] ss:$16 sps:$4 sm:$0xff]   ;;  %v4733_v39 = vld [vmem:[%s5775_s2 + $0xcc] ss:$16 sps:$4 sm:$0xff]  }
   0xe   :  { %v4740_v40 = vld [vmem:[%s5775_s2 + $0xc0] ss:$16 sps:$4 sm:$0xff]   ;;  %v4747_v41 = vld [vmem:[%s5775_s2 + $0xa4] ss:$16 sps:$4 sm:$0xff]   ;;  %v4753_v42 = vld [vmem:[%s5775_s2 + $0xc8] ss:$16 sps:$4 sm:$0xff]  }
   0xf   :  { %336 = vmatpush1.bf16.msra.mxu0 %v4114_v15  ;;  %449 = vmatpush1.bf16.msra.mxu1 %v4115_v16  ;;  %v4144_v43 = vld [vmem:[%s5774_s0 + $0x8] sm:$0xff]   ;;  %v4763_v44 = vld [vmem:[%s5775_s2 + $0xa0] ss:$16 sps:$4 sm:$0xff]   ;;  %v4774_v46 = vld [vmem:[%s5775_s2 + $0x84] ss:$16 sps:$4 sm:$0xff]   ;;  %v102_v15 = vshrl.u32 %v101_v14, 7 }
  0x10   :  { %337 = vmatprep.subr.bf16.mxu0 %v4116_v17  ;;  %450 = vmatprep.subr.bf16.mxu1 %v4118_v18  ;;  %v4769_v45 = vld [vmem:[%s5775_s2 + $0xac] ss:$16 sps:$4 sm:$0xff]   ;;  %v4780_v47 = vld [vmem:[%s5775_s2 + $0xa8] ss:$16 sps:$4 sm:$0xff]   ;;  %v4793_v49 = vld [vmem:[%s5775_s2 + $0x80] ss:$16 sps:$4 sm:$0xff]  }
  0x11   :  { %v4785_v48 = vld [vmem:[%s5775_s2 + $0x8c] ss:$16 sps:$4 sm:$0xff]   ;;  %v4798_v50 = vld [vmem:[%s5775_s2 + $0x64] ss:$16 sps:$4 sm:$0xff]   ;;  %v4806_v51 = vld [vmem:[%s5775_s2 + $0x88] ss:$16 sps:$4 sm:$0xff]  }
  0x12   :  { %v4148_v52 = vld [vmem:[%s5774_s0 + $0x10] sm:$0xff]   ;;  %v4821_v54 = vld [vmem:[%s5775_s2 + $0x6c] ss:$16 sps:$4 sm:$0xff]   ;;  %v4833_v56 = vld [vmem:[%s5775_s2 + $0x68] ss:$16 sps:$4 sm:$0xff]  }
  0x13   :  { %338 = vmatpush1.bf16.msra.mxu0 %v4120_v19  ;;  %451 = vmatpush1.bf16.msra.mxu1 %v4121_v20  ;;  %v4815_v53 = vld [vmem:[%s5775_s2 + $0x60] ss:$16 sps:$4 sm:$0xff]   ;;  %v4827_v55 = vld [vmem:[%s5775_s2 + $0x44] ss:$16 sps:$4 sm:$0xff]   ;;  %v4846_v59 = vld [vmem:[%s5775_s2 + $0x4c] ss:$16 sps:$4 sm:$0xff]  }
  0x14   :  { %339 = vmatprep.subr.bf16.mxu0 %v4122_v21  ;;  %452 = vmatprep.subr.bf16.mxu1 %v4124_v22  ;;  %v39_v57 = vld [vmem:[%s5776_s4] sm:$0xff]  ;;  %v40_v60 = vld [vmem:[%s5776_s4 + $0x8] sm:$0xff]  ;;  %v4155_v0 = vld [vmem:[%s5774_s0 + $0x18] sm:$0xff]   ;;  %v103_v20 = vsub.s32 0, %v102_v15  ;;  %v111_v21 = vsub.s32 2, %v102_v15 }
  0x15   :  { %v4841_v58 = vld [vmem:[%s5775_s2 + $0x40] ss:$16 sps:$4 sm:$0xff]   ;;  %v4856_v61 = vld [vmem:[%s5775_s2 + $0x24] ss:$16 sps:$4 sm:$0xff]   ;;  %v4861_v62 = vld [vmem:[%s5775_s2 + $0x48] ss:$16 sps:$4 sm:$0xff]   ;;  %v4002_v63 = vpack.c.bf16 %v40_v60, %v39_v57 }
  0x16   :  { %v4873_v2 = vld [vmem:[%s5775_s2 + $0x20] ss:$16 sps:$4 sm:$0xff]   ;;  %v4879_v3 = vld [vmem:[%s5775_s2 + $0x2c] ss:$16 sps:$4 sm:$0xff]   ;;  %v4884_v4 = vld [vmem:[%s5775_s2 + $0x4] ss:$16 sps:$4 sm:$0xff]  }
  0x17   :  { %340 = vmatpush1.bf16.msra.mxu0 %v4126_v23  ;;  %453 = vmatpush1.bf16.msra.mxu1 %v4127_v24  ;;  %4003 = vst [vmem:[#allocation5] sm:$0xff] %v4002_v63   ;;  %v4889_v5 = vld [vmem:[%s5775_s2 + $0x28] ss:$16 sps:$4 sm:$0xff]   ;;  %v4895_v6 = vld [vmem:[%s5775_s2 + $0xc] ss:$16 sps:$4 sm:$0xff]   ;;  %v4162_v8 = vld [vmem:[%s5774_s0 + $0x20] sm:$0xff]  }
  0x18   :  { %341 = vmatprep.subr.bf16.mxu0 %v4128_v25  ;;  %454 = vmatprep.subr.bf16.mxu1 %v4130_v26  ;;  %v4902_v7 = vld [vmem:[%s5775_s2] ss:$16 sps:$4 sm:$0xff]   ;;  %v4914_v9 = vld [vmem:[%s5775_s2 + $0x8] ss:$16 sps:$4 sm:$0xff]   ;;  %v107_v25 = vsub.s32 1, %v102_v15  ;;  %v115_v26 = vsub.s32 3, %v102_v15 }
  0x19   :  { %v4169_v10 = vld [vmem:[%s5774_s0 + $0x28] sm:$0xff]   ;;  %v4176_v11 = vld [vmem:[%s5774_s0 + $0x30] sm:$0xff]   ;;  %v4186_v12 = vld [vmem:[%s5774_s0 + $0x38] sm:$0xff]  }
  0x1a   :  { %v99_v22 = vld [vmem:[%s5777_s3] sm:$0xf] }
  0x1b   :  { %342 = vmatpush1.bf16.msra.mxu0 %v4132_v27  ;;  %455 = vmatpush1.bf16.msra.mxu1 %v4133_v28 }
  0x1c   :  { %343 = vmatprep.subr.bf16.mxu0 %v4134_v29  ;;  %456 = vmatprep.subr.bf16.mxu1 %v4136_v30  ;;  %v4992_v29 = vrot.slane %v99_v22, %v103_v20  ;;  %v4994_v30 = vrot.slane %v99_v22, %v111_v21 }
  0x1e   :  { %v4196_v13 = vld [vmem:[#allocation5] sm:$0xff]  }
  0x1f   :  { %344 = vmatpush1.bf16.msra.mxu0 %v4138_v31  ;;  %457 = vmatpush1.bf16.msra.mxu1 %v4139_v32 }
  0x20   :  { %829 = vmatprep.subr.bf16.mxu0 %v4703_v33  ;;  %872 = vmatprep.subr.bf16.mxu1 %v4708_v34 }
  0x22   :  { %362 = vmatmul.mubr.bf16.vlgmr.msra.gmra.mxu0 %v4140_v35  ;;  %475 = vmatmul.mubr.bf16.vlgmr.msra.gmra.mxu1 %v4140_v35 }
  0x23   :  { %830 = vmatpush1.bf16.msra.mxu0 %v4716_v36  ;;  %371 = vmatprep.mubr.bf16.mxu0 %v5782_v1 }
  0x24   :  { %484 = vmatprep.mubr.bf16.mxu1 %v5782_v1  ;;  %831 = vmatprep.subr.bf16.mxu0 %v4722_v37 }
  0x25   :  { %873 = vmatpush1.bf16.msra.mxu1 %v4728_v38 }
  0x26   :  { %874 = vmatprep.subr.bf16.mxu1 %v4733_v39 }
  0x27   :  { %832 = vmatpush1.bf16.msra.mxu0 %v4740_v40 }
  0x28   :  { %833 = vmatprep.subr.bf16.mxu0 %v4747_v41 }
  0x29   :  { %875 = vmatpush1.bf16.msra.mxu1 %v4753_v42 }
  0x2a   :  { %372 = vmatmul.mubr.bf16.gmra.mxu0 %v4144_v43  ;;  %485 = vmatmul.mubr.bf16.gmra.mxu1 %v4144_v43 }
  0x2b   :  { %381 = vmatprep.mubr.bf16.mxu0 %v5782_v1  ;;  %494 = vmatprep.mubr.bf16.mxu1 %v5782_v1 }
  0x2c   :  { %834 = vmatpush1.bf16.msra.mxu0 %v4763_v44  ;;  %876 = vmatprep.subr.bf16.mxu1 %v4769_v45 }
  0x2d   :  { %835 = vmatprep.subr.bf16.mxu0 %v4774_v46  ;;  %877 = vmatpush1.bf16.msra.mxu1 %v4780_v47 }
  0x2e   :  { %878 = vmatprep.subr.bf16.mxu1 %v4785_v48 }
  0x30   :  { %836 = vmatpush1.bf16.msra.mxu0 %v4793_v49 }
  0x31   :  { %837 = vmatprep.subr.bf16.mxu0 %v4798_v50  ;;  %879 = vmatpush1.bf16.msra.mxu1 %v4806_v51 }
  0x32   :  { %382 = vmatmul.mubr.bf16.gmra.mxu0 %v4148_v52  ;;  %495 = vmatmul.mubr.bf16.gmra.mxu1 %v4148_v52 }
  0x33   :  { %391 = vmatprep.mubr.bf16.mxu0 %v5782_v1  ;;  %504 = vmatprep.mubr.bf16.mxu1 %v5782_v1 }
  0x34   :  { %838 = vmatpush1.bf16.msra.mxu0 %v4815_v53  ;;  %880 = vmatprep.subr.bf16.mxu1 %v4821_v54 }
  0x35   :  { %839 = vmatprep.subr.bf16.mxu0 %v4827_v55  ;;  %881 = vmatpush1.bf16.msra.mxu1 %v4833_v56 }
  0x36   :  { %882 = vmatprep.subr.bf16.mxu1 %v4846_v59 }
  0x38   :  { %840 = vmatpush1.bf16.msra.mxu0 %v4841_v58 }
  0x39   :  { %841 = vmatprep.subr.bf16.mxu0 %v4856_v61  ;;  %883 = vmatpush1.bf16.msra.mxu1 %v4861_v62 }
  0x3a   :  { %392 = vmatmul.mubr.bf16.gmra.mxu0 %v4155_v0  ;;  %505 = vmatmul.mubr.bf16.gmra.mxu1 %v4155_v0 }
  0x3b   :  { %401 = vmatprep.mubr.bf16.mxu0 %v5782_v1  ;;  %514 = vmatprep.mubr.bf16.mxu1 %v5782_v1 }
  0x3c   :  { %842 = vmatpush1.bf16.msra.mxu0 %v4873_v2  ;;  %884 = vmatprep.subr.bf16.mxu1 %v4879_v3 }
  0x3d   :  { %843 = vmatprep.subr.bf16.mxu0 %v4884_v4  ;;  %885 = vmatpush1.bf16.msra.mxu1 %v4889_v5 }
  0x3e   :  { %886 = vmatprep.subr.bf16.mxu1 %v4895_v6 }
  0x40   :  { %844 = vmatpush1.bf16.msra.mxu0 %v4902_v7 }
  0x41   :  { %887 = vmatpush1.bf16.msra.mxu1 %v4914_v9  ;;  %1198 = vmatprep.subr.bf16.mxu0 %v4703_v33  ;;  %v4996_v33 = vrot.slane %v99_v22, %v107_v25 }
  0x42   :  { %402 = vmatmul.mubr.bf16.gmra.mxu0 %v4162_v8  ;;  %515 = vmatmul.mubr.bf16.gmra.mxu1 %v4162_v8 }
  0x43   :  { %411 = vmatprep.mubr.bf16.mxu0 %v5782_v1  ;;  %524 = vmatprep.mubr.bf16.mxu1 %v5782_v1 }
  0x44   :  { %1241 = vmatprep.subr.bf16.mxu1 %v4708_v34 }
  0x4a   :  { %412 = vmatmul.mubr.bf16.gmra.mxu0 %v4169_v10  ;;  %525 = vmatmul.mubr.bf16.gmra.mxu1 %v4169_v10 }
  0x4b   :  { %421 = vmatprep.mubr.bf16.mxu0 %v5782_v1  ;;  %534 = vmatprep.mubr.bf16.mxu1 %v5782_v1 }
  0x52   :  { %422 = vmatmul.mubr.bf16.gmra.mxu0 %v4176_v11  ;;  %535 = vmatmul.mubr.bf16.gmra.mxu1 %v4176_v11 }
  0x53   :  { %431 = vmatprep.mubr.bf16.mxu0 %v5782_v1  ;;  %544 = vmatprep.mubr.bf16.mxu1 %v5782_v1 }
  0x5a   :  { %432 = vmatmul.mubr.bf16.gmra.mxu0 %v4186_v12  ;;  %545 = vmatmul.mubr.bf16.gmra.mxu1 %v4186_v12 }
  0x5b   :  { %861 = vmatprep.mubr.bf16.mxu0 %v5782_v1  ;;  %904 = vmatprep.mubr.bf16.mxu1 %v5782_v1 }
  0x62   :  { %862 = vmatmul.mubr.bf16.vlgmr.msra.gmra.mxu0 %v4196_v13  ;;  %905 = vmatmul.mubr.bf16.vlgmr.msra.gmra.mxu1 %v4196_v13 }
  0x63   :  { %1199 = vmatpush1.bf16.msra.mxu0 %v4716_v36  ;;  %1242 = vmatpush1.bf16.msra.mxu1 %v4728_v38 }
  0x64   :  { %1200 = vmatprep.subr.bf16.mxu0 %v4722_v37  ;;  %1243 = vmatprep.subr.bf16.mxu1 %v4733_v39 }
  0x65   :  { %1230 = vmatprep.mubr.bf16.mxu0 %v5782_v1  ;;  %1273 = vmatprep.mubr.bf16.mxu1 %v5782_v1 }
  0x67   :  { %1201 = vmatpush1.bf16.msra.mxu0 %v4740_v40  ;;  %1244 = vmatpush1.bf16.msra.mxu1 %v4753_v42 }
  0x68   :  { %1202 = vmatprep.subr.bf16.mxu0 %v4747_v41  ;;  %1245 = vmatprep.subr.bf16.mxu1 %v4769_v45 }
  0x6b   :  { %1203 = vmatpush1.bf16.msra.mxu0 %v4763_v44  ;;  %1246 = vmatpush1.bf16.msra.mxu1 %v4780_v47 }
  0x6c   :  { %1204 = vmatprep.subr.bf16.mxu0 %v4774_v46  ;;  %1247 = vmatprep.subr.bf16.mxu1 %v4785_v48 }
  0x6f   :  { %1205 = vmatpush1.bf16.msra.mxu0 %v4793_v49  ;;  %1248 = vmatpush1.bf16.msra.mxu1 %v4806_v51 }
  0x70   :  { %1206 = vmatprep.subr.bf16.mxu0 %v4798_v50  ;;  %1249 = vmatprep.subr.bf16.mxu1 %v4821_v54 }
  0x73   :  { %1207 = vmatpush1.bf16.msra.mxu0 %v4815_v53  ;;  %1250 = vmatpush1.bf16.msra.mxu1 %v4833_v56 }
  0x74   :  { %1208 = vmatprep.subr.bf16.mxu0 %v4827_v55  ;;  %1251 = vmatprep.subr.bf16.mxu1 %v4846_v59 }
  0x77   :  { %1209 = vmatpush1.bf16.msra.mxu0 %v4841_v58  ;;  %1252 = vmatpush1.bf16.msra.mxu1 %v4861_v62 }
  0x78   :  { %1210 = vmatprep.subr.bf16.mxu0 %v4856_v61  ;;  %1253 = vmatprep.subr.bf16.mxu1 %v4879_v3 }
  0x7b   :  { %1211 = vmatpush1.bf16.msra.mxu0 %v4873_v2  ;;  %1254 = vmatpush1.bf16.msra.mxu1 %v4889_v5 }
  0x7c   :  { %1212 = vmatprep.subr.bf16.mxu0 %v4884_v4  ;;  %1255 = vmatprep.subr.bf16.mxu1 %v4895_v6 }
  0x7f   :  { %1213 = vmatpush1.bf16.msra.mxu0 %v4902_v7  ;;  %1256 = vmatpush1.bf16.msra.mxu1 %v4914_v9 }
  0x80   :  { %1611 = vmatprep.subr.bf16.mxu1 %v4708_v34  ;;  %v4998_v34 = vrot.slane %v99_v22, %v115_v26 }
  0xe2   :  { %v4973_v16 = vpop.f32.mrf.mxu0  ;;  %v4975_v17 = vpop.f32.mrf.mxu1 }
  0xe4   :  { %v4977_v18 = vpop.f32.mrf.mxu0  ;;  %v4979_v19 = vpop.f32.mrf.mxu1 }
  0xe6   :  { %v4984_v23 = vpop.f32.mrf.mxu0  ;;  %v4986_v24 = vpop.f32.mrf.mxu1 }
  0xe8   :  { %v4988_v27 = vpop.f32.mrf.mxu0  ;;  %v4990_v28 = vpop.f32.mrf.mxu1 }
  0xea   :  { %v373_v31 = vpop.f32.mrf.mxu0  ;;  %v486_v32 = vpop.f32.mrf.mxu1 }
  0xeb   :  { %v5001_v35 = vadd.f32 %v373_v31, %v4992_v29  ;;  %v5004_v36 = vadd.f32 %v486_v32, %v4994_v30 }
  0xec   :  { %v375_v37 = vpop.f32.mrf.mxu0  ;;  %v488_v40 = vpop.f32.mrf.mxu1 }
  0xed   :  { %v5007_v43 = vadd.f32 %v375_v37, %v4996_v33  ;;  %v5010_v52 = vadd.f32 %v488_v40, %v4998_v34 }
  0xee   :  { %v377_v57 = vpop.f32.mrf.mxu0  ;;  %v490_v60 = vpop.f32.mrf.mxu1 }
  0xef   :  { %v5013_v63 = vadd.f32 %v377_v57, %v4992_v29  ;;  %v5016_v0 = vadd.f32 %v490_v60, %v4994_v30 }
  0xf0   :  { %v379_v8 = vpop.f32.mrf.mxu0  ;;  %v492_v10 = vpop.f32.mrf.mxu1 }
  0xf1   :  { %v5019_v11 = vadd.f32 %v379_v8, %v4996_v33  ;;  %v5022_v12 = vadd.f32 %v492_v10, %v4998_v34 }
  0xf2   :  { %v383_v13 = vpop.f32.mrf.mxu0  ;;  %v496_v14 = vpop.f32.mrf.mxu1 }
  0xf3   :  { %v5025_v15 = vadd.f32 %v383_v13, %v4992_v29  ;;  %v5028_v20 = vadd.f32 %v496_v14, %v4994_v30 }
  0xf4   :  { %v385_v21 = vpop.f32.mrf.mxu0  ;;  %v498_v22 = vpop.f32.mrf.mxu1 }
  0xf5   :  { %5784 = vst [vmem:[#allocation6_spill] sm:$0xff] %v5028_v20  ;;  %v5031_v25 = vadd.f32 %v385_v21, %v4996_v33  ;;  %v5034_v26 = vadd.f32 %v498_v22, %v4998_v34 }
  0xf6   :  { %v387_v31 = vpop.f32.mrf.mxu0  ;;  %v500_v32 = vpop.f32.mrf.mxu1 }
  0xf7   :  { %5785 = vst [vmem:[#allocation7_spill] sm:$0xff] %v5034_v26  ;;  %v5037_v37 = vadd.f32 %v387_v31, %v4992_v29  ;;  %v5040_v40 = vadd.f32 %v500_v32, %v4994_v30 }
  0xf8   :  { %v389_v57 = vpop.f32.mrf.mxu0  ;;  %v502_v60 = vpop.f32.mrf.mxu1 }
  0xf9   :  { %5786 = vst [vmem:[#allocation8_spill] sm:$0xff] %v5037_v37  ;;  %5787 = vst [vmem:[#allocation9_spill] sm:$0xff] %v5040_v40  ;;  %v5043_v8 = vadd.f32 %v389_v57, %v4996_v33  ;;  %v5046_v10 = vadd.f32 %v502_v60, %v4998_v34 }
  0xfa   :  { %v393_v13 = vpop.f32.mrf.mxu0  ;;  %v506_v14 = vpop.f32.mrf.mxu1 }
  0xfb   :  { %5788 = vst [vmem:[#allocation10_spill] sm:$0xff] %v5043_v8  ;;  %5789 = vst [vmem:[#allocation11_spill] sm:$0xff] %v5046_v10  ;;  %v5049_v21 = vadd.f32 %v393_v13, %v4992_v29  ;;  %v5052_v22 = vadd.f32 %v506_v14, %v4994_v30 }
  0xfc   :  { %v395_v31 = vpop.f32.mrf.mxu0  ;;  %v508_v1 = vpop.f32.mrf.mxu1 }
  0xfd   :  { %5790 = vst [vmem:[#allocation12_spill] sm:$0xff] %v5049_v21  ;;  %5791 = vst [vmem:[#allocation13_spill] sm:$0xff] %v5052_v22  ;;  %v5055_v32 = vadd.f32 %v395_v31, %v4996_v33  ;;  %v5058_v40 = vadd.f32 %v508_v1, %v4998_v34 }
  0xfe   :  { %v397_v57 = vpop.f32.mrf.mxu0  ;;  %v510_v20 = vpop.f32.mrf.mxu1 }
  0xff   :  { %5792 = vst [vmem:[#allocation14_spill] sm:$0xff] %v5055_v32  ;;  %5793 = vst [vmem:[#allocation15_spill] sm:$0xff] %v5058_v40  ;;  %v5061_v60 = vadd.f32 %v397_v57, %v4992_v29  ;;  %v5064_v10 = vadd.f32 %v510_v20, %v4994_v30 }
 0x100   :  { %v399_v13 = vpop.f32.mrf.mxu0  ;;  %v512_v21 = vpop.f32.mrf.mxu1 }
 0x101   :  { %5794 = vst [vmem:[#allocation16_spill] sm:$0xff] %v5061_v60  ;;  %5795 = vst [vmem:[#allocation17_spill] sm:$0xff] %v5064_v10  ;;  %v5067_v14 = vadd.f32 %v399_v13, %v4996_v33  ;;  %v5070_v22 = vadd.f32 %v512_v21, %v4998_v34 }
 0x102   :  { %v403_v31 = vpop.f32.mrf.mxu0  ;;  %v516_v32 = vpop.f32.mrf.mxu1 }
 0x103   :  { %5796 = vst [vmem:[#allocation18_spill] sm:$0xff] %v5067_v14  ;;  %5797 = vst [vmem:[#allocation19_spill] sm:$0xff] %v5070_v22  ;;  %v5073_v1 = vadd.f32 %v403_v31, %v4992_v29  ;;  %v5076_v40 = vadd.f32 %v516_v32, %v4994_v30 }
 0x104   :  { %v405_v57 = vpop.f32.mrf.mxu0  ;;  %v518_v60 = vpop.f32.mrf.mxu1 }
 0x105   :  { %5798 = vst [vmem:[#allocation20_spill] sm:$0xff] %v5073_v1  ;;  %5799 = vst [vmem:[#allocation21_spill] sm:$0xff] %v5076_v40  ;;  %v5079_v20 = vadd.f32 %v405_v57, %v4996_v33  ;;  %v5082_v10 = vadd.f32 %v518_v60, %v4998_v34 }
 0x106   :  { %v407_v13 = vpop.f32.mrf.mxu0  ;;  %v520_v14 = vpop.f32.mrf.mxu1 }
 0x107   :  { %5800 = vst [vmem:[#allocation22_spill] sm:$0xff] %v5079_v20  ;;  %5801 = vst [vmem:[#allocation23_spill] sm:$0xff] %v5082_v10  ;;  %v5085_v21 = vadd.f32 %v407_v13, %v4992_v29  ;;  %v5088_v22 = vadd.f32 %v520_v14, %v4994_v30 }
 0x108   :  { %v409_v31 = vpop.f32.mrf.mxu0  ;;  %v522_v1 = vpop.f32.mrf.mxu1 }
 0x109   :  { %5802 = vst [vmem:[#allocation24_spill] sm:$0xff] %v5085_v21  ;;  %5803 = vst [vmem:[#allocation25_spill] sm:$0xff] %v5088_v22  ;;  %v5091_v32 = vadd.f32 %v409_v31, %v4996_v33  ;;  %v5094_v40 = vadd.f32 %v522_v1, %v4998_v34 }
 0x10a   :  { %v413_v57 = vpop.f32.mrf.mxu0  ;;  %v526_v20 = vpop.f32.mrf.mxu1 }
 0x10b   :  { %5804 = vst [vmem:[#allocation26_spill] sm:$0xff] %v5091_v32  ;;  %5805 = vst [vmem:[#allocation27_spill] sm:$0xff] %v5094_v40  ;;  %v5097_v60 = vadd.f32 %v413_v57, %v4992_v29  ;;  %v5100_v10 = vadd.f32 %v526_v20, %v4994_v30 }
 0x10c   :  { %v415_v13 = vpop.f32.mrf.mxu0  ;;  %v528_v21 = vpop.f32.mrf.mxu1 }
 0x10d   :  { %5806 = vst [vmem:[#allocation28_spill] sm:$0xff] %v5097_v60  ;;  %5807 = vst [vmem:[#allocation29_spill] sm:$0xff] %v5100_v10  ;;  %v5103_v14 = vadd.f32 %v415_v13, %v4996_v33  ;;  %v5106_v22 = vadd.f32 %v528_v21, %v4998_v34 }
 0x10e   :  { %v417_v31 = vpop.f32.mrf.mxu0  ;;  %v530_v32 = vpop.f32.mrf.mxu1 }
 0x10f   :  { %5808 = vst [vmem:[#allocation30_spill] sm:$0xff] %v5103_v14  ;;  %5809 = vst [vmem:[#allocation31_spill] sm:$0xff] %v5106_v22  ;;  %v5109_v1 = vadd.f32 %v417_v31, %v4992_v29  ;;  %v5112_v40 = vadd.f32 %v530_v32, %v4994_v30 }
 0x110   :  { %v419_v57 = vpop.f32.mrf.mxu0  ;;  %v532_v60 = vpop.f32.mrf.mxu1 }
 0x111   :  { %5810 = vst [vmem:[#allocation32_spill] sm:$0xff] %v5109_v1  ;;  %5811 = vst [vmem:[#allocation33_spill] sm:$0xff] %v5112_v40  ;;  %v5115_v20 = vadd.f32 %v419_v57, %v4996_v33  ;;  %v5118_v10 = vadd.f32 %v532_v60, %v4998_v34 }
 0x112   :  { %v423_v13 = vpop.f32.mrf.mxu0  ;;  %v536_v14 = vpop.f32.mrf.mxu1 }
 0x113   :  { %5812 = vst [vmem:[#allocation34_spill] sm:$0xff] %v5115_v20  ;;  %5813 = vst [vmem:[#allocation35_spill] sm:$0xff] %v5118_v10  ;;  %v5121_v21 = vadd.f32 %v423_v13, %v4992_v29  ;;  %v5124_v22 = vadd.f32 %v536_v14, %v4994_v30 }
 0x114   :  { %v425_v31 = vpop.f32.mrf.mxu0  ;;  %v538_v1 = vpop.f32.mrf.mxu1 }
 0x115   :  { %5814 = vst [vmem:[#allocation36_spill] sm:$0xff] %v5121_v21  ;;  %5815 = vst [vmem:[#allocation37_spill] sm:$0xff] %v5124_v22  ;;  %v5127_v32 = vadd.f32 %v425_v31, %v4996_v33  ;;  %v5130_v40 = vadd.f32 %v538_v1, %v4998_v34 }
 0x116   :  { %v427_v57 = vpop.f32.mrf.mxu0  ;;  %v540_v20 = vpop.f32.mrf.mxu1 }
 0x117   :  { %5816 = vst [vmem:[#allocation38_spill] sm:$0xff] %v5127_v32  ;;  %5817 = vst [vmem:[#allocation39_spill] sm:$0xff] %v5130_v40  ;;  %v5133_v60 = vadd.f32 %v427_v57, %v4992_v29  ;;  %v5136_v10 = vadd.f32 %v540_v20, %v4994_v30 }
 0x118   :  { %v429_v13 = vpop.f32.mrf.mxu0  ;;  %v542_v21 = vpop.f32.mrf.mxu1 }
 0x119   :  { %5818 = vst [vmem:[#allocation40_spill] sm:$0xff] %v5133_v60  ;;  %5819 = vst [vmem:[#allocation41_spill] sm:$0xff] %v5136_v10  ;;  %v5139_v14 = vadd.f32 %v429_v13, %v4996_v33  ;;  %v5142_v22 = vadd.f32 %v542_v21, %v4998_v34 }
 0x11a   :  { %v433_v31 = vpop.f32.mrf.mxu0  ;;  %v546_v32 = vpop.f32.mrf.mxu1 }
 0x11b   :  { %5820 = vst [vmem:[#allocation42_spill] sm:$0xff] %v5139_v14  ;;  %5821 = vst [vmem:[#allocation43_spill] sm:$0xff] %v5142_v22  ;;  %v5145_v1 = vadd.f32 %v433_v31, %v4992_v29  ;;  %v5148_v40 = vadd.f32 %v546_v32, %v4994_v30  ;;  %v364_v32 = vadd.f32 %v4973_v16, %v4992_v29 }
 0x11c   :  { %v435_v57 = vpop.f32.mrf.mxu0  ;;  %v548_v60 = vpop.f32.mrf.mxu1  ;;  %v370_v16 = vadd.f32 %v4988_v27, %v4996_v33 }
 0x11d   :  { %5822 = vst [vmem:[#allocation44_spill] sm:$0xff] %v5145_v1  ;;  %5823 = vst [vmem:[#allocation45_spill] sm:$0xff] %v5148_v40  ;;  %v5151_v20 = vadd.f32 %v435_v57, %v4996_v33  ;;  %v5154_v10 = vadd.f32 %v548_v60, %v4998_v34 }
 0x11e   :  { %v437_v13 = vpop.f32.mrf.mxu0  ;;  %v550_v14 = vpop.f32.mrf.mxu1 }
 0x11f   :  { %5824 = vst [vmem:[#allocation46_spill] sm:$0xff] %v5151_v20  ;;  %5825 = vst [vmem:[#allocation47_spill] sm:$0xff] %v5154_v10  ;;  %v5157_v21 = vadd.f32 %v437_v13, %v4992_v29  ;;  %v5160_v22 = vadd.f32 %v550_v14, %v4994_v30  ;;  %v366_v10 = vadd.f32 %v4977_v18, %v4996_v33 }
 0x120   :  { %v439_v31 = vpop.f32.mrf.mxu0  ;;  %v552_v1 = vpop.f32.mrf.mxu1  ;;  %v368_v14 = vadd.f32 %v4984_v23, %v4992_v29  ;;  %v479_v23 = vadd.f32 %v4979_v19, %v4998_v34 }
 0x121   :  { %5826 = vst [vmem:[#allocation48_spill] sm:$0xff] %v5157_v21  ;;  %5827 = vst [vmem:[#allocation49_spill] sm:$0xff] %v5160_v22  ;;  %v5165_v40 = vadd.f32 %v439_v31, %v4996_v33  ;;  %v5168_v57 = vadd.f32 %v552_v1, %v4998_v34  ;;  %v483_v33 = vadd.f32 %v4990_v28, %v4998_v34 }
 0x122   :  { %v863_v60 = vpop.f32.mrf.mxu0  ;;  %v906_v21 = vpop.f32.mrf.mxu1 }
 0x123   :  { %5828 = vst [vmem:[#allocation50_spill] sm:$0xff] %v5165_v40  ;;  %5829 = vst [vmem:[#allocation51_spill] sm:$0xff] %v5168_v57  ;;  %v915_v13 = vadd.f32 %v863_v60, %v364_v32 }
 0x124   :  { %v865_v20 = vpop.f32.mrf.mxu0  ;;  %v908_v1 = vpop.f32.mrf.mxu1 }
 0x125   :  { %v3672_v22 = vmul.f32 -1.442695, %v915_v13  ;;  %v916_v26 = vadd.f32 %v865_v20, %v366_v10  ;;  %v918_v29 = vadd.f32 %v908_v1, %v479_v23  ;;  %v477_v10 = vadd.f32 %v4975_v17, %v4994_v30 }
 0x126   :  { %v867_v8 = vpop.f32.mrf.mxu0  ;;  %v910_v32 = vpop.f32.mrf.mxu1 }
 0x127   :  { %4300 = vpow2.f32 %v3672_v22  ;;  %v3674_v31 = vmul.f32 -1.442695, %v916_v26  ;;  %v919_v57 = vadd.f32 %v867_v8, %v368_v14  ;;  %v917_v26 = vadd.f32 %v906_v21, %v477_v10 }
 0x128   :  { %v869_v40 = vpop.f32.mrf.mxu0  ;;  %v912_v27 = vpop.f32.mrf.mxu1  ;;  %v481_v8 = vadd.f32 %v4986_v24, %v4994_v30 }
 0x129   :  { %4302 = vpow2.f32 %v3674_v31  ;;  %v3673_v37 = vmul.f32 -1.442695, %v919_v57  ;;  %v920_v18 = vadd.f32 %v869_v40, %v370_v16  ;;  %v3676_v40 = vmul.f32 -1.442695, %v918_v29  ;;  %v35_v31 = vld [vmem:[%s5778_s5] sm:$0xff] }
 0x12a   :  { %v921_v20 = vadd.f32 %v910_v32, %v481_v8 }
 0x12b   :  { %4304 = vpow2.f32 %v3673_v37  ;;  %v3675_v60 = vmul.f32 -1.442695, %v920_v18  ;;  %v922_v37 = vadd.f32 %v912_v27, %v483_v33  ;;  %v36_v27 = vld [vmem:[%s5778_s5 + $0x8] sm:$0xff] }
 0x12d   :  { %4306 = vpow2.f32 %v3675_v60  ;;  %v3677_v13 = vmul.f32 -1.442695, %v922_v37 }
 0x12e   :  { %4308 = vtanh.f32 %v917_v26 }
 0x12f   :  { %4310 = vpow2.f32 %v3676_v40 }
 0x134   :  { %v4301_v22 = vpop.eup %4300 }
 0x135   :  { %v929_v57 = vadd.f32 1.0, %v4301_v22 }
 0x136   :  { %v4303_v19 = vpop.eup %4302 }
 0x137   :  { %4312 = vrcp.f32 %v929_v57  ;;  %v941_v14 = vadd.f32 1.0, %v4303_v19 }
 0x138   :  { %v4305_v17 = vpop.eup %4304  ;;  %4314 = vtanh.f32 %v921_v20 }
 0x139   :  { %4316 = vrcp.f32 %v941_v14  ;;  %v930_v16 = vadd.f32 1.0, %v4305_v17 }
 0x13a   :  { %v4307_v28 = vpop.eup %4306  ;;  %4318 = vpow2.f32 %v3677_v13 }
 0x13b   :  { %4320 = vrcp.f32 %v930_v16  ;;  %v942_v34 = vadd.f32 1.0, %v4307_v28  ;;  %v4309_v24 = vpop.eup %4308 }
 0x13c   :  { %v4311_v30 = vpop.eup %4310 }
 0x13d   :  { %4322 = vrcp.f32 %v942_v34  ;;  %v955_v10 = vadd.f32 1.0, %v4311_v30  ;;  %v5830_v34 = vmov 0  }
 0x13f   :  { %4324 = vrcp.f32 %v955_v10 }
 0x144   :  { %v4313_v21 = vpop.eup %4312 }
 0x145   :  { %v4315_v1 = vpop.eup %4314  ;;  %v963_v18 = vmul.f32 %v4313_v21, %v4309_v24 }
 0x146   :  { %v4317_v32 = vpop.eup %4316 }
 0x147   :  { %v4319_v60 = vpop.eup %4318  ;;  %v961_v23 = vmul.f32 %v4317_v32, %v35_v31 }
 0x148   :  { %v4321_v29 = vpop.eup %4320  ;;  %v956_v40 = vadd.f32 1.0, %v4319_v60 }
 0x149   :  { %v5190_v33 = vadd.f32 %v963_v18, %v961_v23  ;;  %v964_v26 = vmul.f32 %v4321_v29, %v4315_v1 }
 0x14a   :  { %v4323_v8 = vpop.eup %4322 }
 0x14b   :  { %v962_v37 = vmul.f32 %v4323_v8, %v36_v27  ;;  %4326 = vtanh.f32 %v5190_v33 }
 0x14c   :  { %4328 = vrcp.f32 %v956_v40  ;;  %v4325_v20 = vpop.eup %4324 }
 0x14d   :  { %v5193_v22 = vadd.f32 %v964_v26, %v962_v37 }
 0x14f   :  { %4330 = vtanh.f32 %v5193_v22 }
 0x158   :  { %v4327_v57 = vpop.eup %4326 }
 0x159   :  { %v4329_v19 = vpop.eup %4328  ;;  %v969_v14 = vmul.f32 %v4327_v57, %v4325_v20 }
 0x15c   :  { %v4331_v13 = vpop.eup %4330 }
 0x15d   :  { %v970_v17 = vmul.f32 %v4331_v13, %v4329_v19 }
 0x15f   :  { %v4007_v16 = vpack.c.bf16 %v970_v17, %v969_v14  ;;  %v5280_v17 = vld [vmem:[%s5775_s2 + $0xec] ss:$16 sps:$4 sm:$0xff]  }
 0x161   :  { %4008 = vst [vmem:[%s5779_s6] sm:$0xff] %v4007_v16   ;;  %4013 = vst [vmem:[#allocation5] sm:$0xff] %v4007_v16   ;;  %v5285_v16 = vld [vmem:[%s5775_s2 + $0xe8] ss:$16 sps:$4 sm:$0xff]  }
 0x168   :  { %v4197_v28 = vld [vmem:[#allocation5] sm:$0xff]  }
 0x169   :  { %1231 = vmatmul.mubr.bf16.vlgmr.msra.gmra.mxu0 %v4197_v28  ;;  %1274 = vmatmul.mubr.bf16.vlgmr.msra.gmra.mxu1 %v4197_v28  ;;  %v5292_v28 = vld [vmem:[%s5775_s2 + $0xcc] ss:$16 sps:$4 sm:$0xff]  }
 0x16a   :  { %1612 = vmatpush1.bf16.msra.mxu1 %v4728_v38  ;;  %1600 = vmatprep.mubr.bf16.mxu0 %v5830_v34  ;;  %v5219_v38 = vld [vmem:[%s5775_s2 + $0xe4] ss:$16 sps:$4 sm:$0xff]  }
 0x16b   :  { %1613 = vmatprep.subr.bf16.mxu1 %v4733_v39  ;;  %1643 = vmatprep.mubr.bf16.mxu1 %v5830_v34  ;;  %v5224_v39 = vld [vmem:[%s5775_s2 + $0xe0] ss:$16 sps:$4 sm:$0xff]  }
 0x16c   :  { %1568 = vmatprep.subr.bf16.mxu0 %v5219_v38 }
 0x16d   :  { %1569 = vmatpush1.bf16.msra.mxu0 %v5224_v39 }
 0x16e   :  { %1614 = vmatpush1.bf16.msra.mxu1 %v4753_v42  ;;  %v5231_v42 = vld [vmem:[%s5775_s2 + $0xc4] ss:$16 sps:$4 sm:$0xff]  }
 0x16f   :  { %1615 = vmatprep.subr.bf16.mxu1 %v4769_v45  ;;  %v5236_v45 = vld [vmem:[%s5775_s2 + $0xc0] ss:$16 sps:$4 sm:$0xff]   ;;  %1570 = vmatprep.subr.bf16.mxu0 %v5231_v42 }
 0x171   :  { %1571 = vmatpush1.bf16.msra.mxu0 %v5236_v45 }
 0x172   :  { %1616 = vmatpush1.bf16.msra.mxu1 %v4780_v47  ;;  %1572 = vmatprep.subr.bf16.mxu0 %v4747_v41 }
 0x173   :  { %1617 = vmatprep.subr.bf16.mxu1 %v4785_v48 }
 0x175   :  { %1573 = vmatpush1.bf16.msra.mxu0 %v4763_v44 }
 0x176   :  { %1618 = vmatpush1.bf16.msra.mxu1 %v4806_v51  ;;  %1574 = vmatprep.subr.bf16.mxu0 %v4774_v46 }
 0x177   :  { %1619 = vmatprep.subr.bf16.mxu1 %v4821_v54 }
 0x179   :  { %1575 = vmatpush1.bf16.msra.mxu0 %v4793_v49 }
 0x17a   :  { %1620 = vmatpush1.bf16.msra.mxu1 %v4833_v56  ;;  %1576 = vmatprep.subr.bf16.mxu0 %v4798_v50 }
 0x17b   :  { %1621 = vmatprep.subr.bf16.mxu1 %v4846_v59 }
 0x17d   :  { %1577 = vmatpush1.bf16.msra.mxu0 %v4815_v53 }
 0x17e   :  { %1622 = vmatpush1.bf16.msra.mxu1 %v4861_v62  ;;  %1578 = vmatprep.subr.bf16.mxu0 %v4827_v55 }
 0x17f   :  { %1623 = vmatprep.subr.bf16.mxu1 %v4879_v3 }
 0x181   :  { %1579 = vmatpush1.bf16.msra.mxu0 %v4841_v58 }
 0x182   :  { %1624 = vmatpush1.bf16.msra.mxu1 %v4889_v5  ;;  %1580 = vmatprep.subr.bf16.mxu0 %v4856_v61 }
 0x183   :  { %1625 = vmatprep.subr.bf16.mxu1 %v4895_v6 }
 0x185   :  { %1581 = vmatpush1.bf16.msra.mxu0 %v4873_v2 }
 0x186   :  { %1626 = vmatpush1.bf16.msra.mxu1 %v4914_v9  ;;  %1582 = vmatprep.subr.bf16.mxu0 %v4884_v4 }
 0x187   :  { %1981 = vmatprep.subr.bf16.mxu1 %v5280_v17 }
 0x189   :  { %1583 = vmatpush1.bf16.msra.mxu0 %v4902_v7 }
 0x18a   :  { %1938 = vmatprep.subr.bf16.mxu0 %v5219_v38 }
 0x229   :  { %v1232_v41 = vpop.f32.mrf.mxu0  ;;  %v1275_v46 = vpop.f32.mrf.mxu1 }
 0x22a   :  { %v1284_v44 = vadd.f32 %v1232_v41, %v5001_v35  ;;  %v1286_v3 = vadd.f32 %v1275_v46, %v5004_v36  ;;  %v5297_v41 = vld [vmem:[%s5775_s2 + $0xc8] ss:$16 sps:$4 sm:$0xff]   ;;  %v5309_v46 = vld [vmem:[%s5775_s2 + $0xac] ss:$16 sps:$4 sm:$0xff]  }
 0x22b   :  { %v1234_v47 = vpop.f32.mrf.mxu0  ;;  %v1277_v53 = vpop.f32.mrf.mxu1 }
 0x22c   :  { %v3713_v48 = vmul.f32 -1.442695, %v1284_v44  ;;  %v1285_v49 = vadd.f32 %v1234_v47, %v5007_v43  ;;  %v1287_v62 = vadd.f32 %v1277_v53, %v5010_v52  ;;  %v5304_v44 = vld [vmem:[%s5775_s2 + $0xa4] ss:$16 sps:$4 sm:$0xff]   ;;  %v5314_v47 = vld [vmem:[%s5775_s2 + $0xa0] ss:$16 sps:$4 sm:$0xff]  }
 0x22d   :  { %v1236_v50 = vpop.f32.mrf.mxu0  ;;  %v1279_v59 = vpop.f32.mrf.mxu1  ;;  %v5343_v53 = vld [vmem:[%s5775_s2 + $0x88] ss:$16 sps:$4 sm:$0xff]  }
 0x22e   :  { %4332 = vpow2.f32 %v3713_v48  ;;  %v3715_v51 = vmul.f32 -1.442695, %v1285_v49  ;;  %v1288_v54 = vadd.f32 %v1236_v50, %v5013_v63  ;;  %v3717_v4 = vmul.f32 -1.442695, %v1287_v62  ;;  %v5319_v48 = vld [vmem:[%s5775_s2 + $0xa8] ss:$16 sps:$4 sm:$0xff]  }
 0x22f   :  { %v1238_v55 = vpop.f32.mrf.mxu0  ;;  %v1281_v2 = vpop.f32.mrf.mxu1  ;;  %v1290_v7 = vadd.f32 %v1279_v59, %v5016_v0  ;;  %v5328_v49 = vld [vmem:[%s5775_s2 + $0x84] ss:$16 sps:$4 sm:$0xff]   ;;  %v5333_v50 = vld [vmem:[%s5775_s2 + $0x8c] ss:$16 sps:$4 sm:$0xff]   ;;  %v5386_v62 = vld [vmem:[%s5775_s2 + $0x40] ss:$16 sps:$4 sm:$0xff]  }
 0x230   :  { %4334 = vpow2.f32 %v3715_v51  ;;  %v3714_v56 = vmul.f32 -1.442695, %v1288_v54  ;;  %v1289_v58 = vadd.f32 %v1238_v55, %v5019_v11  ;;  %v1291_v5 = vadd.f32 %v1281_v2, %v5022_v12  ;;  %v5338_v51 = vld [vmem:[%s5775_s2 + $0x80] ss:$16 sps:$4 sm:$0xff]   ;;  %v5352_v54 = vld [vmem:[%s5775_s2 + $0x64] ss:$16 sps:$4 sm:$0xff]  }
 0x231   :  { %v5357_v55 = vld [vmem:[%s5775_s2 + $0x6c] ss:$16 sps:$4 sm:$0xff]   ;;  %v5376_v59 = vld [vmem:[%s5775_s2 + $0x44] ss:$16 sps:$4 sm:$0xff]   ;;  %v5391_v2 = vld [vmem:[%s5775_s2 + $0x48] ss:$16 sps:$4 sm:$0xff]  }
 0x232   :  { %4336 = vpow2.f32 %v3714_v56  ;;  %v3716_v61 = vmul.f32 -1.442695, %v1289_v58  ;;  %v3718_v43 = vmul.f32 -1.442695, %v1291_v5  ;;  %v5362_v56 = vld [vmem:[%s5775_s2 + $0x60] ss:$16 sps:$4 sm:$0xff]  }
 0x233   :  { %v5367_v58 = vld [vmem:[%s5775_s2 + $0x68] ss:$16 sps:$4 sm:$0xff]  }
 0x234   :  { %4338 = vpow2.f32 %v3716_v61  ;;  %v5381_v61 = vld [vmem:[%s5775_s2 + $0x4c] ss:$16 sps:$4 sm:$0xff]   ;;  %v5410_v5 = vld [vmem:[%s5775_s2 + $0x28] ss:$16 sps:$4 sm:$0xff]  }
 0x235   :  { %4340 = vtanh.f32 %v1286_v3  ;;  %v5398_v3 = vld [vmem:[%s5775_s2 + $0x24] ss:$16 sps:$4 sm:$0xff]  }
 0x236   :  { %4342 = vpow2.f32 %v3717_v4  ;;  %v5405_v4 = vld [vmem:[%s5775_s2 + $0x20] ss:$16 sps:$4 sm:$0xff]  }
 0x23b   :  { %v4333_v6 = vpop.eup %4332 }
 0x23c   :  { %v1298_v9 = vadd.f32 1.0, %v4333_v6  ;;  %v5415_v6 = vld [vmem:[%s5775_s2 + $0x2c] ss:$16 sps:$4 sm:$0xff]  }
 0x23d   :  { %v4335_v35 = vpop.eup %4334 }
 0x23e   :  { %4344 = vrcp.f32 %v1298_v9  ;;  %v1310_v63 = vadd.f32 1.0, %v4335_v35  ;;  %v5426_v9 = vld [vmem:[%s5775_s2 + $0xc] ss:$16 sps:$4 sm:$0xff]   ;;  %v5434_v35 = vld [vmem:[%s5775_s2] ss:$16 sps:$4 sm:$0xff]  }
 0x23f   :  { %v4337_v11 = vpop.eup %4336  ;;  %4346 = vtanh.f32 %v1290_v7  ;;  %v5421_v7 = vld [vmem:[%s5775_s2 + $0x4] ss:$16 sps:$4 sm:$0xff]  }
 0x240   :  { %4348 = vrcp.f32 %v1310_v63  ;;  %v1299_v52 = vadd.f32 1.0, %v4337_v11 }
 0x241   :  { %v4339_v24 = vpop.eup %4338  ;;  %4350 = vpow2.f32 %v3718_v43  ;;  %v5439_v43 = vld [vmem:[%s5775_s2 + $0x8] ss:$16 sps:$4 sm:$0xff]  }
 0x242   :  { %4352 = vrcp.f32 %v1299_v52  ;;  %v1311_v36 = vadd.f32 1.0, %v4339_v24  ;;  %v4341_v12 = vpop.eup %4340 }
 0x243   :  { %v4343_v30 = vpop.eup %4342 }
 0x244   :  { %4354 = vrcp.f32 %v1311_v36  ;;  %v1324_v23 = vadd.f32 1.0, %v4343_v30 }
 0x246   :  { %4356 = vrcp.f32 %v1324_v23 }
 0x24b   :  { %v4345_v21 = vpop.eup %4344 }
 0x24c   :  { %v4347_v0 = vpop.eup %4346  ;;  %v1332_v31 = vmul.f32 %v4345_v21, %v4341_v12 }
 0x24d   :  { %v4349_v1 = vpop.eup %4348 }
 0x24e   :  { %v4351_v18 = vpop.eup %4350  ;;  %v1330_v32 = vmul.f32 %v4349_v1, %v5190_v33 }
 0x24f   :  { %v4353_v60 = vpop.eup %4352  ;;  %v1325_v26 = vadd.f32 1.0, %v4351_v18 }
 0x250   :  { %v5262_v29 = vadd.f32 %v1332_v31, %v1330_v32  ;;  %v1333_v10 = vmul.f32 %v4353_v60, %v4347_v0  ;;  %v5831_v31 = vld [vmem:[#allocation8_spill] sm:$0xff]  ;;  %v5832_v60 = vld [vmem:[#allocation10_spill] sm:$0xff] }
 0x251   :  { %v4355_v27 = vpop.eup %4354 }
 0x252   :  { %v1331_v8 = vmul.f32 %v4355_v27, %v5193_v22  ;;  %4358 = vtanh.f32 %v5262_v29 }
 0x253   :  { %4360 = vrcp.f32 %v1325_v26  ;;  %v4357_v37 = vpop.eup %4356 }
 0x254   :  { %v5266_v40 = vadd.f32 %v1333_v10, %v1331_v8 }
 0x256   :  { %4362 = vtanh.f32 %v5266_v40 }
 0x25f   :  { %v4359_v20 = vpop.eup %4358 }
 0x260   :  { %v4361_v33 = vpop.eup %4360  ;;  %v1338_v19 = vmul.f32 %v4359_v20, %v4357_v37  ;;  %v5834_v37 = vld [vmem:[#allocation6_spill] sm:$0xff] }
 0x263   :  { %v4363_v57 = vpop.eup %4362 }
 0x264   :  { %v1339_v13 = vmul.f32 %v4363_v57, %v4361_v33  ;;  %v5835_v33 = vld [vmem:[#allocation11_spill] sm:$0xff] }
 0x266   :  { %v4017_v14 = vpack.c.bf16 %v1339_v13, %v1338_v19  ;;  %v5836_v13 = vld [vmem:[#allocation9_spill] sm:$0xff] }
 0x268   :  { %4084 = vst [vmem:[%s5779_s6 + $0x8] sm:$0xff] %v4017_v14   ;;  %4023 = vst [vmem:[#allocation5] sm:$0xff] %v4017_v14  }
 0x26f   :  { %v4204_v22 = vld [vmem:[#allocation5] sm:$0xff]  }
 0x270   :  { %1601 = vmatmul.mubr.bf16.vlgmr.msra.gmra.mxu0 %v4204_v22  ;;  %1644 = vmatmul.mubr.bf16.vlgmr.msra.gmra.mxu1 %v4204_v22 }
 0x271   :  { %1939 = vmatpush1.bf16.msra.mxu0 %v5224_v39  ;;  %1970 = vmatprep.mubr.bf16.mxu0 %v5830_v34 }
 0x272   :  { %1940 = vmatprep.subr.bf16.mxu0 %v5231_v42  ;;  %2013 = vmatprep.mubr.bf16.mxu1 %v5830_v34 }
 0x273   :  { %1982 = vmatpush1.bf16.msra.mxu1 %v5285_v16 }
 0x274   :  { %1983 = vmatprep.subr.bf16.mxu1 %v5292_v28 }
 0x275   :  { %1941 = vmatpush1.bf16.msra.mxu0 %v5236_v45 }
 0x276   :  { %1942 = vmatprep.subr.bf16.mxu0 %v5304_v44 }
 0x277   :  { %1984 = vmatpush1.bf16.msra.mxu1 %v5297_v41 }
 0x278   :  { %1985 = vmatprep.subr.bf16.mxu1 %v5309_v46 }
 0x279   :  { %1943 = vmatpush1.bf16.msra.mxu0 %v5314_v47 }
 0x27a   :  { %1944 = vmatprep.subr.bf16.mxu0 %v5328_v49 }
 0x27b   :  { %1986 = vmatpush1.bf16.msra.mxu1 %v5319_v48 }
 0x27c   :  { %1987 = vmatprep.subr.bf16.mxu1 %v5333_v50 }
 0x27d   :  { %1945 = vmatpush1.bf16.msra.mxu0 %v5338_v51 }
 0x27e   :  { %1946 = vmatprep.subr.bf16.mxu0 %v5352_v54 }
 0x27f   :  { %1988 = vmatpush1.bf16.msra.mxu1 %v5343_v53 }
 0x280   :  { %1989 = vmatprep.subr.bf16.mxu1 %v5357_v55 }
 0x281   :  { %1947 = vmatpush1.bf16.msra.mxu0 %v5362_v56 }
 0x282   :  { %1948 = vmatprep.subr.bf16.mxu0 %v5376_v59 }
 0x283   :  { %1990 = vmatpush1.bf16.msra.mxu1 %v5367_v58 }
 0x284   :  { %1991 = vmatprep.subr.bf16.mxu1 %v5381_v61 }
 0x285   :  { %1949 = vmatpush1.bf16.msra.mxu0 %v5386_v62 }
 0x286   :  { %1950 = vmatprep.subr.bf16.mxu0 %v5398_v3 }
 0x287   :  { %1992 = vmatpush1.bf16.msra.mxu1 %v5391_v2 }
 0x288   :  { %1993 = vmatprep.subr.bf16.mxu1 %v5415_v6 }
 0x289   :  { %1951 = vmatpush1.bf16.msra.mxu0 %v5405_v4 }
 0x28a   :  { %1952 = vmatprep.subr.bf16.mxu0 %v5421_v7 }
 0x28b   :  { %1994 = vmatpush1.bf16.msra.mxu1 %v5410_v5 }
 0x28c   :  { %1995 = vmatprep.subr.bf16.mxu1 %v5426_v9 }
 0x28d   :  { %1953 = vmatpush1.bf16.msra.mxu0 %v5434_v35 }
 0x28e   :  { %2308 = vmatprep.subr.bf16.mxu0 %v5219_v38 }
 0x28f   :  { %1996 = vmatpush1.bf16.msra.mxu1 %v5439_v43 }
 0x290   :  { %2351 = vmatprep.subr.bf16.mxu1 %v5280_v17 }
 0x330   :  { %v1602_v63 = vpop.f32.mrf.mxu0  ;;  %v1645_v52 = vpop.f32.mrf.mxu1 }
 0x331   :  { %v1654_v11 = vadd.f32 %v1602_v63, %v5025_v15  ;;  %v5833_v15 = vld [vmem:[#allocation7_spill] sm:$0xff] }
 0x332   :  { %v1604_v24 = vpop.f32.mrf.mxu0  ;;  %v1647_v0 = vpop.f32.mrf.mxu1 }
 0x333   :  { %v3756_v36 = vmul.f32 -1.442695, %v1654_v11  ;;  %v1655_v12 = vadd.f32 %v1604_v24, %v5031_v25  ;;  %v1657_v26 = vadd.f32 %v1647_v0, %v5833_v15  ;;  %v1656_v25 = vadd.f32 %v1645_v52, %v5834_v37 }
 0x334   :  { %v1606_v30 = vpop.f32.mrf.mxu0  ;;  %v1649_v10 = vpop.f32.mrf.mxu1 }
 0x335   :  { %4364 = vpow2.f32 %v3756_v36  ;;  %v3758_v21 = vmul.f32 -1.442695, %v1655_v12  ;;  %v1658_v1 = vadd.f32 %v1606_v30, %v5831_v31  ;;  %v3760_v20 = vmul.f32 -1.442695, %v1657_v26 }
 0x336   :  { %v1608_v18 = vpop.f32.mrf.mxu0  ;;  %v1651_v8 = vpop.f32.mrf.mxu1  ;;  %v1660_v14 = vadd.f32 %v1649_v10, %v5836_v13 }
 0x337   :  { %4366 = vpow2.f32 %v3758_v21  ;;  %v3757_v32 = vmul.f32 -1.442695, %v1658_v1  ;;  %v1659_v23 = vadd.f32 %v1608_v18, %v5832_v60  ;;  %v1661_v57 = vadd.f32 %v1651_v8, %v5835_v33 }
 0x339   :  { %4368 = vpow2.f32 %v3757_v32  ;;  %v3759_v27 = vmul.f32 -1.442695, %v1659_v23  ;;  %v3761_v11 = vmul.f32 -1.442695, %v1661_v57 }
 0x33b   :  { %4370 = vpow2.f32 %v3759_v27 }
 0x33c   :  { %4372 = vtanh.f32 %v1656_v25 }
 0x33d   :  { %4374 = vpow2.f32 %v3760_v20 }
 0x342   :  { %v4365_v19 = vpop.eup %4364 }
 0x343   :  { %v1668_v22 = vadd.f32 1.0, %v4365_v19 }
 0x344   :  { %v4367_v63 = vpop.eup %4366 }
 0x345   :  { %4376 = vrcp.f32 %v1668_v22  ;;  %v1680_v24 = vadd.f32 1.0, %v4367_v63 }
 0x346   :  { %v4369_v36 = vpop.eup %4368  ;;  %4378 = vtanh.f32 %v1660_v14 }
 0x347   :  { %4380 = vrcp.f32 %v1680_v24  ;;  %v1669_v12 = vadd.f32 1.0, %v4369_v36 }
 0x348   :  { %v4371_v30 = vpop.eup %4370  ;;  %4382 = vpow2.f32 %v3761_v11  ;;  %v5837_v11 = vld [vmem:[#allocation12_spill] sm:$0xff] }
 0x349   :  { %4384 = vrcp.f32 %v1669_v12  ;;  %v1681_v52 = vadd.f32 1.0, %v4371_v30  ;;  %v4373_v21 = vpop.eup %4372 }
 0x34a   :  { %v4375_v0 = vpop.eup %4374 }
 0x34b   :  { %4386 = vrcp.f32 %v1681_v52  ;;  %v1694_v27 = vadd.f32 1.0, %v4375_v0  ;;  %v5838_v52 = vld [vmem:[#allocation14_spill] sm:$0xff] }
 0x34d   :  { %4388 = vrcp.f32 %v1694_v27 }
 0x352   :  { %v4377_v31 = vpop.eup %4376 }
 0x353   :  { %v4379_v1 = vpop.eup %4378  ;;  %v1702_v18 = vmul.f32 %v4377_v31, %v4373_v21 }
 0x354   :  { %v4381_v32 = vpop.eup %4380 }
 0x355   :  { %v4383_v60 = vpop.eup %4382  ;;  %v1700_v23 = vmul.f32 %v4381_v32, %v5262_v29 }
 0x356   :  { %v4385_v10 = vpop.eup %4384  ;;  %v1695_v37 = vadd.f32 1.0, %v4383_v60 }
 0x357   :  { %v5456_v15 = vadd.f32 %v1702_v18, %v1700_v23  ;;  %v1703_v26 = vmul.f32 %v4385_v10, %v4379_v1  ;;  %v5839_v18 = vld [vmem:[#allocation16_spill] sm:$0xff] }
 0x358   :  { %v4387_v8 = vpop.eup %4386 }
 0x359   :  { %v1701_v25 = vmul.f32 %v4387_v8, %v5266_v40  ;;  %4390 = vtanh.f32 %v5456_v15  ;;  %v5841_v8 = vld [vmem:[#allocation15_spill] sm:$0xff] }
 0x35a   :  { %4392 = vrcp.f32 %v1695_v37  ;;  %v4389_v33 = vpop.eup %4388 }
 0x35b   :  { %v5460_v20 = vadd.f32 %v1703_v26, %v1701_v25 }
 0x35d   :  { %4394 = vtanh.f32 %v5460_v20 }
 0x366   :  { %v4391_v57 = vpop.eup %4390 }
 0x367   :  { %v4393_v29 = vpop.eup %4392  ;;  %v1708_v13 = vmul.f32 %v4391_v57, %v4389_v33  ;;  %v5842_v33 = vld [vmem:[#allocation13_spill] sm:$0xff] }
 0x36a   :  { %v4395_v19 = vpop.eup %4394 }
 0x36b   :  { %v1709_v14 = vmul.f32 %v4395_v19, %v4393_v29  ;;  %v5843_v19 = vld [vmem:[#allocation19_spill] sm:$0xff] }
 0x36d   :  { %v4027_v22 = vpack.c.bf16 %v1709_v14, %v1708_v13 }
 0x36f   :  { %4085 = vst [vmem:[%s5779_s6 + $0x10] sm:$0xff] %v4027_v22   ;;  %4033 = vst [vmem:[#allocation5] sm:$0xff] %v4027_v22   ;;  %v5844_v22 = vld [vmem:[#allocation17_spill] sm:$0xff] }
 0x376   :  { %v4247_v40 = vld [vmem:[#allocation5] sm:$0xff]  }
 0x377   :  { %1971 = vmatmul.mubr.bf16.vlgmr.msra.gmra.mxu0 %v4247_v40  ;;  %2014 = vmatmul.mubr.bf16.vlgmr.msra.gmra.mxu1 %v4247_v40 }
 0x378   :  { %2309 = vmatpush1.bf16.msra.mxu0 %v5224_v39  ;;  %2352 = vmatpush1.bf16.msra.mxu1 %v5285_v16 }
 0x379   :  { %2310 = vmatprep.subr.bf16.mxu0 %v5231_v42  ;;  %2353 = vmatprep.subr.bf16.mxu1 %v5292_v28 }
 0x37a   :  { %2340 = vmatprep.mubr.bf16.mxu0 %v5830_v34  ;;  %2383 = vmatprep.mubr.bf16.mxu1 %v5830_v34 }
 0x37c   :  { %2311 = vmatpush1.bf16.msra.mxu0 %v5236_v45  ;;  %2354 = vmatpush1.bf16.msra.mxu1 %v5297_v41 }
 0x37d   :  { %2312 = vmatprep.subr.bf16.mxu0 %v5304_v44  ;;  %2355 = vmatprep.subr.bf16.mxu1 %v5309_v46 }
 0x380   :  { %2313 = vmatpush1.bf16.msra.mxu0 %v5314_v47  ;;  %2356 = vmatpush1.bf16.msra.mxu1 %v5319_v48 }
 0x381   :  { %2314 = vmatprep.subr.bf16.mxu0 %v5328_v49  ;;  %2357 = vmatprep.subr.bf16.mxu1 %v5333_v50 }
 0x384   :  { %2315 = vmatpush1.bf16.msra.mxu0 %v5338_v51  ;;  %2358 = vmatpush1.bf16.msra.mxu1 %v5343_v53 }
 0x385   :  { %2316 = vmatprep.subr.bf16.mxu0 %v5352_v54  ;;  %2359 = vmatprep.subr.bf16.mxu1 %v5357_v55 }
 0x388   :  { %2317 = vmatpush1.bf16.msra.mxu0 %v5362_v56  ;;  %2360 = vmatpush1.bf16.msra.mxu1 %v5367_v58 }
 0x389   :  { %2318 = vmatprep.subr.bf16.mxu0 %v5376_v59  ;;  %2361 = vmatprep.subr.bf16.mxu1 %v5381_v61 }
 0x38c   :  { %2319 = vmatpush1.bf16.msra.mxu0 %v5386_v62  ;;  %2362 = vmatpush1.bf16.msra.mxu1 %v5391_v2 }
 0x38d   :  { %2320 = vmatprep.subr.bf16.mxu0 %v5398_v3  ;;  %2363 = vmatprep.subr.bf16.mxu1 %v5415_v6 }
 0x390   :  { %2321 = vmatpush1.bf16.msra.mxu0 %v5405_v4  ;;  %2364 = vmatpush1.bf16.msra.mxu1 %v5410_v5 }
 0x391   :  { %2322 = vmatprep.subr.bf16.mxu0 %v5421_v7  ;;  %2365 = vmatprep.subr.bf16.mxu1 %v5426_v9 }
 0x394   :  { %2323 = vmatpush1.bf16.msra.mxu0 %v5434_v35  ;;  %2366 = vmatpush1.bf16.msra.mxu1 %v5439_v43 }
 0x395   :  { %2678 = vmatprep.subr.bf16.mxu0 %v5219_v38  ;;  %2721 = vmatprep.subr.bf16.mxu1 %v5280_v17  ;;  %v5840_v38 = vld [vmem:[#allocation18_spill] sm:$0xff] }
 0x437   :  { %v1972_v63 = vpop.f32.mrf.mxu0  ;;  %v2015_v36 = vpop.f32.mrf.mxu1 }
 0x438   :  { %v2024_v24 = vadd.f32 %v1972_v63, %v5837_v11  ;;  %v2026_v57 = vadd.f32 %v2015_v36, %v5842_v33 }
 0x439   :  { %v1974_v12 = vpop.f32.mrf.mxu0  ;;  %v2017_v1 = vpop.f32.mrf.mxu1 }
 0x43a   :  { %v3799_v30 = vmul.f32 -1.442695, %v2024_v24  ;;  %v2025_v21 = vadd.f32 %v1974_v12, %v5838_v52  ;;  %v2027_v37 = vadd.f32 %v2017_v1, %v5841_v8 }
 0x43b   :  { %v1976_v0 = vpop.f32.mrf.mxu0  ;;  %v2019_v27 = vpop.f32.mrf.mxu1 }
 0x43c   :  { %4396 = vpow2.f32 %v3799_v30  ;;  %v3801_v31 = vmul.f32 -1.442695, %v2025_v21  ;;  %v2028_v32 = vadd.f32 %v1976_v0, %v5839_v18  ;;  %v3803_v29 = vmul.f32 -1.442695, %v2027_v37 }
 0x43d   :  { %v1978_v60 = vpop.f32.mrf.mxu0  ;;  %v2021_v25 = vpop.f32.mrf.mxu1  ;;  %v2030_v40 = vadd.f32 %v2019_v27, %v5844_v22 }
 0x43e   :  { %4398 = vpow2.f32 %v3801_v31  ;;  %v3800_v23 = vmul.f32 -1.442695, %v2028_v32  ;;  %v2029_v10 = vadd.f32 %v1978_v60, %v5840_v38  ;;  %v2031_v13 = vadd.f32 %v2021_v25, %v5843_v19 }
 0x440   :  { %4400 = vpow2.f32 %v3800_v23  ;;  %v3802_v26 = vmul.f32 -1.442695, %v2029_v10  ;;  %v3804_v24 = vmul.f32 -1.442695, %v2031_v13 }
 0x442   :  { %4402 = vpow2.f32 %v3802_v26 }
 0x443   :  { %4404 = vtanh.f32 %v2026_v57 }
 0x444   :  { %4406 = vpow2.f32 %v3803_v29 }
 0x449   :  { %v4397_v14 = vpop.eup %4396 }
 0x44a   :  { %v2038_v63 = vadd.f32 1.0, %v4397_v14 }
 0x44b   :  { %v4399_v11 = vpop.eup %4398 }
 0x44c   :  { %4408 = vrcp.f32 %v2038_v63  ;;  %v2050_v12 = vadd.f32 1.0, %v4399_v11 }
 0x44d   :  { %v4401_v30 = vpop.eup %4400  ;;  %4410 = vtanh.f32 %v2030_v40 }
 0x44e   :  { %4412 = vrcp.f32 %v2050_v12  ;;  %v2039_v52 = vadd.f32 1.0, %v4401_v30  ;;  %v5846_v12 = vld [vmem:[#allocation22_spill] sm:$0xff] }
 0x44f   :  { %v4403_v21 = vpop.eup %4402  ;;  %4414 = vpow2.f32 %v3804_v24 }
 0x450   :  { %4416 = vrcp.f32 %v2039_v52  ;;  %v2051_v36 = vadd.f32 1.0, %v4403_v21  ;;  %v4405_v0 = vpop.eup %4404 }
 0x451   :  { %v4407_v31 = vpop.eup %4406 }
 0x452   :  { %4418 = vrcp.f32 %v2051_v36  ;;  %v2064_v27 = vadd.f32 1.0, %v4407_v31 }
 0x454   :  { %4420 = vrcp.f32 %v2064_v27 }
 0x459   :  { %v4409_v1 = vpop.eup %4408 }
 0x45a   :  { %v4411_v18 = vpop.eup %4410  ;;  %v2072_v32 = vmul.f32 %v4409_v1, %v4405_v0  ;;  %v5847_v0 = vld [vmem:[#allocation24_spill] sm:$0xff] }
 0x45b   :  { %v4413_v60 = vpop.eup %4412 }
 0x45c   :  { %v4415_v23 = vpop.eup %4414  ;;  %v2070_v38 = vmul.f32 %v4413_v60, %v5456_v15 }
 0x45d   :  { %v4417_v10 = vpop.eup %4416  ;;  %v2065_v25 = vadd.f32 1.0, %v4415_v23 }
 0x45e   :  { %v5509_v26 = vadd.f32 %v2072_v32, %v2070_v38  ;;  %v2073_v8 = vmul.f32 %v4417_v10, %v4411_v18  ;;  %v5848_v32 = vld [vmem:[#allocation26_spill] sm:$0xff]  ;;  %v5849_v38 = vld [vmem:[#allocation23_spill] sm:$0xff] }
 0x45f   :  { %v4419_v37 = vpop.eup %4418 }
 0x460   :  { %v2071_v33 = vmul.f32 %v4419_v37, %v5460_v20  ;;  %4422 = vtanh.f32 %v5509_v26 }
 0x461   :  { %4424 = vrcp.f32 %v2065_v25  ;;  %v4421_v29 = vpop.eup %4420 }
 0x462   :  { %v5513_v57 = vadd.f32 %v2073_v8, %v2071_v33  ;;  %v5850_v8 = vld [vmem:[#allocation21_spill] sm:$0xff]  ;;  %v5851_v33 = vld [vmem:[#allocation27_spill] sm:$0xff] }
 0x464   :  { %4426 = vtanh.f32 %v5513_v57 }
 0x46d   :  { %v4423_v19 = vpop.eup %4422 }
 0x46e   :  { %v4425_v15 = vpop.eup %4424  ;;  %v2078_v14 = vmul.f32 %v4423_v19, %v4421_v29 }
 0x471   :  { %v4427_v13 = vpop.eup %4426 }
 0x472   :  { %v2079_v22 = vmul.f32 %v4427_v13, %v4425_v15  ;;  %v5852_v15 = vld [vmem:[#allocation25_spill] sm:$0xff] }
 0x474   :  { %v4037_v40 = vpack.c.bf16 %v2079_v22, %v2078_v14 }
 0x476   :  { %4086 = vst [vmem:[%s5779_s6 + $0x18] sm:$0xff] %v4037_v40   ;;  %4043 = vst [vmem:[#allocation5] sm:$0xff] %v4037_v40  }
 0x47d   :  { %v4248_v20 = vld [vmem:[#allocation5] sm:$0xff]  }
 0x47e   :  { %2341 = vmatmul.mubr.bf16.vlgmr.msra.gmra.mxu0 %v4248_v20  ;;  %2384 = vmatmul.mubr.bf16.vlgmr.msra.gmra.mxu1 %v4248_v20 }
 0x47f   :  { %2679 = vmatpush1.bf16.msra.mxu0 %v5224_v39  ;;  %2722 = vmatpush1.bf16.msra.mxu1 %v5285_v16 }
 0x480   :  { %2680 = vmatprep.subr.bf16.mxu0 %v5231_v42  ;;  %2723 = vmatprep.subr.bf16.mxu1 %v5292_v28  ;;  %v5845_v42 = vld [vmem:[#allocation20_spill] sm:$0xff] }
 0x481   :  { %2710 = vmatprep.mubr.bf16.mxu0 %v5830_v34  ;;  %2753 = vmatprep.mubr.bf16.mxu1 %v5830_v34 }
 0x483   :  { %2681 = vmatpush1.bf16.msra.mxu0 %v5236_v45  ;;  %2724 = vmatpush1.bf16.msra.mxu1 %v5297_v41 }
 0x484   :  { %2682 = vmatprep.subr.bf16.mxu0 %v5304_v44  ;;  %2725 = vmatprep.subr.bf16.mxu1 %v5309_v46 }
 0x487   :  { %2683 = vmatpush1.bf16.msra.mxu0 %v5314_v47  ;;  %2726 = vmatpush1.bf16.msra.mxu1 %v5319_v48 }
 0x488   :  { %2684 = vmatprep.subr.bf16.mxu0 %v5328_v49  ;;  %2727 = vmatprep.subr.bf16.mxu1 %v5333_v50 }
 0x48b   :  { %2685 = vmatpush1.bf16.msra.mxu0 %v5338_v51  ;;  %2728 = vmatpush1.bf16.msra.mxu1 %v5343_v53 }
 0x48c   :  { %2686 = vmatprep.subr.bf16.mxu0 %v5352_v54  ;;  %2729 = vmatprep.subr.bf16.mxu1 %v5357_v55 }
 0x48f   :  { %2687 = vmatpush1.bf16.msra.mxu0 %v5362_v56  ;;  %2730 = vmatpush1.bf16.msra.mxu1 %v5367_v58 }
 0x490   :  { %2688 = vmatprep.subr.bf16.mxu0 %v5376_v59  ;;  %2731 = vmatprep.subr.bf16.mxu1 %v5381_v61 }
 0x493   :  { %2689 = vmatpush1.bf16.msra.mxu0 %v5386_v62  ;;  %2732 = vmatpush1.bf16.msra.mxu1 %v5391_v2 }
 0x494   :  { %2690 = vmatprep.subr.bf16.mxu0 %v5398_v3  ;;  %2733 = vmatprep.subr.bf16.mxu1 %v5415_v6 }
 0x497   :  { %2691 = vmatpush1.bf16.msra.mxu0 %v5405_v4  ;;  %2734 = vmatpush1.bf16.msra.mxu1 %v5410_v5 }
 0x498   :  { %2692 = vmatprep.subr.bf16.mxu0 %v5421_v7  ;;  %2735 = vmatprep.subr.bf16.mxu1 %v5426_v9 }
 0x49b   :  { %2693 = vmatpush1.bf16.msra.mxu0 %v5434_v35  ;;  %2736 = vmatpush1.bf16.msra.mxu1 %v5439_v43 }
 0x49c   :  { %3091 = vmatprep.subr.bf16.mxu1 %v5280_v17 }
 0x53e   :  { %v2342_v39 = vpop.f32.mrf.mxu0  ;;  %v2385_v63 = vpop.f32.mrf.mxu1 }
 0x53f   :  { %v2394_v45 = vadd.f32 %v2342_v39, %v5845_v42  ;;  %v2396_v37 = vadd.f32 %v2385_v63, %v5850_v8 }
 0x540   :  { %v2344_v11 = vpop.f32.mrf.mxu0  ;;  %v2387_v36 = vpop.f32.mrf.mxu1 }
 0x541   :  { %v3842_v24 = vmul.f32 -1.442695, %v2394_v45  ;;  %v2395_v30 = vadd.f32 %v2344_v11, %v5846_v12  ;;  %v2397_v10 = vadd.f32 %v2387_v36, %v5849_v38 }
 0x542   :  { %v2346_v52 = vpop.f32.mrf.mxu0  ;;  %v2389_v17 = vpop.f32.mrf.mxu1 }
 0x543   :  { %4428 = vpow2.f32 %v3842_v24  ;;  %v3844_v21 = vmul.f32 -1.442695, %v2395_v30  ;;  %v2398_v31 = vadd.f32 %v2346_v52, %v5847_v0  ;;  %v3846_v25 = vmul.f32 -1.442695, %v2397_v10 }
 0x544   :  { %v2348_v1 = vpop.f32.mrf.mxu0  ;;  %v2391_v27 = vpop.f32.mrf.mxu1  ;;  %v2400_v13 = vadd.f32 %v2389_v17, %v5852_v15  ;;  %v5859_v15 = vld [vmem:[#allocation35_spill] sm:$0xff] }
 0x545   :  { %4430 = vpow2.f32 %v3844_v21  ;;  %v3843_v18 = vmul.f32 -1.442695, %v2398_v31  ;;  %v2399_v60 = vadd.f32 %v2348_v1, %v5848_v32  ;;  %v2401_v29 = vadd.f32 %v2391_v27, %v5851_v33 }
 0x547   :  { %4432 = vpow2.f32 %v3843_v18  ;;  %v3845_v23 = vmul.f32 -1.442695, %v2399_v60  ;;  %v3847_v40 = vmul.f32 -1.442695, %v2401_v29 }
 0x549   :  { %4434 = vpow2.f32 %v3845_v23 }
 0x54a   :  { %4436 = vtanh.f32 %v2396_v37 }
 0x54b   :  { %4438 = vpow2.f32 %v3846_v25 }
 0x550   :  { %v4429_v19 = vpop.eup %4428 }
 0x551   :  { %v2408_v14 = vadd.f32 1.0, %v4429_v19 }
 0x552   :  { %v4431_v22 = vpop.eup %4430 }
 0x553   :  { %4440 = vrcp.f32 %v2408_v14  ;;  %v2420_v20 = vadd.f32 1.0, %v4431_v22  ;;  %v5860_v22 = vld [vmem:[#allocation33_spill] sm:$0xff] }
 0x554   :  { %v4433_v39 = vpop.eup %4432  ;;  %4442 = vtanh.f32 %v2400_v13 }
 0x555   :  { %4444 = vrcp.f32 %v2420_v20  ;;  %v2409_v42 = vadd.f32 1.0, %v4433_v39 }
 0x556   :  { %v4435_v45 = vpop.eup %4434  ;;  %4446 = vpow2.f32 %v3847_v40 }
 0x557   :  { %4448 = vrcp.f32 %v2409_v42  ;;  %v2421_v63 = vadd.f32 1.0, %v4435_v45  ;;  %v4437_v11 = vpop.eup %4436 }
 0x558   :  { %v4439_v24 = vpop.eup %4438 }
 0x559   :  { %4450 = vrcp.f32 %v2421_v63  ;;  %v2434_v1 = vadd.f32 1.0, %v4439_v24 }
 0x55b   :  { %4452 = vrcp.f32 %v2434_v1 }
 0x560   :  { %v4441_v12 = vpop.eup %4440 }
 0x561   :  { %v4443_v30 = vpop.eup %4442  ;;  %v2442_v52 = vmul.f32 %v4441_v12, %v4437_v11 }
 0x562   :  { %v4445_v21 = vpop.eup %4444 }
 0x563   :  { %v4447_v36 = vpop.eup %4446  ;;  %v2440_v0 = vmul.f32 %v4445_v21, %v5509_v26 }
 0x564   :  { %v4449_v31 = vpop.eup %4448  ;;  %v2435_v17 = vadd.f32 1.0, %v4447_v36 }
 0x565   :  { %v5561_v18 = vadd.f32 %v2442_v52, %v2440_v0  ;;  %v2443_v32 = vmul.f32 %v4449_v31, %v4443_v30 }
 0x566   :  { %v4451_v60 = vpop.eup %4450 }
 0x567   :  { %v2441_v23 = vmul.f32 %v4451_v60, %v5513_v57  ;;  %4454 = vtanh.f32 %v5561_v18 }
 0x568   :  { %4456 = vrcp.f32 %v2435_v17  ;;  %v4453_v10 = vpop.eup %4452 }
 0x569   :  { %v5565_v38 = vadd.f32 %v2443_v32, %v2441_v23 }
 0x56b   :  { %4458 = vtanh.f32 %v5565_v38 }
 0x574   :  { %v4455_v27 = vpop.eup %4454 }
 0x575   :  { %v4457_v26 = vpop.eup %4456  ;;  %v2448_v37 = vmul.f32 %v4455_v27, %v4453_v10 }
 0x578   :  { %v4459_v8 = vpop.eup %4458 }
 0x579   :  { %v2449_v25 = vmul.f32 %v4459_v8, %v4457_v26 }
 0x57b   :  { %v4047_v33 = vpack.c.bf16 %v2449_v25, %v2448_v37 }
 0x57d   :  { %4087 = vst [vmem:[%s5779_s6 + $0x20] sm:$0xff] %v4047_v33   ;;  %4053 = vst [vmem:[#allocation5] sm:$0xff] %v4047_v33  }
 0x584   :  { %v4249_v57 = vld [vmem:[#allocation5] sm:$0xff]  }
 0x585   :  { %2711 = vmatmul.mubr.bf16.vlgmr.msra.gmra.mxu0 %v4249_v57  ;;  %2754 = vmatmul.mubr.bf16.vlgmr.msra.gmra.mxu1 %v4249_v57 }
 0x586   :  { %3092 = vmatpush1.bf16.msra.mxu1 %v5285_v16  ;;  %3080 = vmatprep.mubr.bf16.mxu0 %v5830_v34  ;;  %v4252_v16 = vld [vmem:[%s5775_s2 + $0xe4] ss:$16 sps:$4 sm:$0xff]  }
 0x587   :  { %3093 = vmatprep.subr.bf16.mxu1 %v5292_v28  ;;  %3123 = vmatprep.mubr.bf16.mxu1 %v5830_v34  ;;  %v5594_v28 = vld [vmem:[%s5775_s2 + $0xe0] ss:$16 sps:$4 sm:$0xff]  }
 0x588   :  { %3048 = vmatprep.subr.bf16.mxu0 %v4252_v16 }
 0x589   :  { %3049 = vmatpush1.bf16.msra.mxu0 %v5594_v28 }
 0x58a   :  { %3094 = vmatpush1.bf16.msra.mxu1 %v5297_v41  ;;  %v5600_v41 = vld [vmem:[%s5775_s2 + $0xc4] ss:$16 sps:$4 sm:$0xff]  }
 0x58b   :  { %3095 = vmatprep.subr.bf16.mxu1 %v5309_v46  ;;  %v5605_v46 = vld [vmem:[%s5775_s2 + $0xc0] ss:$16 sps:$4 sm:$0xff]   ;;  %3050 = vmatprep.subr.bf16.mxu0 %v5600_v41 }
 0x58d   :  { %3051 = vmatpush1.bf16.msra.mxu0 %v5605_v46 }
 0x58e   :  { %3096 = vmatpush1.bf16.msra.mxu1 %v5319_v48  ;;  %3052 = vmatprep.subr.bf16.mxu0 %v5304_v44 }
 0x58f   :  { %3097 = vmatprep.subr.bf16.mxu1 %v5333_v50 }
 0x591   :  { %3053 = vmatpush1.bf16.msra.mxu0 %v5314_v47  ;;  %v5853_v47 = vld [vmem:[#allocation28_spill] sm:$0xff] }
 0x592   :  { %3098 = vmatpush1.bf16.msra.mxu1 %v5343_v53  ;;  %3054 = vmatprep.subr.bf16.mxu0 %v5328_v49  ;;  %v5854_v53 = vld [vmem:[#allocation30_spill] sm:$0xff] }
 0x593   :  { %3099 = vmatprep.subr.bf16.mxu1 %v5357_v55 }
 0x595   :  { %3055 = vmatpush1.bf16.msra.mxu0 %v5338_v51 }
 0x596   :  { %3100 = vmatpush1.bf16.msra.mxu1 %v5367_v58  ;;  %3056 = vmatprep.subr.bf16.mxu0 %v5352_v54 }
 0x597   :  { %3101 = vmatprep.subr.bf16.mxu1 %v5381_v61 }
 0x599   :  { %3057 = vmatpush1.bf16.msra.mxu0 %v5362_v56 }
 0x59a   :  { %3102 = vmatpush1.bf16.msra.mxu1 %v5391_v2  ;;  %3058 = vmatprep.subr.bf16.mxu0 %v5376_v59  ;;  %v5855_v59 = vld [vmem:[#allocation32_spill] sm:$0xff] }
 0x59b   :  { %3103 = vmatprep.subr.bf16.mxu1 %v5415_v6 }
 0x59d   :  { %3059 = vmatpush1.bf16.msra.mxu0 %v5386_v62 }
 0x59e   :  { %3104 = vmatpush1.bf16.msra.mxu1 %v5410_v5  ;;  %3060 = vmatprep.subr.bf16.mxu0 %v5398_v3  ;;  %v5856_v3 = vld [vmem:[#allocation34_spill] sm:$0xff] }
 0x59f   :  { %3105 = vmatprep.subr.bf16.mxu1 %v5426_v9 }
 0x5a1   :  { %3061 = vmatpush1.bf16.msra.mxu0 %v5405_v4 }
 0x5a2   :  { %3106 = vmatpush1.bf16.msra.mxu1 %v5439_v43  ;;  %3062 = vmatprep.subr.bf16.mxu0 %v5421_v7  ;;  %v5857_v7 = vld [vmem:[#allocation31_spill] sm:$0xff]  ;;  %v5858_v43 = vld [vmem:[#allocation29_spill] sm:$0xff] }
 0x5a5   :  { %3063 = vmatpush1.bf16.msra.mxu0 %v5434_v35 }
 0x5a6   :  { %3418 = vmatprep.subr.bf16.mxu0 %v4252_v16 }
 0x645   :  { %v2712_v44 = vpop.f32.mrf.mxu0  ;;  %v2755_v49 = vpop.f32.mrf.mxu1 }
 0x646   :  { %v2764_v48 = vadd.f32 %v2712_v44, %v5853_v47  ;;  %v2766_v29 = vadd.f32 %v2755_v49, %v5858_v43  ;;  %v4257_v49 = vld [vmem:[%s5775_s2 + $0xe8] ss:$16 sps:$4 sm:$0xff]   ;;  %v4295_v43 = vld [vmem:[%s5775_s2 + $0x4] ss:$16 sps:$4 sm:$0xff]  }
 0x647   :  { %v2714_v50 = vpop.f32.mrf.mxu0  ;;  %v2757_v58 = vpop.f32.mrf.mxu1 }
 0x648   :  { %v3885_v51 = vmul.f32 -1.442695, %v2764_v48  ;;  %v2765_v54 = vadd.f32 %v2714_v50, %v5854_v53  ;;  %v2767_v9 = vadd.f32 %v2757_v58, %v5857_v7  ;;  %v4259_v48 = vld [vmem:[%s5775_s2 + $0xec] ss:$16 sps:$4 sm:$0xff]   ;;  %v4263_v50 = vld [vmem:[%s5775_s2 + $0xa0] ss:$16 sps:$4 sm:$0xff]  }
 0x649   :  { %v2716_v55 = vpop.f32.mrf.mxu0  ;;  %v2759_v5 = vpop.f32.mrf.mxu1  ;;  %3461 = vmatprep.subr.bf16.mxu1 %v4259_v48  ;;  %v4271_v53 = vld [vmem:[%s5775_s2 + $0x84] ss:$16 sps:$4 sm:$0xff]   ;;  %v4287_v7 = vld [vmem:[%s5775_s2 + $0x20] ss:$16 sps:$4 sm:$0xff]  }
 0x64a   :  { %4460 = vpow2.f32 %v3885_v51  ;;  %v3887_v56 = vmul.f32 -1.442695, %v2765_v54  ;;  %v2768_v61 = vadd.f32 %v2716_v55, %v5855_v59  ;;  %v3889_v19 = vmul.f32 -1.442695, %v2767_v9  ;;  %v4266_v51 = vld [vmem:[%s5775_s2 + $0xa8] ss:$16 sps:$4 sm:$0xff]  }
 0x64b   :  { %v2718_v62 = vpop.f32.mrf.mxu0  ;;  %v2761_v35 = vpop.f32.mrf.mxu1  ;;  %v2770_v40 = vadd.f32 %v2759_v5, %v5860_v22  ;;  %v4274_v54 = vld [vmem:[%s5775_s2 + $0x8c] ss:$16 sps:$4 sm:$0xff]   ;;  %v4269_v55 = vld [vmem:[%s5775_s2 + $0x80] ss:$16 sps:$4 sm:$0xff]   ;;  %v4277_v58 = vld [vmem:[%s5775_s2 + $0x64] ss:$16 sps:$4 sm:$0xff]  }
 0x64c   :  { %4462 = vpow2.f32 %v3887_v56  ;;  %v3886_v2 = vmul.f32 -1.442695, %v2768_v61  ;;  %v2769_v4 = vadd.f32 %v2718_v62, %v5856_v3  ;;  %v2771_v13 = vadd.f32 %v2761_v35, %v5859_v15  ;;  %v4272_v56 = vld [vmem:[%s5775_s2 + $0x88] ss:$16 sps:$4 sm:$0xff]   ;;  %v4280_v59 = vld [vmem:[%s5775_s2 + $0x6c] ss:$16 sps:$4 sm:$0xff]  }
 0x64d   :  { %v4275_v61 = vld [vmem:[%s5775_s2 + $0x60] ss:$16 sps:$4 sm:$0xff]   ;;  %v4278_v62 = vld [vmem:[%s5775_s2 + $0x68] ss:$16 sps:$4 sm:$0xff]   ;;  %v4286_v3 = vld [vmem:[%s5775_s2 + $0x4c] ss:$16 sps:$4 sm:$0xff]  }
 0x64e   :  { %4464 = vpow2.f32 %v3886_v2  ;;  %v3888_v6 = vmul.f32 -1.442695, %v2769_v4  ;;  %v3890_v42 = vmul.f32 -1.442695, %v2771_v13  ;;  %v4283_v2 = vld [vmem:[%s5775_s2 + $0x44] ss:$16 sps:$4 sm:$0xff]  }
 0x64f   :  { %v4281_v4 = vld [vmem:[%s5775_s2 + $0x40] ss:$16 sps:$4 sm:$0xff]   ;;  %v4284_v5 = vld [vmem:[%s5775_s2 + $0x48] ss:$16 sps:$4 sm:$0xff]   ;;  %v4292_v35 = vld [vmem:[%s5775_s2 + $0x2c] ss:$16 sps:$4 sm:$0xff]  }
 0x650   :  { %4466 = vpow2.f32 %v3888_v6  ;;  %v4289_v6 = vld [vmem:[%s5775_s2 + $0x24] ss:$16 sps:$4 sm:$0xff]   ;;  %v4290_v9 = vld [vmem:[%s5775_s2 + $0x28] ss:$16 sps:$4 sm:$0xff]  }
 0x651   :  { %4468 = vtanh.f32 %v2766_v29  ;;  %v4298_v29 = vld [vmem:[%s5775_s2 + $0xc] ss:$16 sps:$4 sm:$0xff]   ;;  %v4296_v15 = vld [vmem:[%s5775_s2 + $0x8] ss:$16 sps:$4 sm:$0xff]  }
 0x652   :  { %4470 = vpow2.f32 %v3889_v19  ;;  %v4293_v19 = vld [vmem:[%s5775_s2] ss:$16 sps:$4 sm:$0xff]  }
 0x657   :  { %v4461_v14 = vpop.eup %4460 }
 0x658   :  { %v2778_v20 = vadd.f32 1.0, %v4461_v14  ;;  %v5861_v14 = vld [vmem:[#allocation36_spill] sm:$0xff] }
 0x659   :  { %v4463_v39 = vpop.eup %4462 }
 0x65a   :  { %4472 = vrcp.f32 %v2778_v20  ;;  %v2790_v45 = vadd.f32 1.0, %v4463_v39 }
 0x65b   :  { %v4465_v63 = vpop.eup %4464  ;;  %4474 = vtanh.f32 %v2770_v40 }
 0x65c   :  { %4476 = vrcp.f32 %v2790_v45  ;;  %v2779_v11 = vadd.f32 1.0, %v4465_v63 }
 0x65d   :  { %v4467_v24 = vpop.eup %4466  ;;  %4478 = vpow2.f32 %v3890_v42  ;;  %v5862_v42 = vld [vmem:[#allocation38_spill] sm:$0xff] }
 0x65e   :  { %4480 = vrcp.f32 %v2779_v11  ;;  %v2791_v12 = vadd.f32 1.0, %v4467_v24  ;;  %v4469_v30 = vpop.eup %4468 }
 0x65f   :  { %v4471_v52 = vpop.eup %4470 }
 0x660   :  { %4482 = vrcp.f32 %v2791_v12  ;;  %v2804_v17 = vadd.f32 1.0, %v4471_v52  ;;  %v5863_v12 = vld [vmem:[#allocation40_spill] sm:$0xff] }
 0x662   :  { %4484 = vrcp.f32 %v2804_v17 }
 0x667   :  { %v4473_v21 = vpop.eup %4472 }
 0x668   :  { %v4475_v36 = vpop.eup %4474  ;;  %v2812_v0 = vmul.f32 %v4473_v21, %v4469_v30 }
 0x669   :  { %v4477_v31 = vpop.eup %4476 }
 0x66a   :  { %v4479_v1 = vpop.eup %4478  ;;  %v2810_v32 = vmul.f32 %v4477_v31, %v5561_v18 }
 0x66b   :  { %v4481_v60 = vpop.eup %4480  ;;  %v2805_v26 = vadd.f32 1.0, %v4479_v1 }
 0x66c   :  { %v5630_v23 = vadd.f32 %v2812_v0, %v2810_v32  ;;  %v2813_v10 = vmul.f32 %v4481_v60, %v4475_v36  ;;  %v5864_v36 = vld [vmem:[#allocation42_spill] sm:$0xff]  ;;  %v5865_v32 = vld [vmem:[#allocation39_spill] sm:$0xff] }
 0x66d   :  { %v4483_v27 = vpop.eup %4482 }
 0x66e   :  { %v2811_v8 = vmul.f32 %v4483_v27, %v5565_v38  ;;  %4486 = vtanh.f32 %v5630_v23 }
 0x66f   :  { %4488 = vrcp.f32 %v2805_v26  ;;  %v4485_v25 = vpop.eup %4484 }
 0x670   :  { %v5634_v37 = vadd.f32 %v2813_v10, %v2811_v8  ;;  %v5866_v10 = vld [vmem:[#allocation37_spill] sm:$0xff]  ;;  %v5867_v8 = vld [vmem:[#allocation43_spill] sm:$0xff] }
 0x672   :  { %4490 = vtanh.f32 %v5634_v37 }
 0x67b   :  { %v4487_v33 = vpop.eup %4486 }
 0x67c   :  { %v4489_v18 = vpop.eup %4488  ;;  %v2818_v16 = vmul.f32 %v4487_v33, %v4485_v25 }
 0x67f   :  { %v4491_v57 = vpop.eup %4490 }
 0x680   :  { %v2819_v44 = vmul.f32 %v4491_v57, %v4489_v18  ;;  %v5868_v18 = vld [vmem:[#allocation41_spill] sm:$0xff] }
 0x682   :  { %v4057_v47 = vpack.c.bf16 %v2819_v44, %v2818_v16 }
 0x684   :  { %4088 = vst [vmem:[%s5779_s6 + $0x28] sm:$0xff] %v4057_v47   ;;  %4063 = vst [vmem:[#allocation5] sm:$0xff] %v4057_v47  }
 0x68b   :  { %v4256_v38 = vld [vmem:[#allocation5] sm:$0xff]  }
 0x68c   :  { %3081 = vmatmul.mubr.bf16.vlgmr.msra.gmra.mxu0 %v4256_v38  ;;  %3124 = vmatmul.mubr.bf16.vlgmr.msra.gmra.mxu1 %v4256_v38 }
 0x68d   :  { %3419 = vmatpush1.bf16.msra.mxu0 %v5594_v28  ;;  %3450 = vmatprep.mubr.bf16.mxu0 %v5830_v34  ;;  %v4262_v28 = vld [vmem:[%s5775_s2 + $0xcc] ss:$16 sps:$4 sm:$0xff]  }
 0x68e   :  { %3420 = vmatprep.subr.bf16.mxu0 %v5600_v41  ;;  %3493 = vmatprep.mubr.bf16.mxu1 %v5830_v34  ;;  %v4260_v34 = vld [vmem:[%s5775_s2 + $0xc8] ss:$16 sps:$4 sm:$0xff]   ;;  %v4265_v41 = vld [vmem:[%s5775_s2 + $0xa4] ss:$16 sps:$4 sm:$0xff]  }
 0x68f   :  { %3462 = vmatpush1.bf16.msra.mxu1 %v4257_v49 }
 0x690   :  { %3463 = vmatprep.subr.bf16.mxu1 %v4262_v28 }
 0x691   :  { %3421 = vmatpush1.bf16.msra.mxu0 %v5605_v46  ;;  %v4268_v46 = vld [vmem:[%s5775_s2 + $0xac] ss:$16 sps:$4 sm:$0xff]  }
 0x692   :  { %3422 = vmatprep.subr.bf16.mxu0 %v4265_v41 }
 0x693   :  { %3464 = vmatpush1.bf16.msra.mxu1 %v4260_v34 }
 0x694   :  { %3465 = vmatprep.subr.bf16.mxu1 %v4268_v46 }
 0x695   :  { %3423 = vmatpush1.bf16.msra.mxu0 %v4263_v50 }
 0x696   :  { %3424 = vmatprep.subr.bf16.mxu0 %v4271_v53 }
 0x697   :  { %3466 = vmatpush1.bf16.msra.mxu1 %v4266_v51 }
 0x698   :  { %3467 = vmatprep.subr.bf16.mxu1 %v4274_v54 }
 0x699   :  { %3425 = vmatpush1.bf16.msra.mxu0 %v4269_v55 }
 0x69a   :  { %3426 = vmatprep.subr.bf16.mxu0 %v4277_v58 }
 0x69b   :  { %3468 = vmatpush1.bf16.msra.mxu1 %v4272_v56 }
 0x69c   :  { %3469 = vmatprep.subr.bf16.mxu1 %v4280_v59 }
 0x69d   :  { %3427 = vmatpush1.bf16.msra.mxu0 %v4275_v61 }
 0x69e   :  { %3428 = vmatprep.subr.bf16.mxu0 %v4283_v2 }
 0x69f   :  { %3470 = vmatpush1.bf16.msra.mxu1 %v4278_v62 }
 0x6a0   :  { %3471 = vmatprep.subr.bf16.mxu1 %v4286_v3 }
 0x6a1   :  { %3429 = vmatpush1.bf16.msra.mxu0 %v4281_v4 }
 0x6a2   :  { %3430 = vmatprep.subr.bf16.mxu0 %v4289_v6 }
 0x6a3   :  { %3472 = vmatpush1.bf16.msra.mxu1 %v4284_v5 }
 0x6a4   :  { %3473 = vmatprep.subr.bf16.mxu1 %v4292_v35 }
 0x6a5   :  { %3431 = vmatpush1.bf16.msra.mxu0 %v4287_v7 }
 0x6a6   :  { %3432 = vmatprep.subr.bf16.mxu0 %v4295_v43 }
 0x6a7   :  { %3474 = vmatpush1.bf16.msra.mxu1 %v4290_v9 }
 0x6a8   :  { %3475 = vmatprep.subr.bf16.mxu1 %v4298_v29 }
 0x6a9   :  { %3433 = vmatpush1.bf16.msra.mxu0 %v4293_v19 }
 0x6ab   :  { %3476 = vmatpush1.bf16.msra.mxu1 %v4296_v15  ;;  %v5869_v15 = vld [vmem:[#allocation44_spill] sm:$0xff] }
 0x74c   :  { %v3082_v13 = vpop.f32.mrf.mxu0  ;;  %v3125_v40 = vpop.f32.mrf.mxu1 }
 0x74d   :  { %v3134_v22 = vadd.f32 %v3082_v13, %v5861_v14  ;;  %v3136_v27 = vadd.f32 %v3125_v40, %v5866_v10 }
 0x74e   :  { %v3084_v20 = vpop.f32.mrf.mxu0  ;;  %v3127_v24 = vpop.f32.mrf.mxu1 }
 0x74f   :  { %v3928_v39 = vmul.f32 -1.442695, %v3134_v22  ;;  %v3135_v45 = vadd.f32 %v3084_v20, %v5862_v42  ;;  %v3137_v60 = vadd.f32 %v3127_v24, %v5865_v32  ;;  %v5870_v20 = vld [vmem:[#allocation46_spill] sm:$0xff] }
 0x750   :  { %v3086_v63 = vpop.f32.mrf.mxu0  ;;  %v3129_v31 = vpop.f32.mrf.mxu1 }
 0x751   :  { %4492 = vpow2.f32 %v3928_v39  ;;  %v3930_v11 = vmul.f32 -1.442695, %v3135_v45  ;;  %v3138_v30 = vadd.f32 %v3086_v63, %v5863_v12  ;;  %v3932_v26 = vmul.f32 -1.442695, %v3137_v60  ;;  %v5874_v60 = vld [vmem:[#allocation45_spill] sm:$0xff] }
 0x752   :  { %v3088_v52 = vpop.f32.mrf.mxu0  ;;  %v3131_v17 = vpop.f32.mrf.mxu1  ;;  %v3140_v57 = vadd.f32 %v3129_v31, %v5868_v18  ;;  %v5873_v31 = vld [vmem:[#allocation47_spill] sm:$0xff] }
 0x753   :  { %4494 = vpow2.f32 %v3930_v11  ;;  %v3929_v21 = vmul.f32 -1.442695, %v3138_v30  ;;  %v3139_v0 = vadd.f32 %v3088_v52, %v5864_v36  ;;  %v3141_v25 = vadd.f32 %v3131_v17, %v5867_v8  ;;  %v5871_v11 = vld [vmem:[#allocation48_spill] sm:$0xff]  ;;  %v5872_v52 = vld [vmem:[#allocation50_spill] sm:$0xff] }
 0x755   :  { %4496 = vpow2.f32 %v3929_v21  ;;  %v3931_v1 = vmul.f32 -1.442695, %v3139_v0  ;;  %v3933_v47 = vmul.f32 -1.442695, %v3141_v25  ;;  %v5876_v25 = vld [vmem:[#allocation49_spill] sm:$0xff] }
 0x757   :  { %4498 = vpow2.f32 %v3931_v1 }
 0x758   :  { %4500 = vtanh.f32 %v3136_v27  ;;  %v5875_v27 = vld [vmem:[#allocation51_spill] sm:$0xff] }
 0x759   :  { %4502 = vpow2.f32 %v3932_v26 }
 0x75e   :  { %v4493_v33 = vpop.eup %4492 }
 0x75f   :  { %v3148_v16 = vadd.f32 1.0, %v4493_v33 }
 0x760   :  { %v4495_v44 = vpop.eup %4494 }
 0x761   :  { %4504 = vrcp.f32 %v3148_v16  ;;  %v3160_v38 = vadd.f32 1.0, %v4495_v44 }
 0x762   :  { %v4497_v48 = vpop.eup %4496  ;;  %4506 = vtanh.f32 %v3140_v57 }
 0x763   :  { %4508 = vrcp.f32 %v3160_v38  ;;  %v3149_v49 = vadd.f32 1.0, %v4497_v48 }
 0x764   :  { %v4499_v28 = vpop.eup %4498  ;;  %4510 = vpow2.f32 %v3933_v47 }
 0x765   :  { %4512 = vrcp.f32 %v3149_v49  ;;  %v3161_v34 = vadd.f32 1.0, %v4499_v28  ;;  %v4501_v41 = vpop.eup %4500 }
 0x766   :  { %v4503_v46 = vpop.eup %4502 }
 0x767   :  { %4514 = vrcp.f32 %v3161_v34  ;;  %v3174_v59 = vadd.f32 1.0, %v4503_v46 }
 0x769   :  { %4516 = vrcp.f32 %v3174_v59 }
 0x76e   :  { %v4505_v50 = vpop.eup %4504 }
 0x76f   :  { %v4507_v51 = vpop.eup %4506  ;;  %v3182_v53 = vmul.f32 %v4505_v50, %v4501_v41 }
 0x770   :  { %v4509_v54 = vpop.eup %4508 }
 0x771   :  { %v4511_v55 = vpop.eup %4510  ;;  %v3180_v56 = vmul.f32 %v4509_v54, %v5630_v23 }
 0x772   :  { %v4513_v58 = vpop.eup %4512  ;;  %v3175_v3 = vadd.f32 1.0, %v4511_v55 }
 0x773   :  { %v5738_v61 = vadd.f32 %v3182_v53, %v3180_v56  ;;  %v3183_v62 = vmul.f32 %v4513_v58, %v4507_v51 }
 0x774   :  { %v4515_v2 = vpop.eup %4514 }
 0x775   :  { %v3181_v4 = vmul.f32 %v4515_v2, %v5634_v37  ;;  %4518 = vtanh.f32 %v5738_v61 }
 0x776   :  { %4520 = vrcp.f32 %v3175_v3  ;;  %v4517_v6 = vpop.eup %4516 }
 0x777   :  { %v5742_v5 = vadd.f32 %v3183_v62, %v3181_v4 }
 0x779   :  { %4522 = vtanh.f32 %v5742_v5 }
 0x782   :  { %v4519_v7 = vpop.eup %4518 }
 0x783   :  { %v4521_v23 = vpop.eup %4520  ;;  %v3188_v35 = vmul.f32 %v4519_v7, %v4517_v6 }
 0x786   :  { %v4523_v9 = vpop.eup %4522 }
 0x787   :  { %v3189_v43 = vmul.f32 %v4523_v9, %v4521_v23 }
 0x789   :  { %v4067_v29 = vpack.c.bf16 %v3189_v43, %v3188_v35 }
 0x78b   :  { %4089 = vst [vmem:[%s5779_s6 + $0x30] sm:$0xff] %v4067_v29   ;;  %4073 = vst [vmem:[#allocation5] sm:$0xff] %v4067_v29  }
 0x792   :  { %v4299_v37 = vld [vmem:[#allocation5] sm:$0xff]  }
 0x793   :  { %3451 = vmatmul.mubr.bf16.vlgmr.msra.gmra.mxu0 %v4299_v37  ;;  %3494 = vmatmul.mubr.bf16.vlgmr.msra.gmra.mxu1 %v4299_v37 }
 0x853   :  { %v3452_v19 = vpop.f32.mrf.mxu0  ;;  %v3495_v14 = vpop.f32.mrf.mxu1 }
 0x854   :  { %v3504_v13 = vadd.f32 %v3452_v19, %v5869_v15  ;;  %v3506_v17 = vadd.f32 %v3495_v14, %v5874_v60 }
 0x855   :  { %v3454_v22 = vpop.f32.mrf.mxu0  ;;  %v3497_v63 = vpop.f32.mrf.mxu1 }
 0x856   :  { %v3971_v40 = vmul.f32 -1.442695, %v3504_v13  ;;  %v3505_v39 = vadd.f32 %v3454_v22, %v5870_v20  ;;  %v3507_v1 = vadd.f32 %v3497_v63, %v5873_v31 }
 0x857   :  { %v3456_v42 = vpop.f32.mrf.mxu0  ;;  %v3499_v36 = vpop.f32.mrf.mxu1 }
 0x858   :  { %4524 = vpow2.f32 %v3971_v40  ;;  %v3973_v45 = vmul.f32 -1.442695, %v3505_v39  ;;  %v3508_v24 = vadd.f32 %v3456_v42, %v5871_v11  ;;  %v3975_v10 = vmul.f32 -1.442695, %v3507_v1 }
 0x859   :  { %v3458_v12 = vpop.f32.mrf.mxu0  ;;  %v3501_v32 = vpop.f32.mrf.mxu1  ;;  %v3510_v33 = vadd.f32 %v3499_v36, %v5876_v25 }
 0x85a   :  { %4526 = vpow2.f32 %v3973_v45  ;;  %v3972_v30 = vmul.f32 -1.442695, %v3508_v24  ;;  %v3509_v21 = vadd.f32 %v3458_v12, %v5872_v52  ;;  %v3511_v26 = vadd.f32 %v3501_v32, %v5875_v27 }
 0x85c   :  { %4528 = vpow2.f32 %v3972_v30  ;;  %v3974_v0 = vmul.f32 -1.442695, %v3509_v21  ;;  %v3976_v16 = vmul.f32 -1.442695, %v3511_v26 }
 0x85e   :  { %4530 = vpow2.f32 %v3974_v0 }
 0x85f   :  { %4532 = vtanh.f32 %v3506_v17 }
 0x860   :  { %4534 = vpow2.f32 %v3975_v10 }
 0x865   :  { %v4525_v8 = vpop.eup %4524 }
 0x866   :  { %v3518_v18 = vadd.f32 1.0, %v4525_v8 }
 0x867   :  { %v4527_v57 = vpop.eup %4526 }
 0x868   :  { %4536 = vrcp.f32 %v3518_v18  ;;  %v3530_v44 = vadd.f32 1.0, %v4527_v57 }
 0x869   :  { %v4529_v47 = vpop.eup %4528  ;;  %4538 = vtanh.f32 %v3510_v33 }
 0x86a   :  { %4540 = vrcp.f32 %v3530_v44  ;;  %v3519_v38 = vadd.f32 1.0, %v4529_v47 }
 0x86b   :  { %v4531_v48 = vpop.eup %4530  ;;  %4542 = vpow2.f32 %v3976_v16 }
 0x86c   :  { %4544 = vrcp.f32 %v3519_v38  ;;  %v3531_v49 = vadd.f32 1.0, %v4531_v48  ;;  %v4533_v28 = vpop.eup %4532 }
 0x86d   :  { %v4535_v34 = vpop.eup %4534 }
 0x86e   :  { %4546 = vrcp.f32 %v3531_v49  ;;  %v3544_v53 = vadd.f32 1.0, %v4535_v34 }
 0x870   :  { %4548 = vrcp.f32 %v3544_v53 }
 0x875   :  { %v4537_v41 = vpop.eup %4536 }
 0x876   :  { %v4539_v46 = vpop.eup %4538  ;;  %v3552_v50 = vmul.f32 %v4537_v41, %v4533_v28 }
 0x877   :  { %v4541_v51 = vpop.eup %4540 }
 0x878   :  { %v4543_v54 = vpop.eup %4542  ;;  %v3550_v55 = vmul.f32 %v4541_v51, %v5738_v61 }
 0x879   :  { %v4545_v56 = vpop.eup %4544  ;;  %v3545_v2 = vadd.f32 1.0, %v4543_v54 }
 0x87a   :  { %v3554_v58 = vadd.f32 %v3552_v50, %v3550_v55  ;;  %v3553_v59 = vmul.f32 %v4545_v56, %v4539_v46 }
 0x87b   :  { %v4547_v62 = vpop.eup %4546 }
 0x87c   :  { %4550 = vtanh.f32 %v3554_v58  ;;  %3583 = vst [vmem:[%s5780_s8] sm:$0xff] %v3554_v58  ;;  %v3551_v3 = vmul.f32 %v4547_v62, %v5742_v5 }
 0x87d   :  { %4552 = vrcp.f32 %v3545_v2  ;;  %v4549_v61 = vpop.eup %4548 }
 0x87e   :  { %v3555_v4 = vadd.f32 %v3553_v59, %v3551_v3 }
 0x880   :  { %4554 = vtanh.f32 %v3555_v4  ;;  %3584 = vst [vmem:[%s5780_s8 + $0x8] sm:$0xff] %v3555_v4 }
 0x889   :  { %v4551_v6 = vpop.eup %4550 }
 0x88a   :  { %v3558_v7 = vmul.f32 %v4551_v6, %v4549_v61  ;;  %v4553_v23 = vpop.eup %4552 }
 0x88c   :  { %3579 = vst [vmem:[%s5781_s7] sm:$0xff] %v3558_v7 }
 0x88d   :  { %v4555_v9 = vpop.eup %4554 }
 0x88e   :  { %v3559_v35 = vmul.f32 %v4555_v9, %v4553_v23 }
 0x890   :  { %v4077_v43 = vpack.c.bf16 %v3559_v35, %v3558_v7  ;;  %3580 = vst [vmem:[%s5781_s7 + $0x8] sm:$0xff] %v3559_v35 }
 0x892   :  { %4090 = vst [vmem:[%s5779_s6 + $0x38] sm:$0xff] %v4077_v43   ;;  %4083 = vst [vmem:[#allocation5] sm:$0xff] %v4077_v43  }

// kernel: language_model_forward.3
= control target key start
LH: loop header
LB: loop body
LE: loop exit
PB: predicated region body
PF: predicated region fallthrough
CT: control target
= control target key end

     0   :  { %s6211_s1 = inlined_call_operand.vmem [shape: bf16[256,512], index: 1, kind: input, shape index: {}]   ;;  %s6212_s0 = inlined_call_operand.vmem [shape: bf16[8,16,256], index: 0, kind: input, shape index: {}]   ;;  %s6213_s2 = inlined_call_operand.vmem [shape: bf16[128,512], index: 2, kind: input, shape index: {}]   ;;  %s6214_s4 = inlined_call_operand.vmem [shape: f32[16,128], index: 4, kind: input, shape index: {}]   ;;  %s6215_s3 = inlined_call_operand.vmem [shape: f32[1,512], index: 3, kind: input, shape index: {}]   ;;  %s6216_s5 = inlined_call_operand.vmem [shape: f32[16,128], index: 5, kind: input, shape index: {}]   ;;  %s6217_s6 = inlined_call_operand.vmem [shape: bf16[8,16,128], index: 6, kind: output, shape index: {0}]   ;;  %s6218_s8 = inlined_call_operand.vmem [shape: f32[16,128], index: 8, kind: output, shape index: {2}]   ;;  %s6219_s7 = inlined_call_operand.vmem [shape: f32[16,128], index: 7, kind: output, shape index: {1}]  }
   0x1   :  { %v4356_v0 = vld [vmem:[%s6211_s1 + $0xe4] ss:$16 sps:$4 sm:$0xff]   ;;  %v4358_v1 = vld [vmem:[%s6211_s1 + $0xec] ss:$16 sps:$4 sm:$0xff]   ;;  %v4360_v2 = vld [vmem:[%s6211_s1 + $0xe0] ss:$16 sps:$4 sm:$0xff]  }
   0x2   :  { %553 = vmatprep.subr.bf16.mxu0 %v4356_v0  ;;  %v4361_v3 = vld [vmem:[%s6211_s1 + $0xe8] ss:$16 sps:$4 sm:$0xff]   ;;  %666 = vmatprep.subr.bf16.mxu1 %v4358_v1  ;;  %v4362_v4 = vld [vmem:[%s6211_s1 + $0xc4] ss:$16 sps:$4 sm:$0xff]   ;;  %v4364_v5 = vld [vmem:[%s6211_s1 + $0xcc] ss:$16 sps:$4 sm:$0xff]  }
   0x3   :  { %554 = vmatpush1.bf16.msra.mxu0 %v4360_v2  ;;  %667 = vmatpush1.bf16.msra.mxu1 %v4361_v3  ;;  %v4366_v6 = vld [vmem:[%s6211_s1 + $0xc0] ss:$16 sps:$4 sm:$0xff]   ;;  %v4367_v7 = vld [vmem:[%s6211_s1 + $0xc8] ss:$16 sps:$4 sm:$0xff]   ;;  %v4368_v8 = vld [vmem:[%s6211_s1 + $0xa4] ss:$16 sps:$4 sm:$0xff]  }
   0x4   :  { %555 = vmatprep.subr.bf16.mxu0 %v4362_v4  ;;  %668 = vmatprep.subr.bf16.mxu1 %v4364_v5  ;;  %v4370_v9 = vld [vmem:[%s6211_s1 + $0xac] ss:$16 sps:$4 sm:$0xff]   ;;  %v4372_v10 = vld [vmem:[%s6211_s1 + $0xa0] ss:$16 sps:$4 sm:$0xff]   ;;  %v4373_v11 = vld [vmem:[%s6211_s1 + $0xa8] ss:$16 sps:$4 sm:$0xff]  }
   0x5   :  { %v4374_v12 = vld [vmem:[%s6211_s1 + $0x84] ss:$16 sps:$4 sm:$0xff]   ;;  %v4376_v13 = vld [vmem:[%s6211_s1 + $0x8c] ss:$16 sps:$4 sm:$0xff]   ;;  %v4378_v14 = vld [vmem:[%s6211_s1 + $0x80] ss:$16 sps:$4 sm:$0xff]  }
   0x6   :  { %v4379_v15 = vld [vmem:[%s6211_s1 + $0x88] ss:$16 sps:$4 sm:$0xff]   ;;  %v4380_v16 = vld [vmem:[%s6211_s1 + $0x64] ss:$16 sps:$4 sm:$0xff]   ;;  %v4382_v17 = vld [vmem:[%s6211_s1 + $0x6c] ss:$16 sps:$4 sm:$0xff]  }
   0x7   :  { %556 = vmatpush1.bf16.msra.mxu0 %v4366_v6  ;;  %669 = vmatpush1.bf16.msra.mxu1 %v4367_v7  ;;  %v4384_v18 = vld [vmem:[%s6211_s1 + $0x60] ss:$16 sps:$4 sm:$0xff]   ;;  %v4385_v19 = vld [vmem:[%s6211_s1 + $0x68] ss:$16 sps:$4 sm:$0xff]   ;;  %v4386_v20 = vld [vmem:[%s6211_s1 + $0x44] ss:$16 sps:$4 sm:$0xff]  }
   0x8   :  { %557 = vmatprep.subr.bf16.mxu0 %v4368_v8  ;;  %670 = vmatprep.subr.bf16.mxu1 %v4370_v9  ;;  %v4388_v21 = vld [vmem:[%s6211_s1 + $0x4c] ss:$16 sps:$4 sm:$0xff]   ;;  %v4390_v22 = vld [vmem:[%s6211_s1 + $0x40] ss:$16 sps:$4 sm:$0xff]   ;;  %v4391_v23 = vld [vmem:[%s6211_s1 + $0x48] ss:$16 sps:$4 sm:$0xff]  }
   0x9   :  { %v4392_v24 = vld [vmem:[%s6211_s1 + $0x24] ss:$16 sps:$4 sm:$0xff]   ;;  %v4394_v25 = vld [vmem:[%s6211_s1 + $0x2c] ss:$16 sps:$4 sm:$0xff]   ;;  %v4396_v26 = vld [vmem:[%s6211_s1 + $0x20] ss:$16 sps:$4 sm:$0xff]  }
   0xa   :  { %v4397_v27 = vld [vmem:[%s6211_s1 + $0x28] ss:$16 sps:$4 sm:$0xff]   ;;  %v4398_v28 = vld [vmem:[%s6211_s1 + $0x4] ss:$16 sps:$4 sm:$0xff]   ;;  %v4400_v29 = vld [vmem:[%s6211_s1 + $0xc] ss:$16 sps:$4 sm:$0xff]  }
   0xb   :  { %558 = vmatpush1.bf16.msra.mxu0 %v4372_v10  ;;  %671 = vmatpush1.bf16.msra.mxu1 %v4373_v11  ;;  %v4402_v30 = vld [vmem:[%s6211_s1] ss:$16 sps:$4 sm:$0xff]   ;;  %v4403_v31 = vld [vmem:[%s6211_s1 + $0x8] ss:$16 sps:$4 sm:$0xff]   ;;  %v4404_v32 = vld [vmem:[%s6211_s1 + $0x1e4] ss:$16 sps:$4 sm:$0xff]  }
   0xc   :  { %559 = vmatprep.subr.bf16.mxu0 %v4374_v12  ;;  %672 = vmatprep.subr.bf16.mxu1 %v4376_v13  ;;  %v4406_v33 = vld [vmem:[%s6211_s1 + $0x1ec] ss:$16 sps:$4 sm:$0xff]   ;;  %v4408_v34 = vld [vmem:[%s6211_s1 + $0x1e0] ss:$16 sps:$4 sm:$0xff]   ;;  %v4409_v35 = vld [vmem:[%s6211_s1 + $0x1e8] ss:$16 sps:$4 sm:$0xff]  }
   0xd   :  { %v4410_v36 = vld [vmem:[%s6211_s1 + $0x1c4] ss:$16 sps:$4 sm:$0xff]   ;;  %v4412_v37 = vld [vmem:[%s6211_s1 + $0x1cc] ss:$16 sps:$4 sm:$0xff]   ;;  %v4414_v38 = vld [vmem:[%s6211_s1 + $0x1c0] ss:$16 sps:$4 sm:$0xff]  }
   0xe   :  { %v4415_v39 = vld [vmem:[%s6211_s1 + $0x1c8] ss:$16 sps:$4 sm:$0xff]   ;;  %v4416_v40 = vld [vmem:[%s6211_s1 + $0x1a4] ss:$16 sps:$4 sm:$0xff]   ;;  %v4418_v41 = vld [vmem:[%s6211_s1 + $0x1ac] ss:$16 sps:$4 sm:$0xff]  }
   0xf   :  { %560 = vmatpush1.bf16.msra.mxu0 %v4378_v14  ;;  %673 = vmatpush1.bf16.msra.mxu1 %v4379_v15  ;;  %v4420_v42 = vld [vmem:[%s6211_s1 + $0x1a0] ss:$16 sps:$4 sm:$0xff]   ;;  %v4421_v43 = vld [vmem:[%s6211_s1 + $0x1a8] ss:$16 sps:$4 sm:$0xff]   ;;  %v4422_v44 = vld [vmem:[%s6211_s1 + $0x184] ss:$16 sps:$4 sm:$0xff]  }
  0x10   :  { %561 = vmatprep.subr.bf16.mxu0 %v4380_v16  ;;  %674 = vmatprep.subr.bf16.mxu1 %v4382_v17  ;;  %v4424_v45 = vld [vmem:[%s6211_s1 + $0x18c] ss:$16 sps:$4 sm:$0xff]   ;;  %v4426_v46 = vld [vmem:[%s6211_s1 + $0x180] ss:$16 sps:$4 sm:$0xff]   ;;  %v4427_v47 = vld [vmem:[%s6211_s1 + $0x188] ss:$16 sps:$4 sm:$0xff]  }
  0x11   :  { %v4454_v48 = vld [vmem:[%s6212_s0 + $0x4] ss:$8 sps:$4 sm:$0xff]   ;;  %v4432_v51 = vld [vmem:[%s6211_s1 + $0x160] ss:$16 sps:$4 sm:$0xff]   ;;  %v4433_v52 = vld [vmem:[%s6211_s1 + $0x168] ss:$16 sps:$4 sm:$0xff]  }
  0x12   :  { %v4428_v49 = vld [vmem:[%s6211_s1 + $0x164] ss:$16 sps:$4 sm:$0xff]   ;;  %v4430_v50 = vld [vmem:[%s6211_s1 + $0x16c] ss:$16 sps:$4 sm:$0xff]   ;;  %585 = vmatprep.mubr.bf16.mxu0 %v4454_v48  ;;  %698 = vmatprep.mubr.bf16.mxu1 %v4454_v48  ;;  %v4438_v55 = vld [vmem:[%s6211_s1 + $0x140] ss:$16 sps:$4 sm:$0xff]  }
  0x13   :  { %562 = vmatpush1.bf16.msra.mxu0 %v4384_v18  ;;  %675 = vmatpush1.bf16.msra.mxu1 %v4385_v19  ;;  %v4434_v53 = vld [vmem:[%s6211_s1 + $0x144] ss:$16 sps:$4 sm:$0xff]   ;;  %v4436_v54 = vld [vmem:[%s6211_s1 + $0x14c] ss:$16 sps:$4 sm:$0xff]   ;;  %v4439_v56 = vld [vmem:[%s6211_s1 + $0x148] ss:$16 sps:$4 sm:$0xff]  }
  0x14   :  { %563 = vmatprep.subr.bf16.mxu0 %v4386_v20  ;;  %676 = vmatprep.subr.bf16.mxu1 %v4388_v21  ;;  %v4440_v57 = vld [vmem:[%s6211_s1 + $0x124] ss:$16 sps:$4 sm:$0xff]   ;;  %v4442_v58 = vld [vmem:[%s6211_s1 + $0x12c] ss:$16 sps:$4 sm:$0xff]   ;;  %v4444_v59 = vld [vmem:[%s6211_s1 + $0x120] ss:$16 sps:$4 sm:$0xff]  }
  0x15   :  { %v4445_v60 = vld [vmem:[%s6211_s1 + $0x128] ss:$16 sps:$4 sm:$0xff]   ;;  %v4446_v61 = vld [vmem:[%s6211_s1 + $0x104] ss:$16 sps:$4 sm:$0xff]   ;;  %v4448_v62 = vld [vmem:[%s6211_s1 + $0x10c] ss:$16 sps:$4 sm:$0xff]  }
  0x16   :  { %v4450_v63 = vld [vmem:[%s6211_s1 + $0x100] ss:$16 sps:$4 sm:$0xff]   ;;  %v4451_v0 = vld [vmem:[%s6211_s1 + $0x108] ss:$16 sps:$4 sm:$0xff]   ;;  %v5128_v1 = vld [vmem:[%s6213_s2 + $0xe4] ss:$16 sps:$4 sm:$0xff]  }
  0x17   :  { %564 = vmatpush1.bf16.msra.mxu0 %v4390_v22  ;;  %677 = vmatpush1.bf16.msra.mxu1 %v4391_v23  ;;  %v5133_v2 = vld [vmem:[%s6213_s2 + $0xec] ss:$16 sps:$4 sm:$0xff]   ;;  %v4452_v3 = vld [vmem:[%s6212_s0] ss:$8 sps:$4 sm:$0xff]   ;;  %v5150_v6 = vld [vmem:[%s6213_s2 + $0xc4] ss:$16 sps:$4 sm:$0xff]  }
  0x18   :  { %565 = vmatprep.subr.bf16.mxu0 %v4392_v24  ;;  %678 = vmatprep.subr.bf16.mxu1 %v4394_v25  ;;  %v5141_v4 = vld [vmem:[%s6213_s2 + $0xe0] ss:$16 sps:$4 sm:$0xff]   ;;  %v4458_v5 = vld [vmem:[%s6212_s0 + $0x14] ss:$8 sps:$4 sm:$0xff]   ;;  %v5156_v7 = vld [vmem:[%s6213_s2 + $0xe8] ss:$16 sps:$4 sm:$0xff]  }
  0x19   :  { %v5161_v8 = vld [vmem:[%s6213_s2 + $0xcc] ss:$16 sps:$4 sm:$0xff]   ;;  %v5167_v9 = vld [vmem:[%s6213_s2 + $0xc0] ss:$16 sps:$4 sm:$0xff]   ;;  %v5173_v10 = vld [vmem:[%s6213_s2 + $0xa4] ss:$16 sps:$4 sm:$0xff]  }
  0x1a   :  { %v5179_v11 = vld [vmem:[%s6213_s2 + $0xc8] ss:$16 sps:$4 sm:$0xff]   ;;  %v4464_v13 = vld [vmem:[%s6212_s0 + $0x24] ss:$8 sps:$4 sm:$0xff]   ;;  %v5192_v14 = vld [vmem:[%s6213_s2 + $0xa0] ss:$16 sps:$4 sm:$0xff]  }
  0x1b   :  { %566 = vmatpush1.bf16.msra.mxu0 %v4396_v26  ;;  %679 = vmatpush1.bf16.msra.mxu1 %v4397_v27  ;;  %v4460_v12 = vld [vmem:[%s6212_s0 + $0x10] ss:$8 sps:$4 sm:$0xff]   ;;  %v5198_v15 = vld [vmem:[%s6213_s2 + $0xac] ss:$16 sps:$4 sm:$0xff]   ;;  %v5203_v16 = vld [vmem:[%s6213_s2 + $0x84] ss:$16 sps:$4 sm:$0xff]  }
  0x1c   :  { %567 = vmatprep.subr.bf16.mxu0 %v4398_v28  ;;  %680 = vmatprep.subr.bf16.mxu1 %v4400_v29  ;;  %v5209_v17 = vld [vmem:[%s6213_s2 + $0xa8] ss:$16 sps:$4 sm:$0xff]   ;;  %v39_v18 = vld [vmem:[%s6214_s4] sm:$0xff]  ;;  %v5222_v20 = vld [vmem:[%s6213_s2 + $0x8c] ss:$16 sps:$4 sm:$0xff]  }
  0x1d   :  { %v5217_v19 = vld [vmem:[%s6213_s2 + $0x80] ss:$16 sps:$4 sm:$0xff]   ;;  %v40_v21 = vld [vmem:[%s6214_s4 + $0x8] sm:$0xff]  ;;  %v5230_v22 = vld [vmem:[%s6213_s2 + $0x64] ss:$16 sps:$4 sm:$0xff]  }
  0x1e   :  { %v5235_v23 = vld [vmem:[%s6213_s2 + $0x88] ss:$16 sps:$4 sm:$0xff]   ;;  %v4266_v24 = vpack.c.bf16 %v40_v21, %v39_v18  ;;  %v4473_v26 = vld [vmem:[%s6212_s0 + $0x34] ss:$8 sps:$4 sm:$0xff]   ;;  %v5250_v27 = vld [vmem:[%s6213_s2 + $0x60] ss:$16 sps:$4 sm:$0xff]  }
  0x1f   :  { %568 = vmatpush1.bf16.msra.mxu0 %v4402_v30  ;;  %681 = vmatpush1.bf16.msra.mxu1 %v4403_v31  ;;  %v4466_v25 = vld [vmem:[%s6212_s0 + $0x20] ss:$8 sps:$4 sm:$0xff]   ;;  %v5256_v28 = vld [vmem:[%s6213_s2 + $0x6c] ss:$16 sps:$4 sm:$0xff]   ;;  %v5261_v29 = vld [vmem:[%s6213_s2 + $0x44] ss:$16 sps:$4 sm:$0xff]  }
  0x20   :  { %569 = vmatprep.subr.bf16.mxu0 %v4404_v32  ;;  %682 = vmatprep.subr.bf16.mxu1 %v4406_v33  ;;  %4267 = vst [vmem:[#allocation5] sm:$0xff] %v4266_v24   ;;  %v5266_v30 = vld [vmem:[%s6213_s2 + $0x68] ss:$16 sps:$4 sm:$0xff]   ;;  %v5272_v31 = vld [vmem:[%s6213_s2 + $0x4c] ss:$16 sps:$4 sm:$0xff]  }
  0x21   :  { %v5279_v32 = vld [vmem:[%s6213_s2 + $0x40] ss:$16 sps:$4 sm:$0xff]   ;;  %v5284_v33 = vld [vmem:[%s6213_s2 + $0x24] ss:$16 sps:$4 sm:$0xff]  }
  0x22   :  { %v4502_v48 = vld [vmem:[%s6212_s0 + $0x60] ss:$8 sps:$4 sm:$0xff]  }
  0x23   :  { %570 = vmatpush2.bf16.msra.mxu0 %v4408_v34  ;;  %683 = vmatpush2.bf16.msra.mxu1 %v4409_v35  ;;  %v4475_v34 = vld [vmem:[%s6212_s0 + $0x30] ss:$8 sps:$4 sm:$0xff]  }
  0x24   :  { %571 = vmatprep.subr.bf16.mxu0 %v4410_v36  ;;  %684 = vmatprep.subr.bf16.mxu1 %v4412_v37  ;;  %v5294_v35 = vld [vmem:[%s6213_s2 + $0x48] ss:$16 sps:$4 sm:$0xff]   ;;  %v4482_v36 = vld [vmem:[%s6212_s0 + $0x44] ss:$8 sps:$4 sm:$0xff]   ;;  %v5304_v37 = vld [vmem:[%s6213_s2 + $0x20] ss:$16 sps:$4 sm:$0xff]  }
  0x27   :  { %572 = vmatpush2.bf16.msra.mxu0 %v4414_v38  ;;  %685 = vmatpush2.bf16.msra.mxu1 %v4415_v39  ;;  %v5310_v38 = vld [vmem:[%s6213_s2 + $0x2c] ss:$16 sps:$4 sm:$0xff]   ;;  %v5315_v39 = vld [vmem:[%s6213_s2 + $0x4] ss:$16 sps:$4 sm:$0xff]  }
  0x28   :  { %573 = vmatprep.subr.bf16.mxu0 %v4416_v40  ;;  %686 = vmatprep.subr.bf16.mxu1 %v4418_v41  ;;  %v5320_v40 = vld [vmem:[%s6213_s2 + $0x28] ss:$16 sps:$4 sm:$0xff]   ;;  %v5326_v41 = vld [vmem:[%s6213_s2 + $0xc] ss:$16 sps:$4 sm:$0xff]  }
  0x2b   :  { %574 = vmatpush2.bf16.msra.mxu0 %v4420_v42  ;;  %687 = vmatpush2.bf16.msra.mxu1 %v4421_v43  ;;  %v5333_v42 = vld [vmem:[%s6213_s2] ss:$16 sps:$4 sm:$0xff]   ;;  %v5338_v43 = vld [vmem:[%s6213_s2 + $0x8] ss:$16 sps:$4 sm:$0xff]  }
  0x2c   :  { %575 = vmatprep.subr.bf16.mxu0 %v4422_v44  ;;  %688 = vmatprep.subr.bf16.mxu1 %v4424_v45  ;;  %v4484_v44 = vld [vmem:[%s6212_s0 + $0x40] ss:$8 sps:$4 sm:$0xff]   ;;  %v4491_v45 = vld [vmem:[%s6212_s0 + $0x54] ss:$8 sps:$4 sm:$0xff]  }
  0x2f   :  { %576 = vmatpush2.bf16.msra.mxu0 %v4426_v46  ;;  %689 = vmatpush2.bf16.msra.mxu1 %v4427_v47  ;;  %v4493_v46 = vld [vmem:[%s6212_s0 + $0x50] ss:$8 sps:$4 sm:$0xff]   ;;  %v4500_v47 = vld [vmem:[%s6212_s0 + $0x64] ss:$8 sps:$4 sm:$0xff]  }
  0x30   :  { %577 = vmatprep.subr.bf16.mxu0 %v4428_v49  ;;  %690 = vmatprep.subr.bf16.mxu1 %v4430_v50  ;;  %v4512_v49 = vld [vmem:[%s6212_s0 + $0x74] ss:$8 sps:$4 sm:$0xff]   ;;  %v4514_v50 = vld [vmem:[%s6212_s0 + $0x70] ss:$8 sps:$4 sm:$0xff]  }
  0x33   :  { %578 = vmatpush2.bf16.msra.mxu0 %v4432_v51  ;;  %691 = vmatpush2.bf16.msra.mxu1 %v4433_v52  ;;  %v6220_v51 = vmov 0   ;;  %v4524_v52 = vld [vmem:[#allocation5] sm:$0xff]  }
  0x34   :  { %579 = vmatprep.subr.bf16.mxu0 %v4434_v53  ;;  %692 = vmatprep.subr.bf16.mxu1 %v4436_v54  ;;  %v133_v53 = vlaneseq }
  0x36   :  { %v134_v54 = vshrl.u32 %v133_v53, 7 }
  0x37   :  { %580 = vmatpush2.bf16.msra.mxu0 %v4438_v55  ;;  %693 = vmatpush2.bf16.msra.mxu1 %v4439_v56 }
  0x38   :  { %581 = vmatprep.subr.bf16.mxu0 %v4440_v57  ;;  %694 = vmatprep.subr.bf16.mxu1 %v4442_v58 }
  0x3b   :  { %582 = vmatpush2.bf16.msra.mxu0 %v4444_v59  ;;  %695 = vmatpush2.bf16.msra.mxu1 %v4445_v60  ;;  %v135_v59 = vsub.s32 0, %v134_v54  ;;  %v143_v60 = vsub.s32 2, %v134_v54 }
  0x3c   :  { %583 = vmatprep.subr.bf16.mxu0 %v4446_v61  ;;  %696 = vmatprep.subr.bf16.mxu1 %v4448_v62  ;;  %v131_v61 = vld [vmem:[%s6215_s3] sm:$0xf] }
  0x3f   :  { %584 = vmatpush2.bf16.msra.mxu0 %v4450_v63  ;;  %697 = vmatpush2.bf16.msra.mxu1 %v4451_v0  ;;  %v139_v0 = vsub.s32 1, %v134_v54 }
  0x40   :  { %1053 = vmatprep.subr.bf16.mxu0 %v5128_v1  ;;  %1096 = vmatprep.subr.bf16.mxu1 %v5133_v2 }
  0x42   :  { %586 = vmatmul.mubr.bf16.vlgmr.msra.gmra.mxu0 %v4452_v3  ;;  %699 = vmatmul.mubr.bf16.vlgmr.msra.gmra.mxu1 %v4452_v3 }
  0x43   :  { %1054 = vmatpush1.bf16.msra.mxu0 %v5141_v4  ;;  %595 = vmatprep.mubr.bf16.mxu0 %v4458_v5 }
  0x44   :  { %708 = vmatprep.mubr.bf16.mxu1 %v4458_v5  ;;  %1055 = vmatprep.subr.bf16.mxu0 %v5150_v6  ;;  %v5426_v5 = vrot.slane %v131_v61, %v143_v60 }
  0x45   :  { %1097 = vmatpush1.bf16.msra.mxu1 %v5156_v7 }
  0x46   :  { %1098 = vmatprep.subr.bf16.mxu1 %v5161_v8 }
  0x47   :  { %1056 = vmatpush1.bf16.msra.mxu0 %v5167_v9 }
  0x48   :  { %1057 = vmatprep.subr.bf16.mxu0 %v5173_v10 }
  0x49   :  { %1099 = vmatpush1.bf16.msra.mxu1 %v5179_v11 }
  0x4a   :  { %596 = vmatmul.mubr.bf16.gmra.mxu0 %v4460_v12  ;;  %709 = vmatmul.mubr.bf16.gmra.mxu1 %v4460_v12 }
  0x4b   :  { %605 = vmatprep.mubr.bf16.mxu0 %v4464_v13  ;;  %718 = vmatprep.mubr.bf16.mxu1 %v4464_v13 }
  0x4c   :  { %1058 = vmatpush1.bf16.msra.mxu0 %v5192_v14  ;;  %1100 = vmatprep.subr.bf16.mxu1 %v5198_v15 }
  0x4d   :  { %1059 = vmatprep.subr.bf16.mxu0 %v5203_v16  ;;  %1101 = vmatpush1.bf16.msra.mxu1 %v5209_v17 }
  0x4e   :  { %1102 = vmatprep.subr.bf16.mxu1 %v5222_v20 }
  0x50   :  { %1060 = vmatpush1.bf16.msra.mxu0 %v5217_v19 }
  0x51   :  { %1061 = vmatprep.subr.bf16.mxu0 %v5230_v22  ;;  %1103 = vmatpush1.bf16.msra.mxu1 %v5235_v23 }
  0x52   :  { %606 = vmatmul.mubr.bf16.gmra.mxu0 %v4466_v25  ;;  %719 = vmatmul.mubr.bf16.gmra.mxu1 %v4466_v25 }
  0x53   :  { %615 = vmatprep.mubr.bf16.mxu0 %v4473_v26  ;;  %728 = vmatprep.mubr.bf16.mxu1 %v4473_v26 }
  0x54   :  { %1062 = vmatpush1.bf16.msra.mxu0 %v5250_v27  ;;  %1104 = vmatprep.subr.bf16.mxu1 %v5256_v28 }
  0x55   :  { %1063 = vmatprep.subr.bf16.mxu0 %v5261_v29  ;;  %1105 = vmatpush1.bf16.msra.mxu1 %v5266_v30 }
  0x56   :  { %1106 = vmatprep.subr.bf16.mxu1 %v5272_v31 }
  0x58   :  { %1064 = vmatpush1.bf16.msra.mxu0 %v5279_v32 }
  0x59   :  { %1065 = vmatprep.subr.bf16.mxu0 %v5284_v33  ;;  %1107 = vmatpush1.bf16.msra.mxu1 %v5294_v35 }
  0x5a   :  { %616 = vmatmul.mubr.bf16.gmra.mxu0 %v4475_v34  ;;  %729 = vmatmul.mubr.bf16.gmra.mxu1 %v4475_v34 }
  0x5b   :  { %625 = vmatprep.mubr.bf16.mxu0 %v4482_v36  ;;  %738 = vmatprep.mubr.bf16.mxu1 %v4482_v36 }
  0x5c   :  { %1066 = vmatpush1.bf16.msra.mxu0 %v5304_v37  ;;  %1108 = vmatprep.subr.bf16.mxu1 %v5310_v38 }
  0x5d   :  { %1067 = vmatprep.subr.bf16.mxu0 %v5315_v39  ;;  %1109 = vmatpush1.bf16.msra.mxu1 %v5320_v40 }
  0x5e   :  { %1110 = vmatprep.subr.bf16.mxu1 %v5326_v41 }
  0x60   :  { %1068 = vmatpush1.bf16.msra.mxu0 %v5333_v42 }
  0x61   :  { %1111 = vmatpush1.bf16.msra.mxu1 %v5338_v43  ;;  %1422 = vmatprep.subr.bf16.mxu0 %v5128_v1  ;;  %v147_v1 = vsub.s32 3, %v134_v54 }
  0x62   :  { %626 = vmatmul.mubr.bf16.gmra.mxu0 %v4484_v44  ;;  %739 = vmatmul.mubr.bf16.gmra.mxu1 %v4484_v44 }
  0x63   :  { %635 = vmatprep.mubr.bf16.mxu0 %v4491_v45  ;;  %748 = vmatprep.mubr.bf16.mxu1 %v4491_v45  ;;  %v5430_v12 = vrot.slane %v131_v61, %v147_v1 }
  0x64   :  { %1465 = vmatprep.subr.bf16.mxu1 %v5133_v2 }
  0x6a   :  { %636 = vmatmul.mubr.bf16.gmra.mxu0 %v4493_v46  ;;  %749 = vmatmul.mubr.bf16.gmra.mxu1 %v4493_v46 }
  0x6b   :  { %645 = vmatprep.mubr.bf16.mxu0 %v4500_v47  ;;  %758 = vmatprep.mubr.bf16.mxu1 %v4500_v47 }
  0x72   :  { %646 = vmatmul.mubr.bf16.gmra.mxu0 %v4502_v48  ;;  %759 = vmatmul.mubr.bf16.gmra.mxu1 %v4502_v48 }
  0x73   :  { %655 = vmatprep.mubr.bf16.mxu0 %v4512_v49  ;;  %768 = vmatprep.mubr.bf16.mxu1 %v4512_v49 }
  0x7a   :  { %656 = vmatmul.mubr.bf16.gmra.mxu0 %v4514_v50  ;;  %769 = vmatmul.mubr.bf16.gmra.mxu1 %v4514_v50 }
  0x7b   :  { %1085 = vmatprep.mubr.bf16.mxu0 %v6220_v51  ;;  %1128 = vmatprep.mubr.bf16.mxu1 %v6220_v51 }
  0x82   :  { %1086 = vmatmul.mubr.bf16.vlgmr.msra.gmra.mxu0 %v4524_v52  ;;  %1129 = vmatmul.mubr.bf16.vlgmr.msra.gmra.mxu1 %v4524_v52 }
  0x83   :  { %1423 = vmatpush1.bf16.msra.mxu0 %v5141_v4  ;;  %1466 = vmatpush1.bf16.msra.mxu1 %v5156_v7  ;;  %v5424_v4 = vrot.slane %v131_v61, %v135_v59 }
  0x84   :  { %1424 = vmatprep.subr.bf16.mxu0 %v5150_v6  ;;  %1467 = vmatprep.subr.bf16.mxu1 %v5161_v8 }
  0x85   :  { %1454 = vmatprep.mubr.bf16.mxu0 %v6220_v51  ;;  %1497 = vmatprep.mubr.bf16.mxu1 %v6220_v51 }
  0x87   :  { %1425 = vmatpush1.bf16.msra.mxu0 %v5167_v9  ;;  %1468 = vmatpush1.bf16.msra.mxu1 %v5179_v11 }
  0x88   :  { %1426 = vmatprep.subr.bf16.mxu0 %v5173_v10  ;;  %1469 = vmatprep.subr.bf16.mxu1 %v5198_v15  ;;  %v5428_v10 = vrot.slane %v131_v61, %v139_v0 }
  0x8b   :  { %1427 = vmatpush1.bf16.msra.mxu0 %v5192_v14  ;;  %1470 = vmatpush1.bf16.msra.mxu1 %v5209_v17 }
  0x8c   :  { %1428 = vmatprep.subr.bf16.mxu0 %v5203_v16  ;;  %1471 = vmatprep.subr.bf16.mxu1 %v5222_v20 }
  0x8f   :  { %1429 = vmatpush1.bf16.msra.mxu0 %v5217_v19  ;;  %1472 = vmatpush1.bf16.msra.mxu1 %v5235_v23 }
  0x90   :  { %1430 = vmatprep.subr.bf16.mxu0 %v5230_v22  ;;  %1473 = vmatprep.subr.bf16.mxu1 %v5256_v28 }
  0x93   :  { %1431 = vmatpush1.bf16.msra.mxu0 %v5250_v27  ;;  %1474 = vmatpush1.bf16.msra.mxu1 %v5266_v30 }
  0x94   :  { %1432 = vmatprep.subr.bf16.mxu0 %v5261_v29  ;;  %1475 = vmatprep.subr.bf16.mxu1 %v5272_v31 }
  0x97   :  { %1433 = vmatpush1.bf16.msra.mxu0 %v5279_v32  ;;  %1476 = vmatpush1.bf16.msra.mxu1 %v5294_v35 }
  0x98   :  { %1434 = vmatprep.subr.bf16.mxu0 %v5284_v33  ;;  %1477 = vmatprep.subr.bf16.mxu1 %v5310_v38 }
  0x9b   :  { %1435 = vmatpush1.bf16.msra.mxu0 %v5304_v37  ;;  %1478 = vmatpush1.bf16.msra.mxu1 %v5320_v40 }
  0x9c   :  { %1436 = vmatprep.subr.bf16.mxu0 %v5315_v39  ;;  %1479 = vmatprep.subr.bf16.mxu1 %v5326_v41 }
  0x9f   :  { %1437 = vmatpush1.bf16.msra.mxu0 %v5333_v42  ;;  %1480 = vmatpush1.bf16.msra.mxu1 %v5338_v43 }
  0xa0   :  { %1835 = vmatprep.subr.bf16.mxu1 %v5133_v2 }
 0x102   :  { %v5405_v55 = vpop.f32.mrf.mxu0  ;;  %v5407_v56 = vpop.f32.mrf.mxu1 }
 0x104   :  { %v5409_v57 = vpop.f32.mrf.mxu0  ;;  %v5411_v58 = vpop.f32.mrf.mxu1 }
 0x106   :  { %v5416_v62 = vpop.f32.mrf.mxu0  ;;  %v5418_v63 = vpop.f32.mrf.mxu1 }
 0x108   :  { %v5420_v2 = vpop.f32.mrf.mxu0  ;;  %v5422_v3 = vpop.f32.mrf.mxu1 }
 0x10a   :  { %v597_v6 = vpop.f32.mrf.mxu0  ;;  %v710_v9 = vpop.f32.mrf.mxu1 }
 0x10b   :  { %v5433_v13 = vadd.f32 %v597_v6, %v5424_v4  ;;  %v5436_v14 = vadd.f32 %v710_v9, %v5426_v5 }
 0x10c   :  { %v599_v18 = vpop.f32.mrf.mxu0  ;;  %v712_v21 = vpop.f32.mrf.mxu1 }
 0x10d   :  { %v5439_v24 = vadd.f32 %v599_v18, %v5428_v10  ;;  %v5442_v25 = vadd.f32 %v712_v21, %v5430_v12 }
 0x10e   :  { %v601_v26 = vpop.f32.mrf.mxu0  ;;  %v714_v34 = vpop.f32.mrf.mxu1 }
 0x10f   :  { %v5445_v36 = vadd.f32 %v601_v26, %v5424_v4  ;;  %v5448_v44 = vadd.f32 %v714_v34, %v5426_v5 }
 0x110   :  { %v603_v45 = vpop.f32.mrf.mxu0  ;;  %v716_v46 = vpop.f32.mrf.mxu1 }
 0x111   :  { %v5451_v47 = vadd.f32 %v603_v45, %v5428_v10  ;;  %v5454_v48 = vadd.f32 %v716_v46, %v5430_v12 }
 0x112   :  { %v607_v49 = vpop.f32.mrf.mxu0  ;;  %v720_v50 = vpop.f32.mrf.mxu1 }
 0x113   :  { %v5457_v52 = vadd.f32 %v607_v49, %v5424_v4  ;;  %v5460_v53 = vadd.f32 %v720_v50, %v5426_v5 }
 0x114   :  { %v609_v54 = vpop.f32.mrf.mxu0  ;;  %v722_v59 = vpop.f32.mrf.mxu1 }
 0x115   :  { %6222 = vst [vmem:[#allocation6_spill] sm:$0xff] %v5460_v53  ;;  %v5463_v60 = vadd.f32 %v609_v54, %v5428_v10  ;;  %v5466_v61 = vadd.f32 %v722_v59, %v5430_v12 }
 0x116   :  { %v611_v0 = vpop.f32.mrf.mxu0  ;;  %v724_v1 = vpop.f32.mrf.mxu1 }
 0x117   :  { %6223 = vst [vmem:[#allocation7_spill] sm:$0xff] %v5466_v61  ;;  %v5469_v6 = vadd.f32 %v611_v0, %v5424_v4  ;;  %v5472_v9 = vadd.f32 %v724_v1, %v5426_v5 }
 0x118   :  { %v613_v18 = vpop.f32.mrf.mxu0  ;;  %v726_v21 = vpop.f32.mrf.mxu1 }
 0x119   :  { %6224 = vst [vmem:[#allocation8_spill] sm:$0xff] %v5472_v9  ;;  %v5475_v26 = vadd.f32 %v613_v18, %v5428_v10  ;;  %v5478_v34 = vadd.f32 %v726_v21, %v5430_v12 }
 0x11a   :  { %v617_v45 = vpop.f32.mrf.mxu0  ;;  %v730_v46 = vpop.f32.mrf.mxu1 }
 0x11b   :  { %6225 = vst [vmem:[#allocation9_spill] sm:$0xff] %v5478_v34  ;;  %v5481_v49 = vadd.f32 %v617_v45, %v5424_v4  ;;  %v5484_v50 = vadd.f32 %v730_v46, %v5426_v5 }
 0x11c   :  { %v619_v54 = vpop.f32.mrf.mxu0  ;;  %v732_v59 = vpop.f32.mrf.mxu1 }
 0x11d   :  { %6226 = vst [vmem:[#allocation10_spill] sm:$0xff] %v5481_v49  ;;  %6227 = vst [vmem:[#allocation11_spill] sm:$0xff] %v5484_v50  ;;  %v5487_v0 = vadd.f32 %v619_v54, %v5428_v10  ;;  %v5490_v1 = vadd.f32 %v732_v59, %v5430_v12 }
 0x11e   :  { %v621_v18 = vpop.f32.mrf.mxu0  ;;  %v734_v51 = vpop.f32.mrf.mxu1 }
 0x11f   :  { %6228 = vst [vmem:[#allocation12_spill] sm:$0xff] %v5487_v0  ;;  %6229 = vst [vmem:[#allocation13_spill] sm:$0xff] %v5490_v1  ;;  %v5493_v21 = vadd.f32 %v621_v18, %v5424_v4  ;;  %v5496_v9 = vadd.f32 %v734_v51, %v5426_v5 }
 0x120   :  { %v623_v45 = vpop.f32.mrf.mxu0  ;;  %v736_v49 = vpop.f32.mrf.mxu1 }
 0x121   :  { %6230 = vst [vmem:[#allocation14_spill] sm:$0xff] %v5493_v21  ;;  %6231 = vst [vmem:[#allocation15_spill] sm:$0xff] %v5496_v9  ;;  %v5499_v46 = vadd.f32 %v623_v45, %v5428_v10  ;;  %v5502_v50 = vadd.f32 %v736_v49, %v5430_v12 }
 0x122   :  { %v627_v54 = vpop.f32.mrf.mxu0  ;;  %v740_v0 = vpop.f32.mrf.mxu1 }
 0x123   :  { %6232 = vst [vmem:[#allocation16_spill] sm:$0xff] %v5499_v46  ;;  %6233 = vst [vmem:[#allocation17_spill] sm:$0xff] %v5502_v50  ;;  %v5505_v59 = vadd.f32 %v627_v54, %v5424_v4  ;;  %v5508_v1 = vadd.f32 %v740_v0, %v5426_v5 }
 0x124   :  { %v629_v18 = vpop.f32.mrf.mxu0  ;;  %v742_v21 = vpop.f32.mrf.mxu1 }
 0x125   :  { %6234 = vst [vmem:[#allocation18_spill] sm:$0xff] %v5505_v59  ;;  %6235 = vst [vmem:[#allocation19_spill] sm:$0xff] %v5508_v1  ;;  %v5511_v51 = vadd.f32 %v629_v18, %v5428_v10  ;;  %v5514_v9 = vadd.f32 %v742_v21, %v5430_v12 }
 0x126   :  { %v631_v45 = vpop.f32.mrf.mxu0  ;;  %v744_v46 = vpop.f32.mrf.mxu1 }
 0x127   :  { %6236 = vst [vmem:[#allocation20_spill] sm:$0xff] %v5511_v51  ;;  %6237 = vst [vmem:[#allocation21_spill] sm:$0xff] %v5514_v9  ;;  %v5517_v49 = vadd.f32 %v631_v45, %v5424_v4  ;;  %v5520_v50 = vadd.f32 %v744_v46, %v5426_v5 }
 0x128   :  { %v633_v54 = vpop.f32.mrf.mxu0  ;;  %v746_v59 = vpop.f32.mrf.mxu1 }
 0x129   :  { %6238 = vst [vmem:[#allocation22_spill] sm:$0xff] %v5517_v49  ;;  %6239 = vst [vmem:[#allocation23_spill] sm:$0xff] %v5520_v50  ;;  %v5523_v0 = vadd.f32 %v633_v54, %v5428_v10  ;;  %v5526_v1 = vadd.f32 %v746_v59, %v5430_v12 }
 0x12a   :  { %v637_v18 = vpop.f32.mrf.mxu0  ;;  %v750_v51 = vpop.f32.mrf.mxu1 }
 0x12b   :  { %6240 = vst [vmem:[#allocation24_spill] sm:$0xff] %v5523_v0  ;;  %6241 = vst [vmem:[#allocation25_spill] sm:$0xff] %v5526_v1  ;;  %v5529_v21 = vadd.f32 %v637_v18, %v5424_v4  ;;  %v5532_v9 = vadd.f32 %v750_v51, %v5426_v5 }
 0x12c   :  { %v639_v45 = vpop.f32.mrf.mxu0  ;;  %v752_v49 = vpop.f32.mrf.mxu1 }
 0x12d   :  { %6242 = vst [vmem:[#allocation26_spill] sm:$0xff] %v5529_v21  ;;  %6243 = vst [vmem:[#allocation27_spill] sm:$0xff] %v5532_v9  ;;  %v5535_v46 = vadd.f32 %v639_v45, %v5428_v10  ;;  %v5538_v50 = vadd.f32 %v752_v49, %v5430_v12 }
 0x12e   :  { %v641_v54 = vpop.f32.mrf.mxu0  ;;  %v754_v0 = vpop.f32.mrf.mxu1 }
 0x12f   :  { %6244 = vst [vmem:[#allocation28_spill] sm:$0xff] %v5535_v46  ;;  %6245 = vst [vmem:[#allocation29_spill] sm:$0xff] %v5538_v50  ;;  %v5541_v59 = vadd.f32 %v641_v54, %v5424_v4  ;;  %v5544_v1 = vadd.f32 %v754_v0, %v5426_v5 }
 0x130   :  { %v643_v18 = vpop.f32.mrf.mxu0  ;;  %v756_v21 = vpop.f32.mrf.mxu1 }
 0x131   :  { %6246 = vst [vmem:[#allocation30_spill] sm:$0xff] %v5541_v59  ;;  %6247 = vst [vmem:[#allocation31_spill] sm:$0xff] %v5544_v1  ;;  %v5547_v51 = vadd.f32 %v643_v18, %v5428_v10  ;;  %v5550_v9 = vadd.f32 %v756_v21, %v5430_v12 }
 0x132   :  { %v647_v45 = vpop.f32.mrf.mxu0  ;;  %v760_v46 = vpop.f32.mrf.mxu1 }
 0x133   :  { %6248 = vst [vmem:[#allocation32_spill] sm:$0xff] %v5547_v51  ;;  %6249 = vst [vmem:[#allocation33_spill] sm:$0xff] %v5550_v9  ;;  %v5553_v49 = vadd.f32 %v647_v45, %v5424_v4  ;;  %v5556_v50 = vadd.f32 %v760_v46, %v5426_v5 }
 0x134   :  { %v649_v54 = vpop.f32.mrf.mxu0  ;;  %v762_v59 = vpop.f32.mrf.mxu1 }
 0x135   :  { %6250 = vst [vmem:[#allocation34_spill] sm:$0xff] %v5553_v49  ;;  %6251 = vst [vmem:[#allocation35_spill] sm:$0xff] %v5556_v50  ;;  %v5559_v0 = vadd.f32 %v649_v54, %v5428_v10  ;;  %v5562_v1 = vadd.f32 %v762_v59, %v5430_v12 }
 0x136   :  { %v651_v18 = vpop.f32.mrf.mxu0  ;;  %v764_v51 = vpop.f32.mrf.mxu1 }
 0x137   :  { %6252 = vst [vmem:[#allocation36_spill] sm:$0xff] %v5559_v0  ;;  %6253 = vst [vmem:[#allocation37_spill] sm:$0xff] %v5562_v1  ;;  %v5565_v21 = vadd.f32 %v651_v18, %v5424_v4  ;;  %v5568_v9 = vadd.f32 %v764_v51, %v5426_v5 }
 0x138   :  { %v653_v45 = vpop.f32.mrf.mxu0  ;;  %v766_v49 = vpop.f32.mrf.mxu1 }
 0x139   :  { %6254 = vst [vmem:[#allocation38_spill] sm:$0xff] %v5565_v21  ;;  %6255 = vst [vmem:[#allocation39_spill] sm:$0xff] %v5568_v9  ;;  %v5571_v46 = vadd.f32 %v653_v45, %v5428_v10  ;;  %v5574_v50 = vadd.f32 %v766_v49, %v5430_v12 }
 0x13a   :  { %v657_v54 = vpop.f32.mrf.mxu0  ;;  %v770_v0 = vpop.f32.mrf.mxu1 }
 0x13b   :  { %6256 = vst [vmem:[#allocation40_spill] sm:$0xff] %v5571_v46  ;;  %6257 = vst [vmem:[#allocation41_spill] sm:$0xff] %v5574_v50  ;;  %v5577_v59 = vadd.f32 %v657_v54, %v5424_v4  ;;  %v5580_v1 = vadd.f32 %v770_v0, %v5426_v5  ;;  %v588_v0 = vadd.f32 %v5405_v55, %v5424_v4 }
 0x13c   :  { %v659_v18 = vpop.f32.mrf.mxu0  ;;  %v772_v21 = vpop.f32.mrf.mxu1  ;;  %v594_v55 = vadd.f32 %v5420_v2, %v5428_v10 }
 0x13d   :  { %6258 = vst [vmem:[#allocation42_spill] sm:$0xff] %v5577_v59  ;;  %6259 = vst [vmem:[#allocation43_spill] sm:$0xff] %v5580_v1  ;;  %v5583_v51 = vadd.f32 %v659_v18, %v5428_v10  ;;  %v5586_v9 = vadd.f32 %v772_v21, %v5430_v12 }
 0x13e   :  { %v661_v45 = vpop.f32.mrf.mxu0  ;;  %v774_v46 = vpop.f32.mrf.mxu1 }
 0x13f   :  { %6260 = vst [vmem:[#allocation44_spill] sm:$0xff] %v5583_v51  ;;  %6261 = vst [vmem:[#allocation45_spill] sm:$0xff] %v5586_v9  ;;  %v5589_v49 = vadd.f32 %v661_v45, %v5424_v4  ;;  %v5592_v50 = vadd.f32 %v774_v46, %v5426_v5  ;;  %v590_v9 = vadd.f32 %v5409_v57, %v5428_v10 }
 0x140   :  { %v663_v54 = vpop.f32.mrf.mxu0  ;;  %v776_v59 = vpop.f32.mrf.mxu1  ;;  %v592_v46 = vadd.f32 %v5416_v62, %v5424_v4  ;;  %v703_v62 = vadd.f32 %v5411_v58, %v5430_v12 }
 0x141   :  { %6262 = vst [vmem:[#allocation46_spill] sm:$0xff] %v5589_v49  ;;  %6263 = vst [vmem:[#allocation47_spill] sm:$0xff] %v5592_v50  ;;  %v5597_v1 = vadd.f32 %v663_v54, %v5428_v10  ;;  %v5600_v18 = vadd.f32 %v776_v59, %v5430_v12  ;;  %v707_v10 = vadd.f32 %v5422_v3, %v5430_v12 }
 0x142   :  { %v1087_v21 = vpop.f32.mrf.mxu0  ;;  %v1130_v49 = vpop.f32.mrf.mxu1 }
 0x143   :  { %6264 = vst [vmem:[#allocation48_spill] sm:$0xff] %v5597_v1  ;;  %6265 = vst [vmem:[#allocation49_spill] sm:$0xff] %v5600_v18  ;;  %v1139_v45 = vadd.f32 %v1087_v21, %v588_v0 }
 0x144   :  { %v1089_v51 = vpop.f32.mrf.mxu0  ;;  %v1132_v59 = vpop.f32.mrf.mxu1 }
 0x145   :  { %v3936_v50 = vmul.f32 -1.442695, %v1139_v45  ;;  %v1140_v34 = vadd.f32 %v1089_v51, %v590_v9  ;;  %v1142_v4 = vadd.f32 %v1132_v59, %v703_v62  ;;  %v701_v9 = vadd.f32 %v5407_v56, %v5426_v5 }
 0x146   :  { %v1091_v53 = vpop.f32.mrf.mxu0  ;;  %v1134_v0 = vpop.f32.mrf.mxu1 }
 0x147   :  { %4628 = vpow2.f32 %v3936_v50  ;;  %v3938_v54 = vmul.f32 -1.442695, %v1140_v34  ;;  %v1143_v18 = vadd.f32 %v1091_v53, %v592_v46  ;;  %v1141_v53 = vadd.f32 %v1130_v49, %v701_v9 }
 0x148   :  { %v1093_v1 = vpop.f32.mrf.mxu0  ;;  %v1136_v2 = vpop.f32.mrf.mxu1  ;;  %v705_v34 = vadd.f32 %v5418_v63, %v5426_v5  ;;  %v3940_v50 = vmul.f32 -1.442695, %v1142_v4 }
 0x149   :  { %4630 = vpow2.f32 %v3938_v54  ;;  %v3937_v61 = vmul.f32 -1.442695, %v1143_v18  ;;  %v1144_v57 = vadd.f32 %v1093_v1, %v594_v55  ;;  %v35_v54 = vld [vmem:[%s6216_s5] sm:$0xff] }
 0x14a   :  { %v1145_v51 = vadd.f32 %v1134_v0, %v705_v34 }
 0x14b   :  { %4632 = vpow2.f32 %v3937_v61  ;;  %v3939_v21 = vmul.f32 -1.442695, %v1144_v57  ;;  %v1146_v61 = vadd.f32 %v1136_v2, %v707_v10  ;;  %v36_v2 = vld [vmem:[%s6216_s5 + $0x8] sm:$0xff] }
 0x14d   :  { %4634 = vpow2.f32 %v3939_v21  ;;  %v3941_v45 = vmul.f32 -1.442695, %v1146_v61 }
 0x14e   :  { %4636 = vtanh.f32 %v1141_v53 }
 0x14f   :  { %4638 = vpow2.f32 %v3940_v50 }
 0x154   :  { %v4629_v1 = vpop.eup %4628 }
 0x155   :  { %v1153_v18 = vadd.f32 1.0, %v4629_v1 }
 0x156   :  { %v4631_v58 = vpop.eup %4630 }
 0x157   :  { %4640 = vrcp.f32 %v1153_v18  ;;  %v1165_v46 = vadd.f32 1.0, %v4631_v58 }
 0x158   :  { %v4633_v56 = vpop.eup %4632  ;;  %4642 = vtanh.f32 %v1145_v51 }
 0x159   :  { %4644 = vrcp.f32 %v1165_v46  ;;  %v1154_v55 = vadd.f32 1.0, %v4633_v56 }
 0x15a   :  { %v4635_v3 = vpop.eup %4634  ;;  %4646 = vpow2.f32 %v3941_v45 }
 0x15b   :  { %4648 = vrcp.f32 %v1154_v55  ;;  %v1166_v12 = vadd.f32 1.0, %v4635_v3  ;;  %v4637_v63 = vpop.eup %4636 }
 0x15c   :  { %v4639_v5 = vpop.eup %4638 }
 0x15d   :  { %4650 = vrcp.f32 %v1166_v12  ;;  %v1179_v9 = vadd.f32 1.0, %v4639_v5  ;;  %v6266_v12 = vmov 0  }
 0x15f   :  { %4652 = vrcp.f32 %v1179_v9 }
 0x164   :  { %v4641_v49 = vpop.eup %4640 }
 0x165   :  { %v4643_v59 = vpop.eup %4642  ;;  %v1187_v57 = vmul.f32 %v4641_v49, %v4637_v63 }
 0x166   :  { %v4645_v0 = vpop.eup %4644 }
 0x167   :  { %v4647_v21 = vpop.eup %4646  ;;  %v1185_v62 = vmul.f32 %v4645_v0, %v35_v54 }
 0x168   :  { %v4649_v4 = vpop.eup %4648  ;;  %v1180_v50 = vadd.f32 1.0, %v4647_v21 }
 0x169   :  { %v5622_v10 = vadd.f32 %v1187_v57, %v1185_v62  ;;  %v1188_v53 = vmul.f32 %v4649_v4, %v4643_v59 }
 0x16a   :  { %v4651_v34 = vpop.eup %4650 }
 0x16b   :  { %v1186_v61 = vmul.f32 %v4651_v34, %v36_v2  ;;  %4654 = vtanh.f32 %v5622_v10 }
 0x16c   :  { %4656 = vrcp.f32 %v1180_v50  ;;  %v4653_v51 = vpop.eup %4652 }
 0x16d   :  { %v5625_v1 = vadd.f32 %v1188_v53, %v1186_v61 }
 0x16f   :  { %4658 = vtanh.f32 %v5625_v1 }
 0x178   :  { %v4655_v18 = vpop.eup %4654 }
 0x179   :  { %v4657_v58 = vpop.eup %4656  ;;  %v1193_v46 = vmul.f32 %v4655_v18, %v4653_v51 }
 0x17c   :  { %v4659_v45 = vpop.eup %4658 }
 0x17d   :  { %v1194_v56 = vmul.f32 %v4659_v45, %v4657_v58 }
 0x17f   :  { %v4271_v55 = vpack.c.bf16 %v1194_v56, %v1193_v46 }
 0x181   :  { %4272 = vst [vmem:[%s6217_s6] sm:$0xff] %v4271_v55   ;;  %4277 = vst [vmem:[#allocation5] sm:$0xff] %v4271_v55  }
 0x188   :  { %v4525_v3 = vld [vmem:[#allocation5] sm:$0xff]  }
 0x189   :  { %1455 = vmatmul.mubr.bf16.vlgmr.msra.gmra.mxu0 %v4525_v3  ;;  %1498 = vmatmul.mubr.bf16.vlgmr.msra.gmra.mxu1 %v4525_v3 }
 0x18a   :  { %1836 = vmatpush1.bf16.msra.mxu1 %v5156_v7  ;;  %1824 = vmatprep.mubr.bf16.mxu0 %v6266_v12  ;;  %v5651_v7 = vld [vmem:[%s6213_s2 + $0xe4] ss:$16 sps:$4 sm:$0xff]  }
 0x18b   :  { %1837 = vmatprep.subr.bf16.mxu1 %v5161_v8  ;;  %1867 = vmatprep.mubr.bf16.mxu1 %v6266_v12  ;;  %v5656_v8 = vld [vmem:[%s6213_s2 + $0xe0] ss:$16 sps:$4 sm:$0xff]  }
 0x18c   :  { %1792 = vmatprep.subr.bf16.mxu0 %v5651_v7 }
 0x18d   :  { %1793 = vmatpush1.bf16.msra.mxu0 %v5656_v8 }
 0x18e   :  { %1838 = vmatpush1.bf16.msra.mxu1 %v5179_v11  ;;  %v5663_v11 = vld [vmem:[%s6213_s2 + $0xc4] ss:$16 sps:$4 sm:$0xff]  }
 0x18f   :  { %1839 = vmatprep.subr.bf16.mxu1 %v5198_v15  ;;  %v5668_v15 = vld [vmem:[%s6213_s2 + $0xc0] ss:$16 sps:$4 sm:$0xff]   ;;  %1794 = vmatprep.subr.bf16.mxu0 %v5663_v11 }
 0x191   :  { %1795 = vmatpush1.bf16.msra.mxu0 %v5668_v15 }
 0x192   :  { %1840 = vmatpush1.bf16.msra.mxu1 %v5209_v17  ;;  %v5675_v17 = vld [vmem:[%s6213_s2 + $0xa4] ss:$16 sps:$4 sm:$0xff]  }
 0x193   :  { %1841 = vmatprep.subr.bf16.mxu1 %v5222_v20  ;;  %v5680_v20 = vld [vmem:[%s6213_s2 + $0xa0] ss:$16 sps:$4 sm:$0xff]   ;;  %1796 = vmatprep.subr.bf16.mxu0 %v5675_v17 }
 0x195   :  { %1797 = vmatpush1.bf16.msra.mxu0 %v5680_v20 }
 0x196   :  { %1842 = vmatpush1.bf16.msra.mxu1 %v5235_v23  ;;  %1798 = vmatprep.subr.bf16.mxu0 %v5203_v16 }
 0x197   :  { %1843 = vmatprep.subr.bf16.mxu1 %v5256_v28 }
 0x199   :  { %1799 = vmatpush1.bf16.msra.mxu0 %v5217_v19 }
 0x19a   :  { %1844 = vmatpush1.bf16.msra.mxu1 %v5266_v30  ;;  %1800 = vmatprep.subr.bf16.mxu0 %v5230_v22 }
 0x19b   :  { %1845 = vmatprep.subr.bf16.mxu1 %v5272_v31 }
 0x19d   :  { %1801 = vmatpush1.bf16.msra.mxu0 %v5250_v27 }
 0x19e   :  { %1846 = vmatpush1.bf16.msra.mxu1 %v5294_v35  ;;  %1802 = vmatprep.subr.bf16.mxu0 %v5261_v29 }
 0x19f   :  { %1847 = vmatprep.subr.bf16.mxu1 %v5310_v38 }
 0x1a1   :  { %1803 = vmatpush1.bf16.msra.mxu0 %v5279_v32 }
 0x1a2   :  { %1848 = vmatpush1.bf16.msra.mxu1 %v5320_v40  ;;  %1804 = vmatprep.subr.bf16.mxu0 %v5284_v33 }
 0x1a3   :  { %1849 = vmatprep.subr.bf16.mxu1 %v5326_v41 }
 0x1a5   :  { %1805 = vmatpush1.bf16.msra.mxu0 %v5304_v37 }
 0x1a6   :  { %1850 = vmatpush1.bf16.msra.mxu1 %v5338_v43  ;;  %1806 = vmatprep.subr.bf16.mxu0 %v5315_v39 }
 0x1a9   :  { %1807 = vmatpush1.bf16.msra.mxu0 %v5333_v42 }
 0x1aa   :  { %2162 = vmatprep.subr.bf16.mxu0 %v5651_v7 }
 0x249   :  { %v1456_v16 = vpop.f32.mrf.mxu0  ;;  %v1499_v22 = vpop.f32.mrf.mxu1 }
 0x24a   :  { %v1508_v19 = vadd.f32 %v1456_v16, %v5433_v13  ;;  %v1510_v42 = vadd.f32 %v1499_v22, %v5436_v14  ;;  %v5729_v22 = vld [vmem:[%s6213_s2 + $0xe8] ss:$16 sps:$4 sm:$0xff]  }
 0x24b   :  { %v1458_v23 = vpop.f32.mrf.mxu0  ;;  %v1501_v31 = vpop.f32.mrf.mxu1 }
 0x24c   :  { %v3977_v27 = vmul.f32 -1.442695, %v1508_v19  ;;  %v1509_v28 = vadd.f32 %v1458_v23, %v5439_v24  ;;  %v1511_v40 = vadd.f32 %v1501_v31, %v5442_v25  ;;  %v5724_v19 = vld [vmem:[%s6213_s2 + $0xec] ss:$16 sps:$4 sm:$0xff]  }
 0x24d   :  { %v1460_v29 = vpop.f32.mrf.mxu0  ;;  %v1503_v38 = vpop.f32.mrf.mxu1  ;;  %2205 = vmatprep.subr.bf16.mxu1 %v5724_v19  ;;  %v5736_v23 = vld [vmem:[%s6213_s2 + $0xcc] ss:$16 sps:$4 sm:$0xff]  }
 0x24e   :  { %4660 = vpow2.f32 %v3977_v27  ;;  %v3979_v30 = vmul.f32 -1.442695, %v1509_v28  ;;  %v1512_v32 = vadd.f32 %v1460_v29, %v5445_v36  ;;  %v3981_v43 = vmul.f32 -1.442695, %v1511_v40  ;;  %v5741_v27 = vld [vmem:[%s6213_s2 + $0xc8] ss:$16 sps:$4 sm:$0xff]  }
 0x24f   :  { %v1462_v33 = vpop.f32.mrf.mxu0  ;;  %v1505_v41 = vpop.f32.mrf.mxu1  ;;  %v1514_v36 = vadd.f32 %v1503_v38, %v5448_v44  ;;  %v5748_v28 = vld [vmem:[%s6213_s2 + $0xac] ss:$16 sps:$4 sm:$0xff]   ;;  %v5753_v29 = vld [vmem:[%s6213_s2 + $0xa8] ss:$16 sps:$4 sm:$0xff]   ;;  %v5794_v38 = vld [vmem:[%s6213_s2 + $0x60] ss:$16 sps:$4 sm:$0xff]  }
 0x250   :  { %4662 = vpow2.f32 %v3979_v30  ;;  %v3978_v35 = vmul.f32 -1.442695, %v1512_v32  ;;  %v1513_v37 = vadd.f32 %v1462_v33, %v5451_v47  ;;  %v1515_v13 = vadd.f32 %v1505_v41, %v5454_v48  ;;  %v5760_v30 = vld [vmem:[%s6213_s2 + $0x84] ss:$16 sps:$4 sm:$0xff]   ;;  %v5765_v31 = vld [vmem:[%s6213_s2 + $0x8c] ss:$16 sps:$4 sm:$0xff]  }
 0x251   :  { %v5770_v32 = vld [vmem:[%s6213_s2 + $0x80] ss:$16 sps:$4 sm:$0xff]   ;;  %v5775_v33 = vld [vmem:[%s6213_s2 + $0x88] ss:$16 sps:$4 sm:$0xff]   ;;  %v5808_v40 = vld [vmem:[%s6213_s2 + $0x44] ss:$16 sps:$4 sm:$0xff]  }
 0x252   :  { %4664 = vpow2.f32 %v3978_v35  ;;  %v3980_v39 = vmul.f32 -1.442695, %v1513_v37  ;;  %v3982_v47 = vmul.f32 -1.442695, %v1515_v13  ;;  %v5784_v35 = vld [vmem:[%s6213_s2 + $0x64] ss:$16 sps:$4 sm:$0xff]  }
 0x253   :  { %v5789_v37 = vld [vmem:[%s6213_s2 + $0x6c] ss:$16 sps:$4 sm:$0xff]   ;;  %v5830_v13 = vld [vmem:[%s6213_s2 + $0x24] ss:$16 sps:$4 sm:$0xff]  }
 0x254   :  { %4666 = vpow2.f32 %v3980_v39  ;;  %v5799_v39 = vld [vmem:[%s6213_s2 + $0x68] ss:$16 sps:$4 sm:$0xff]   ;;  %v5813_v41 = vld [vmem:[%s6213_s2 + $0x4c] ss:$16 sps:$4 sm:$0xff]  }
 0x255   :  { %4668 = vtanh.f32 %v1510_v42  ;;  %v5818_v42 = vld [vmem:[%s6213_s2 + $0x40] ss:$16 sps:$4 sm:$0xff]  }
 0x256   :  { %4670 = vpow2.f32 %v3981_v43  ;;  %v5823_v43 = vld [vmem:[%s6213_s2 + $0x48] ss:$16 sps:$4 sm:$0xff]  }
 0x25b   :  { %v4661_v24 = vpop.eup %4660 }
 0x25c   :  { %v1522_v63 = vadd.f32 1.0, %v4661_v24  ;;  %v5837_v24 = vld [vmem:[%s6213_s2 + $0x20] ss:$16 sps:$4 sm:$0xff]  }
 0x25d   :  { %v4663_v5 = vpop.eup %4662 }
 0x25e   :  { %4672 = vrcp.f32 %v1522_v63  ;;  %v1534_v49 = vadd.f32 1.0, %v4663_v5  ;;  %v5847_v63 = vld [vmem:[%s6213_s2 + $0x2c] ss:$16 sps:$4 sm:$0xff]   ;;  %v5853_v5 = vld [vmem:[%s6213_s2 + $0x4] ss:$16 sps:$4 sm:$0xff]  }
 0x25f   :  { %v4665_v54 = vpop.eup %4664  ;;  %4674 = vtanh.f32 %v1514_v36  ;;  %v5842_v36 = vld [vmem:[%s6213_s2 + $0x28] ss:$16 sps:$4 sm:$0xff]  }
 0x260   :  { %4676 = vrcp.f32 %v1534_v49  ;;  %v1523_v25 = vadd.f32 1.0, %v4665_v54  ;;  %v5866_v49 = vld [vmem:[%s6213_s2] ss:$16 sps:$4 sm:$0xff]   ;;  %v5871_v54 = vld [vmem:[%s6213_s2 + $0x8] ss:$16 sps:$4 sm:$0xff]  }
 0x261   :  { %v4667_v59 = vpop.eup %4666  ;;  %4678 = vpow2.f32 %v3982_v47  ;;  %v5858_v47 = vld [vmem:[%s6213_s2 + $0xc] ss:$16 sps:$4 sm:$0xff]  }
 0x262   :  { %4680 = vrcp.f32 %v1523_v25  ;;  %v1535_v14 = vadd.f32 1.0, %v4667_v59  ;;  %v4669_v48 = vpop.eup %4668 }
 0x263   :  { %v4671_v57 = vpop.eup %4670 }
 0x264   :  { %4682 = vrcp.f32 %v1535_v14  ;;  %v1548_v53 = vadd.f32 1.0, %v4671_v57 }
 0x266   :  { %4684 = vrcp.f32 %v1548_v53 }
 0x26b   :  { %v4673_v0 = vpop.eup %4672 }
 0x26c   :  { %v4675_v44 = vpop.eup %4674  ;;  %v1556_v21 = vmul.f32 %v4673_v0, %v4669_v48 }
 0x26d   :  { %v4677_v62 = vpop.eup %4676 }
 0x26e   :  { %v4679_v4 = vpop.eup %4678  ;;  %v1554_v9 = vmul.f32 %v4677_v62, %v5622_v10 }
 0x26f   :  { %v4681_v2 = vpop.eup %4680  ;;  %v1549_v51 = vadd.f32 1.0, %v4679_v4 }
 0x270   :  { %v5704_v34 = vadd.f32 %v1556_v21, %v1554_v9  ;;  %v1557_v50 = vmul.f32 %v4681_v2, %v4675_v44 }
 0x271   :  { %v4683_v61 = vpop.eup %4682 }
 0x272   :  { %v1555_v18 = vmul.f32 %v4683_v61, %v5625_v1  ;;  %4686 = vtanh.f32 %v5704_v34 }
 0x273   :  { %4688 = vrcp.f32 %v1549_v51  ;;  %v4685_v45 = vpop.eup %4684 }
 0x274   :  { %v5708_v58 = vadd.f32 %v1557_v50, %v1555_v18 }
 0x276   :  { %4690 = vtanh.f32 %v5708_v58 }
 0x27f   :  { %v4687_v46 = vpop.eup %4686 }
 0x280   :  { %v4689_v10 = vpop.eup %4688  ;;  %v1562_v55 = vmul.f32 %v4687_v46, %v4685_v45  ;;  %v6268_v45 = vld [vmem:[#allocation6_spill] sm:$0xff] }
 0x283   :  { %v4691_v56 = vpop.eup %4690 }
 0x284   :  { %v1563_v3 = vmul.f32 %v4691_v56, %v4689_v10  ;;  %v6269_v10 = vld [vmem:[#allocation9_spill] sm:$0xff] }
 0x286   :  { %v4281_v16 = vpack.c.bf16 %v1563_v3, %v1562_v55  ;;  %v6270_v3 = vld [vmem:[#allocation8_spill] sm:$0xff] }
 0x288   :  { %4348 = vst [vmem:[%s6217_s6 + $0x8] sm:$0xff] %v4281_v16   ;;  %4287 = vst [vmem:[#allocation5] sm:$0xff] %v4281_v16  }
 0x28f   :  { %v4535_v1 = vld [vmem:[#allocation5] sm:$0xff]  }
 0x290   :  { %1825 = vmatmul.mubr.bf16.vlgmr.msra.gmra.mxu0 %v4535_v1  ;;  %1868 = vmatmul.mubr.bf16.vlgmr.msra.gmra.mxu1 %v4535_v1 }
 0x291   :  { %2163 = vmatpush1.bf16.msra.mxu0 %v5656_v8  ;;  %2194 = vmatprep.mubr.bf16.mxu0 %v6266_v12 }
 0x292   :  { %2164 = vmatprep.subr.bf16.mxu0 %v5663_v11  ;;  %2237 = vmatprep.mubr.bf16.mxu1 %v6266_v12 }
 0x293   :  { %2206 = vmatpush1.bf16.msra.mxu1 %v5729_v22 }
 0x294   :  { %2207 = vmatprep.subr.bf16.mxu1 %v5736_v23 }
 0x295   :  { %2165 = vmatpush1.bf16.msra.mxu0 %v5668_v15 }
 0x296   :  { %2166 = vmatprep.subr.bf16.mxu0 %v5675_v17 }
 0x297   :  { %2208 = vmatpush1.bf16.msra.mxu1 %v5741_v27 }
 0x298   :  { %2209 = vmatprep.subr.bf16.mxu1 %v5748_v28 }
 0x299   :  { %2167 = vmatpush1.bf16.msra.mxu0 %v5680_v20 }
 0x29a   :  { %2168 = vmatprep.subr.bf16.mxu0 %v5760_v30 }
 0x29b   :  { %2210 = vmatpush1.bf16.msra.mxu1 %v5753_v29 }
 0x29c   :  { %2211 = vmatprep.subr.bf16.mxu1 %v5765_v31 }
 0x29d   :  { %2169 = vmatpush1.bf16.msra.mxu0 %v5770_v32 }
 0x29e   :  { %2170 = vmatprep.subr.bf16.mxu0 %v5784_v35 }
 0x29f   :  { %2212 = vmatpush1.bf16.msra.mxu1 %v5775_v33 }
 0x2a0   :  { %2213 = vmatprep.subr.bf16.mxu1 %v5789_v37 }
 0x2a1   :  { %2171 = vmatpush1.bf16.msra.mxu0 %v5794_v38 }
 0x2a2   :  { %2172 = vmatprep.subr.bf16.mxu0 %v5808_v40 }
 0x2a3   :  { %2214 = vmatpush1.bf16.msra.mxu1 %v5799_v39 }
 0x2a4   :  { %2215 = vmatprep.subr.bf16.mxu1 %v5813_v41 }
 0x2a5   :  { %2173 = vmatpush1.bf16.msra.mxu0 %v5818_v42 }
 0x2a6   :  { %2174 = vmatprep.subr.bf16.mxu0 %v5830_v13 }
 0x2a7   :  { %2216 = vmatpush1.bf16.msra.mxu1 %v5823_v43 }
 0x2a8   :  { %2217 = vmatprep.subr.bf16.mxu1 %v5847_v63 }
 0x2a9   :  { %2175 = vmatpush1.bf16.msra.mxu0 %v5837_v24 }
 0x2aa   :  { %2176 = vmatprep.subr.bf16.mxu0 %v5853_v5 }
 0x2ab   :  { %2218 = vmatpush1.bf16.msra.mxu1 %v5842_v36 }
 0x2ac   :  { %2219 = vmatprep.subr.bf16.mxu1 %v5858_v47 }
 0x2ad   :  { %2177 = vmatpush1.bf16.msra.mxu0 %v5866_v49 }
 0x2ae   :  { %2532 = vmatprep.subr.bf16.mxu0 %v5651_v7 }
 0x2af   :  { %2220 = vmatpush1.bf16.msra.mxu1 %v5871_v54 }
 0x2b0   :  { %2575 = vmatprep.subr.bf16.mxu1 %v5724_v19 }
 0x350   :  { %v1826_v25 = vpop.f32.mrf.mxu0  ;;  %v1869_v14 = vpop.f32.mrf.mxu1 }
 0x351   :  { %v1878_v59 = vadd.f32 %v1826_v25, %v5457_v52  ;;  %v6267_v52 = vld [vmem:[#allocation7_spill] sm:$0xff] }
 0x352   :  { %v1828_v48 = vpop.f32.mrf.mxu0  ;;  %v1871_v62 = vpop.f32.mrf.mxu1 }
 0x353   :  { %v4020_v57 = vmul.f32 -1.442695, %v1878_v59  ;;  %v1879_v0 = vadd.f32 %v1828_v48, %v5463_v60  ;;  %v1881_v51 = vadd.f32 %v1871_v62, %v6267_v52  ;;  %v1880_v60 = vadd.f32 %v1869_v14, %v6268_v45 }
 0x354   :  { %v1830_v44 = vpop.f32.mrf.mxu0  ;;  %v1873_v50 = vpop.f32.mrf.mxu1 }
 0x355   :  { %4692 = vpow2.f32 %v4020_v57  ;;  %v4022_v21 = vmul.f32 -1.442695, %v1879_v0  ;;  %v1882_v4 = vadd.f32 %v1830_v44, %v5469_v6  ;;  %v4024_v46 = vmul.f32 -1.442695, %v1881_v51 }
 0x356   :  { %v1832_v9 = vpop.f32.mrf.mxu0  ;;  %v1875_v18 = vpop.f32.mrf.mxu1  ;;  %v1884_v6 = vadd.f32 %v1873_v50, %v6270_v3 }
 0x357   :  { %4694 = vpow2.f32 %v4022_v21  ;;  %v4021_v2 = vmul.f32 -1.442695, %v1882_v4  ;;  %v1883_v53 = vadd.f32 %v1832_v9, %v5475_v26  ;;  %v1885_v56 = vadd.f32 %v1875_v18, %v6269_v10 }
 0x359   :  { %4696 = vpow2.f32 %v4021_v2  ;;  %v4023_v61 = vmul.f32 -1.442695, %v1883_v53  ;;  %v4025_v26 = vmul.f32 -1.442695, %v1885_v56 }
 0x35b   :  { %4698 = vpow2.f32 %v4023_v61 }
 0x35c   :  { %4700 = vtanh.f32 %v1880_v60 }
 0x35d   :  { %4702 = vpow2.f32 %v4024_v46 }
 0x362   :  { %v4693_v55 = vpop.eup %4692 }
 0x363   :  { %v1892_v16 = vadd.f32 1.0, %v4693_v55 }
 0x364   :  { %v4695_v1 = vpop.eup %4694 }
 0x365   :  { %4704 = vrcp.f32 %v1892_v16  ;;  %v1904_v25 = vadd.f32 1.0, %v4695_v1 }
 0x366   :  { %v4697_v59 = vpop.eup %4696  ;;  %4706 = vtanh.f32 %v1884_v6 }
 0x367   :  { %4708 = vrcp.f32 %v1904_v25  ;;  %v1893_v48 = vadd.f32 1.0, %v4697_v59 }
 0x368   :  { %v4699_v57 = vpop.eup %4698  ;;  %4710 = vpow2.f32 %v4025_v26  ;;  %v6271_v26 = vld [vmem:[#allocation10_spill] sm:$0xff] }
 0x369   :  { %4712 = vrcp.f32 %v1893_v48  ;;  %v1905_v14 = vadd.f32 1.0, %v4699_v57  ;;  %v4701_v0 = vpop.eup %4700 }
 0x36a   :  { %v4703_v44 = vpop.eup %4702 }
 0x36b   :  { %4714 = vrcp.f32 %v1905_v14  ;;  %v1918_v61 = vadd.f32 1.0, %v4703_v44  ;;  %v6272_v14 = vld [vmem:[#allocation12_spill] sm:$0xff] }
 0x36d   :  { %4716 = vrcp.f32 %v1918_v61 }
 0x372   :  { %v4705_v21 = vpop.eup %4704 }
 0x373   :  { %v4707_v62 = vpop.eup %4706  ;;  %v1926_v4 = vmul.f32 %v4705_v21, %v4701_v0 }
 0x374   :  { %v4709_v9 = vpop.eup %4708 }
 0x375   :  { %v4711_v2 = vpop.eup %4710  ;;  %v1924_v53 = vmul.f32 %v4709_v9, %v5704_v34 }
 0x376   :  { %v4713_v50 = vpop.eup %4712  ;;  %v1919_v45 = vadd.f32 1.0, %v4711_v2 }
 0x377   :  { %v5888_v52 = vadd.f32 %v1926_v4, %v1924_v53  ;;  %v1927_v51 = vmul.f32 %v4713_v50, %v4707_v62  ;;  %v6273_v4 = vld [vmem:[#allocation14_spill] sm:$0xff] }
 0x378   :  { %v4715_v18 = vpop.eup %4714 }
 0x379   :  { %v1925_v60 = vmul.f32 %v4715_v18, %v5708_v58  ;;  %4718 = vtanh.f32 %v5888_v52  ;;  %v6275_v18 = vld [vmem:[#allocation13_spill] sm:$0xff] }
 0x37a   :  { %4720 = vrcp.f32 %v1919_v45  ;;  %v4717_v10 = vpop.eup %4716 }
 0x37b   :  { %v5892_v46 = vadd.f32 %v1927_v51, %v1925_v60 }
 0x37d   :  { %4722 = vtanh.f32 %v5892_v46 }
 0x386   :  { %v4719_v56 = vpop.eup %4718 }
 0x387   :  { %v4721_v34 = vpop.eup %4720  ;;  %v1932_v3 = vmul.f32 %v4719_v56, %v4717_v10  ;;  %v6276_v10 = vld [vmem:[#allocation11_spill] sm:$0xff] }
 0x38a   :  { %v4723_v55 = vpop.eup %4722 }
 0x38b   :  { %v1933_v6 = vmul.f32 %v4723_v55, %v4721_v34  ;;  %v6277_v55 = vld [vmem:[#allocation17_spill] sm:$0xff] }
 0x38d   :  { %v4291_v16 = vpack.c.bf16 %v1933_v6, %v1932_v3 }
 0x38f   :  { %4349 = vst [vmem:[%s6217_s6 + $0x10] sm:$0xff] %v4291_v16   ;;  %4297 = vst [vmem:[#allocation5] sm:$0xff] %v4291_v16   ;;  %v6278_v16 = vld [vmem:[#allocation15_spill] sm:$0xff] }
 0x396   :  { %v4575_v58 = vld [vmem:[#allocation5] sm:$0xff]  }
 0x397   :  { %2195 = vmatmul.mubr.bf16.vlgmr.msra.gmra.mxu0 %v4575_v58  ;;  %2238 = vmatmul.mubr.bf16.vlgmr.msra.gmra.mxu1 %v4575_v58 }
 0x398   :  { %2533 = vmatpush1.bf16.msra.mxu0 %v5656_v8  ;;  %2576 = vmatpush1.bf16.msra.mxu1 %v5729_v22 }
 0x399   :  { %2534 = vmatprep.subr.bf16.mxu0 %v5663_v11  ;;  %2577 = vmatprep.subr.bf16.mxu1 %v5736_v23 }
 0x39a   :  { %2564 = vmatprep.mubr.bf16.mxu0 %v6266_v12  ;;  %2607 = vmatprep.mubr.bf16.mxu1 %v6266_v12 }
 0x39c   :  { %2535 = vmatpush1.bf16.msra.mxu0 %v5668_v15  ;;  %2578 = vmatpush1.bf16.msra.mxu1 %v5741_v27 }
 0x39d   :  { %2536 = vmatprep.subr.bf16.mxu0 %v5675_v17  ;;  %2579 = vmatprep.subr.bf16.mxu1 %v5748_v28 }
 0x3a0   :  { %2537 = vmatpush1.bf16.msra.mxu0 %v5680_v20  ;;  %2580 = vmatpush1.bf16.msra.mxu1 %v5753_v29 }
 0x3a1   :  { %2538 = vmatprep.subr.bf16.mxu0 %v5760_v30  ;;  %2581 = vmatprep.subr.bf16.mxu1 %v5765_v31 }
 0x3a4   :  { %2539 = vmatpush1.bf16.msra.mxu0 %v5770_v32  ;;  %2582 = vmatpush1.bf16.msra.mxu1 %v5775_v33 }
 0x3a5   :  { %2540 = vmatprep.subr.bf16.mxu0 %v5784_v35  ;;  %2583 = vmatprep.subr.bf16.mxu1 %v5789_v37 }
 0x3a8   :  { %2541 = vmatpush1.bf16.msra.mxu0 %v5794_v38  ;;  %2584 = vmatpush1.bf16.msra.mxu1 %v5799_v39 }
 0x3a9   :  { %2542 = vmatprep.subr.bf16.mxu0 %v5808_v40  ;;  %2585 = vmatprep.subr.bf16.mxu1 %v5813_v41 }
 0x3ac   :  { %2543 = vmatpush1.bf16.msra.mxu0 %v5818_v42  ;;  %2586 = vmatpush1.bf16.msra.mxu1 %v5823_v43 }
 0x3ad   :  { %2544 = vmatprep.subr.bf16.mxu0 %v5830_v13  ;;  %2587 = vmatprep.subr.bf16.mxu1 %v5847_v63 }
 0x3b0   :  { %2545 = vmatpush1.bf16.msra.mxu0 %v5837_v24  ;;  %2588 = vmatpush1.bf16.msra.mxu1 %v5842_v36 }
 0x3b1   :  { %2546 = vmatprep.subr.bf16.mxu0 %v5853_v5  ;;  %2589 = vmatprep.subr.bf16.mxu1 %v5858_v47 }
 0x3b4   :  { %2547 = vmatpush1.bf16.msra.mxu0 %v5866_v49  ;;  %2590 = vmatpush1.bf16.msra.mxu1 %v5871_v54 }
 0x3b5   :  { %2902 = vmatprep.subr.bf16.mxu0 %v5651_v7  ;;  %2945 = vmatprep.subr.bf16.mxu1 %v5724_v19  ;;  %v6274_v7 = vld [vmem:[#allocation16_spill] sm:$0xff] }
 0x457   :  { %v2196_v1 = vpop.f32.mrf.mxu0  ;;  %v2239_v59 = vpop.f32.mrf.mxu1 }
 0x458   :  { %v2248_v25 = vadd.f32 %v2196_v1, %v6271_v26  ;;  %v2250_v56 = vadd.f32 %v2239_v59, %v6276_v10 }
 0x459   :  { %v2198_v48 = vpop.f32.mrf.mxu0  ;;  %v2241_v62 = vpop.f32.mrf.mxu1 }
 0x45a   :  { %v4063_v57 = vmul.f32 -1.442695, %v2248_v25  ;;  %v2249_v0 = vadd.f32 %v2198_v48, %v6272_v14  ;;  %v2251_v45 = vadd.f32 %v2241_v62, %v6275_v18 }
 0x45b   :  { %v2200_v44 = vpop.f32.mrf.mxu0  ;;  %v2243_v61 = vpop.f32.mrf.mxu1 }
 0x45c   :  { %4724 = vpow2.f32 %v4063_v57  ;;  %v4065_v21 = vmul.f32 -1.442695, %v2249_v0  ;;  %v2252_v9 = vadd.f32 %v2200_v44, %v6273_v4  ;;  %v4067_v34 = vmul.f32 -1.442695, %v2251_v45 }
 0x45d   :  { %v2202_v2 = vpop.f32.mrf.mxu0  ;;  %v2245_v60 = vpop.f32.mrf.mxu1  ;;  %v2254_v58 = vadd.f32 %v2243_v61, %v6278_v16 }
 0x45e   :  { %4726 = vpow2.f32 %v4065_v21  ;;  %v4064_v53 = vmul.f32 -1.442695, %v2252_v9  ;;  %v2253_v50 = vadd.f32 %v2202_v2, %v6274_v7  ;;  %v2255_v3 = vadd.f32 %v2245_v60, %v6277_v55 }
 0x460   :  { %4728 = vpow2.f32 %v4064_v53  ;;  %v4066_v51 = vmul.f32 -1.442695, %v2253_v50  ;;  %v4068_v25 = vmul.f32 -1.442695, %v2255_v3 }
 0x462   :  { %4730 = vpow2.f32 %v4066_v51 }
 0x463   :  { %4732 = vtanh.f32 %v2250_v56 }
 0x464   :  { %4734 = vpow2.f32 %v4067_v34 }
 0x469   :  { %v4725_v6 = vpop.eup %4724 }
 0x46a   :  { %v2262_v1 = vadd.f32 1.0, %v4725_v6 }
 0x46b   :  { %v4727_v26 = vpop.eup %4726 }
 0x46c   :  { %4736 = vrcp.f32 %v2262_v1  ;;  %v2274_v48 = vadd.f32 1.0, %v4727_v26  ;;  %v6280_v26 = vld [vmem:[#allocation20_spill] sm:$0xff] }
 0x46d   :  { %v4729_v57 = vpop.eup %4728  ;;  %4738 = vtanh.f32 %v2254_v58 }
 0x46e   :  { %4740 = vrcp.f32 %v2274_v48  ;;  %v2263_v14 = vadd.f32 1.0, %v4729_v57 }
 0x46f   :  { %v4731_v0 = vpop.eup %4730  ;;  %4742 = vpow2.f32 %v4068_v25 }
 0x470   :  { %4744 = vrcp.f32 %v2263_v14  ;;  %v2275_v59 = vadd.f32 1.0, %v4731_v0  ;;  %v4733_v44 = vpop.eup %4732  ;;  %v6281_v0 = vld [vmem:[#allocation22_spill] sm:$0xff] }
 0x471   :  { %v4735_v21 = vpop.eup %4734 }
 0x472   :  { %4746 = vrcp.f32 %v2275_v59  ;;  %v2288_v61 = vadd.f32 1.0, %v4735_v21 }
 0x474   :  { %4748 = vrcp.f32 %v2288_v61 }
 0x479   :  { %v4737_v62 = vpop.eup %4736 }
 0x47a   :  { %v4739_v4 = vpop.eup %4738  ;;  %v2296_v9 = vmul.f32 %v4737_v62, %v4733_v44  ;;  %v6282_v62 = vld [vmem:[#allocation24_spill] sm:$0xff] }
 0x47b   :  { %v4741_v2 = vpop.eup %4740 }
 0x47c   :  { %v4743_v53 = vpop.eup %4742  ;;  %v2294_v7 = vmul.f32 %v4741_v2, %v5888_v52  ;;  %v6283_v2 = vld [vmem:[#allocation21_spill] sm:$0xff] }
 0x47d   :  { %v4745_v50 = vpop.eup %4744  ;;  %v2289_v60 = vadd.f32 1.0, %v4743_v53 }
 0x47e   :  { %v5941_v51 = vadd.f32 %v2296_v9, %v2294_v7  ;;  %v2297_v18 = vmul.f32 %v4745_v50, %v4739_v4  ;;  %v6284_v50 = vld [vmem:[#allocation19_spill] sm:$0xff] }
 0x47f   :  { %v4747_v45 = vpop.eup %4746 }
 0x480   :  { %v2295_v10 = vmul.f32 %v4747_v45, %v5892_v46  ;;  %4750 = vtanh.f32 %v5941_v51  ;;  %v6285_v45 = vld [vmem:[#allocation25_spill] sm:$0xff] }
 0x481   :  { %4752 = vrcp.f32 %v2289_v60  ;;  %v4749_v34 = vpop.eup %4748 }
 0x482   :  { %v5945_v56 = vadd.f32 %v2297_v18, %v2295_v10 }
 0x484   :  { %4754 = vtanh.f32 %v5945_v56 }
 0x48d   :  { %v4751_v55 = vpop.eup %4750 }
 0x48e   :  { %v4753_v52 = vpop.eup %4752  ;;  %v2302_v6 = vmul.f32 %v4751_v55, %v4749_v34  ;;  %v6286_v34 = vld [vmem:[#allocation23_spill] sm:$0xff] }
 0x491   :  { %v4755_v3 = vpop.eup %4754 }
 0x492   :  { %v2303_v16 = vmul.f32 %v4755_v3, %v4753_v52 }
 0x494   :  { %v4301_v58 = vpack.c.bf16 %v2303_v16, %v2302_v6 }
 0x496   :  { %4350 = vst [vmem:[%s6217_s6 + $0x18] sm:$0xff] %v4301_v58   ;;  %4307 = vst [vmem:[#allocation5] sm:$0xff] %v4301_v58  }
 0x49d   :  { %v4576_v46 = vld [vmem:[#allocation5] sm:$0xff]  }
 0x49e   :  { %2565 = vmatmul.mubr.bf16.vlgmr.msra.gmra.mxu0 %v4576_v46  ;;  %2608 = vmatmul.mubr.bf16.vlgmr.msra.gmra.mxu1 %v4576_v46 }
 0x49f   :  { %2903 = vmatpush1.bf16.msra.mxu0 %v5656_v8  ;;  %2946 = vmatpush1.bf16.msra.mxu1 %v5729_v22 }
 0x4a0   :  { %2904 = vmatprep.subr.bf16.mxu0 %v5663_v11  ;;  %2947 = vmatprep.subr.bf16.mxu1 %v5736_v23  ;;  %v6279_v11 = vld [vmem:[#allocation18_spill] sm:$0xff] }
 0x4a1   :  { %2934 = vmatprep.mubr.bf16.mxu0 %v6266_v12  ;;  %2977 = vmatprep.mubr.bf16.mxu1 %v6266_v12 }
 0x4a3   :  { %2905 = vmatpush1.bf16.msra.mxu0 %v5668_v15  ;;  %2948 = vmatpush1.bf16.msra.mxu1 %v5741_v27 }
 0x4a4   :  { %2906 = vmatprep.subr.bf16.mxu0 %v5675_v17  ;;  %2949 = vmatprep.subr.bf16.mxu1 %v5748_v28 }
 0x4a7   :  { %2907 = vmatpush1.bf16.msra.mxu0 %v5680_v20  ;;  %2950 = vmatpush1.bf16.msra.mxu1 %v5753_v29 }
 0x4a8   :  { %2908 = vmatprep.subr.bf16.mxu0 %v5760_v30  ;;  %2951 = vmatprep.subr.bf16.mxu1 %v5765_v31 }
 0x4ab   :  { %2909 = vmatpush1.bf16.msra.mxu0 %v5770_v32  ;;  %2952 = vmatpush1.bf16.msra.mxu1 %v5775_v33 }
 0x4ac   :  { %2910 = vmatprep.subr.bf16.mxu0 %v5784_v35  ;;  %2953 = vmatprep.subr.bf16.mxu1 %v5789_v37 }
 0x4af   :  { %2911 = vmatpush1.bf16.msra.mxu0 %v5794_v38  ;;  %2954 = vmatpush1.bf16.msra.mxu1 %v5799_v39 }
 0x4b0   :  { %2912 = vmatprep.subr.bf16.mxu0 %v5808_v40  ;;  %2955 = vmatprep.subr.bf16.mxu1 %v5813_v41 }
 0x4b3   :  { %2913 = vmatpush1.bf16.msra.mxu0 %v5818_v42  ;;  %2956 = vmatpush1.bf16.msra.mxu1 %v5823_v43 }
 0x4b4   :  { %2914 = vmatprep.subr.bf16.mxu0 %v5830_v13  ;;  %2957 = vmatprep.subr.bf16.mxu1 %v5847_v63 }
 0x4b7   :  { %2915 = vmatpush1.bf16.msra.mxu0 %v5837_v24  ;;  %2958 = vmatpush1.bf16.msra.mxu1 %v5842_v36 }
 0x4b8   :  { %2916 = vmatprep.subr.bf16.mxu0 %v5853_v5  ;;  %2959 = vmatprep.subr.bf16.mxu1 %v5858_v47 }
 0x4bb   :  { %2917 = vmatpush1.bf16.msra.mxu0 %v5866_v49  ;;  %2960 = vmatpush1.bf16.msra.mxu1 %v5871_v54 }
 0x4bc   :  { %3315 = vmatprep.subr.bf16.mxu1 %v5724_v19 }
 0x55e   :  { %v2566_v8 = vpop.f32.mrf.mxu0  ;;  %v2609_v17 = vpop.f32.mrf.mxu1 }
 0x55f   :  { %v2618_v15 = vadd.f32 %v2566_v8, %v6279_v11  ;;  %v2620_v61 = vadd.f32 %v2609_v17, %v6284_v50 }
 0x560   :  { %v2568_v20 = vpop.f32.mrf.mxu0  ;;  %v2611_v14 = vpop.f32.mrf.mxu1 }
 0x561   :  { %v4106_v1 = vmul.f32 -1.442695, %v2618_v15  ;;  %v2619_v25 = vadd.f32 %v2568_v20, %v6280_v26  ;;  %v2621_v53 = vadd.f32 %v2611_v14, %v6283_v2 }
 0x562   :  { %v2570_v48 = vpop.f32.mrf.mxu0  ;;  %v2613_v19 = vpop.f32.mrf.mxu1 }
 0x563   :  { %4756 = vpow2.f32 %v4106_v1  ;;  %v4108_v57 = vmul.f32 -1.442695, %v2619_v25  ;;  %v2622_v59 = vadd.f32 %v2570_v48, %v6281_v0  ;;  %v4110_v18 = vmul.f32 -1.442695, %v2621_v53 }
 0x564   :  { %v2572_v44 = vpop.f32.mrf.mxu0  ;;  %v2615_v7 = vpop.f32.mrf.mxu1  ;;  %v2624_v55 = vadd.f32 %v2613_v19, %v6286_v34 }
 0x565   :  { %4758 = vpow2.f32 %v4108_v57  ;;  %v4107_v21 = vmul.f32 -1.442695, %v2622_v59  ;;  %v2623_v4 = vadd.f32 %v2572_v44, %v6282_v62  ;;  %v2625_v60 = vadd.f32 %v2615_v7, %v6285_v45 }
 0x567   :  { %4760 = vpow2.f32 %v4107_v21  ;;  %v4109_v9 = vmul.f32 -1.442695, %v2623_v4  ;;  %v4111_v6 = vmul.f32 -1.442695, %v2625_v60 }
 0x569   :  { %4762 = vpow2.f32 %v4109_v9 }
 0x56a   :  { %4764 = vtanh.f32 %v2620_v61 }
 0x56b   :  { %4766 = vpow2.f32 %v4110_v18  ;;  %v6291_v18 = vld [vmem:[#allocation29_spill] sm:$0xff] }
 0x570   :  { %v4757_v10 = vpop.eup %4756 }
 0x571   :  { %v2632_v52 = vadd.f32 1.0, %v4757_v10  ;;  %v6292_v10 = vld [vmem:[#allocation27_spill] sm:$0xff] }
 0x572   :  { %v4759_v3 = vpop.eup %4758 }
 0x573   :  { %4768 = vrcp.f32 %v2632_v52  ;;  %v2644_v16 = vadd.f32 1.0, %v4759_v3  ;;  %v6293_v52 = vld [vmem:[#allocation33_spill] sm:$0xff] }
 0x574   :  { %v4761_v58 = vpop.eup %4760  ;;  %4770 = vtanh.f32 %v2624_v55 }
 0x575   :  { %4772 = vrcp.f32 %v2644_v16  ;;  %v2633_v46 = vadd.f32 1.0, %v4761_v58  ;;  %v6294_v16 = vld [vmem:[#allocation31_spill] sm:$0xff] }
 0x576   :  { %v4763_v8 = vpop.eup %4762  ;;  %4774 = vpow2.f32 %v4111_v6 }
 0x577   :  { %4776 = vrcp.f32 %v2633_v46  ;;  %v2645_v11 = vadd.f32 1.0, %v4763_v8  ;;  %v4765_v15 = vpop.eup %4764 }
 0x578   :  { %v4767_v17 = vpop.eup %4766 }
 0x579   :  { %4778 = vrcp.f32 %v2645_v11  ;;  %v2658_v0 = vadd.f32 1.0, %v4767_v17 }
 0x57b   :  { %4780 = vrcp.f32 %v2658_v0 }
 0x580   :  { %v4769_v20 = vpop.eup %4768 }
 0x581   :  { %v4771_v1 = vpop.eup %4770  ;;  %v2666_v26 = vmul.f32 %v4769_v20, %v4765_v15 }
 0x582   :  { %v4773_v25 = vpop.eup %4772 }
 0x583   :  { %v4775_v48 = vpop.eup %4774  ;;  %v2664_v57 = vmul.f32 %v4773_v25, %v5941_v51 }
 0x584   :  { %v4777_v14 = vpop.eup %4776  ;;  %v2659_v62 = vadd.f32 1.0, %v4775_v48 }
 0x585   :  { %v5993_v59 = vadd.f32 %v2666_v26, %v2664_v57  ;;  %v2667_v44 = vmul.f32 %v4777_v14, %v4771_v1 }
 0x586   :  { %v4779_v21 = vpop.eup %4778 }
 0x587   :  { %v2665_v4 = vmul.f32 %v4779_v21, %v5945_v56  ;;  %4782 = vtanh.f32 %v5993_v59 }
 0x588   :  { %4784 = vrcp.f32 %v2659_v62  ;;  %v4781_v9 = vpop.eup %4780 }
 0x589   :  { %v5997_v19 = vadd.f32 %v2667_v44, %v2665_v4 }
 0x58b   :  { %4786 = vtanh.f32 %v5997_v19 }
 0x594   :  { %v4783_v2 = vpop.eup %4782 }
 0x595   :  { %v4785_v51 = vpop.eup %4784  ;;  %v2672_v7 = vmul.f32 %v4783_v2, %v4781_v9 }
 0x598   :  { %v4787_v53 = vpop.eup %4786 }
 0x599   :  { %v2673_v50 = vmul.f32 %v4787_v53, %v4785_v51 }
 0x59b   :  { %v4311_v61 = vpack.c.bf16 %v2673_v50, %v2672_v7 }
 0x59d   :  { %4351 = vst [vmem:[%s6217_s6 + $0x20] sm:$0xff] %v4311_v61   ;;  %4317 = vst [vmem:[#allocation5] sm:$0xff] %v4311_v61  }
 0x5a4   :  { %v4577_v56 = vld [vmem:[#allocation5] sm:$0xff]  }
 0x5a5   :  { %2935 = vmatmul.mubr.bf16.vlgmr.msra.gmra.mxu0 %v4577_v56  ;;  %2978 = vmatmul.mubr.bf16.vlgmr.msra.gmra.mxu1 %v4577_v56 }
 0x5a6   :  { %3316 = vmatpush1.bf16.msra.mxu1 %v5729_v22  ;;  %3304 = vmatprep.mubr.bf16.mxu0 %v6266_v12  ;;  %v4580_v22 = vld [vmem:[%s6213_s2 + $0xe4] ss:$16 sps:$4 sm:$0xff]  }
 0x5a7   :  { %3317 = vmatprep.subr.bf16.mxu1 %v5736_v23  ;;  %3347 = vmatprep.mubr.bf16.mxu1 %v6266_v12  ;;  %v6026_v23 = vld [vmem:[%s6213_s2 + $0xe0] ss:$16 sps:$4 sm:$0xff]  }
 0x5a8   :  { %3272 = vmatprep.subr.bf16.mxu0 %v4580_v22 }
 0x5a9   :  { %3273 = vmatpush1.bf16.msra.mxu0 %v6026_v23 }
 0x5aa   :  { %3318 = vmatpush1.bf16.msra.mxu1 %v5741_v27  ;;  %v6032_v27 = vld [vmem:[%s6213_s2 + $0xc4] ss:$16 sps:$4 sm:$0xff]  }
 0x5ab   :  { %3319 = vmatprep.subr.bf16.mxu1 %v5748_v28  ;;  %v6037_v28 = vld [vmem:[%s6213_s2 + $0xc0] ss:$16 sps:$4 sm:$0xff]   ;;  %3274 = vmatprep.subr.bf16.mxu0 %v6032_v27 }
 0x5ad   :  { %3275 = vmatpush1.bf16.msra.mxu0 %v6037_v28 }
 0x5ae   :  { %3320 = vmatpush1.bf16.msra.mxu1 %v5753_v29  ;;  %v6044_v29 = vld [vmem:[%s6213_s2 + $0xa4] ss:$16 sps:$4 sm:$0xff]  }
 0x5af   :  { %3321 = vmatprep.subr.bf16.mxu1 %v5765_v31  ;;  %v6049_v31 = vld [vmem:[%s6213_s2 + $0xa0] ss:$16 sps:$4 sm:$0xff]   ;;  %3276 = vmatprep.subr.bf16.mxu0 %v6044_v29 }
 0x5b1   :  { %3277 = vmatpush1.bf16.msra.mxu0 %v6049_v31 }
 0x5b2   :  { %3322 = vmatpush1.bf16.msra.mxu1 %v5775_v33  ;;  %3278 = vmatprep.subr.bf16.mxu0 %v5760_v30  ;;  %v6287_v33 = vld [vmem:[#allocation26_spill] sm:$0xff] }
 0x5b3   :  { %3323 = vmatprep.subr.bf16.mxu1 %v5789_v37 }
 0x5b5   :  { %3279 = vmatpush1.bf16.msra.mxu0 %v5770_v32 }
 0x5b6   :  { %3324 = vmatpush1.bf16.msra.mxu1 %v5799_v39  ;;  %3280 = vmatprep.subr.bf16.mxu0 %v5784_v35 }
 0x5b7   :  { %3325 = vmatprep.subr.bf16.mxu1 %v5813_v41 }
 0x5b9   :  { %3281 = vmatpush1.bf16.msra.mxu0 %v5794_v38  ;;  %v6288_v38 = vld [vmem:[#allocation28_spill] sm:$0xff] }
 0x5ba   :  { %3326 = vmatpush1.bf16.msra.mxu1 %v5823_v43  ;;  %3282 = vmatprep.subr.bf16.mxu0 %v5808_v40 }
 0x5bb   :  { %3327 = vmatprep.subr.bf16.mxu1 %v5847_v63 }
 0x5bd   :  { %3283 = vmatpush1.bf16.msra.mxu0 %v5818_v42 }
 0x5be   :  { %3328 = vmatpush1.bf16.msra.mxu1 %v5842_v36  ;;  %3284 = vmatprep.subr.bf16.mxu0 %v5830_v13  ;;  %v6289_v13 = vld [vmem:[#allocation30_spill] sm:$0xff] }
 0x5bf   :  { %3329 = vmatprep.subr.bf16.mxu1 %v5858_v47 }
 0x5c1   :  { %3285 = vmatpush1.bf16.msra.mxu0 %v5837_v24 }
 0x5c2   :  { %3330 = vmatpush1.bf16.msra.mxu1 %v5871_v54  ;;  %3286 = vmatprep.subr.bf16.mxu0 %v5853_v5  ;;  %v6290_v5 = vld [vmem:[#allocation32_spill] sm:$0xff] }
 0x5c5   :  { %3287 = vmatpush1.bf16.msra.mxu0 %v5866_v49 }
 0x5c6   :  { %3642 = vmatprep.subr.bf16.mxu0 %v4580_v22 }
 0x665   :  { %v2936_v30 = vpop.f32.mrf.mxu0  ;;  %v2979_v37 = vpop.f32.mrf.mxu1 }
 0x666   :  { %v2988_v32 = vadd.f32 %v2936_v30, %v6287_v33  ;;  %v2990_v34 = vadd.f32 %v2979_v37, %v6292_v10  ;;  %v4621_v10 = vld [vmem:[%s6213_s2] ss:$16 sps:$4 sm:$0xff]  }
 0x667   :  { %v2938_v35 = vpop.f32.mrf.mxu0  ;;  %v2981_v43 = vpop.f32.mrf.mxu1 }
 0x668   :  { %v4149_v39 = vmul.f32 -1.442695, %v2988_v32  ;;  %v2989_v41 = vadd.f32 %v2938_v35, %v6288_v38  ;;  %v2991_v45 = vadd.f32 %v2981_v43, %v6291_v18  ;;  %v4590_v35 = vld [vmem:[%s6213_s2 + $0xec] ss:$16 sps:$4 sm:$0xff]   ;;  %v4597_v38 = vld [vmem:[%s6213_s2 + $0x80] ss:$16 sps:$4 sm:$0xff]  }
 0x669   :  { %v2940_v40 = vpop.f32.mrf.mxu0  ;;  %v2983_v49 = vpop.f32.mrf.mxu1  ;;  %3685 = vmatprep.subr.bf16.mxu1 %v4590_v35  ;;  %v4603_v43 = vld [vmem:[%s6213_s2 + $0x60] ss:$16 sps:$4 sm:$0xff]   ;;  %v4620_v18 = vld [vmem:[%s6213_s2 + $0x2c] ss:$16 sps:$4 sm:$0xff]  }
 0x66a   :  { %4788 = vpow2.f32 %v4149_v39  ;;  %v4151_v42 = vmul.f32 -1.442695, %v2989_v41  ;;  %v2992_v36 = vadd.f32 %v2940_v40, %v6289_v13  ;;  %v4153_v55 = vmul.f32 -1.442695, %v2991_v45  ;;  %v4602_v39 = vld [vmem:[%s6213_s2 + $0x8c] ss:$16 sps:$4 sm:$0xff]  }
 0x66b   :  { %v2942_v24 = vpop.f32.mrf.mxu0  ;;  %v2985_v60 = vpop.f32.mrf.mxu1  ;;  %v2994_v58 = vadd.f32 %v2983_v49, %v6294_v16  ;;  %v4600_v41 = vld [vmem:[%s6213_s2 + $0x88] ss:$16 sps:$4 sm:$0xff]   ;;  %v4605_v40 = vld [vmem:[%s6213_s2 + $0x64] ss:$16 sps:$4 sm:$0xff]   ;;  %v4615_v49 = vld [vmem:[%s6213_s2 + $0x20] ss:$16 sps:$4 sm:$0xff]  }
 0x66c   :  { %4790 = vpow2.f32 %v4151_v42  ;;  %v4150_v63 = vmul.f32 -1.442695, %v2992_v36  ;;  %v2993_v47 = vadd.f32 %v2942_v24, %v6290_v5  ;;  %v2995_v3 = vadd.f32 %v2985_v60, %v6293_v52  ;;  %v4608_v42 = vld [vmem:[%s6213_s2 + $0x6c] ss:$16 sps:$4 sm:$0xff]   ;;  %v4606_v13 = vld [vmem:[%s6213_s2 + $0x68] ss:$16 sps:$4 sm:$0xff]  }
 0x66d   :  { %v4611_v36 = vld [vmem:[%s6213_s2 + $0x44] ss:$16 sps:$4 sm:$0xff]   ;;  %v4614_v24 = vld [vmem:[%s6213_s2 + $0x4c] ss:$16 sps:$4 sm:$0xff]   ;;  %v4612_v5 = vld [vmem:[%s6213_s2 + $0x48] ss:$16 sps:$4 sm:$0xff]  }
 0x66e   :  { %4792 = vpow2.f32 %v4150_v63  ;;  %v4152_v54 = vmul.f32 -1.442695, %v2993_v47  ;;  %v4154_v11 = vmul.f32 -1.442695, %v2995_v3  ;;  %v4609_v63 = vld [vmem:[%s6213_s2 + $0x40] ss:$16 sps:$4 sm:$0xff]  }
 0x66f   :  { %v4617_v47 = vld [vmem:[%s6213_s2 + $0x24] ss:$16 sps:$4 sm:$0xff]   ;;  %v4626_v60 = vld [vmem:[%s6213_s2 + $0xc] ss:$16 sps:$4 sm:$0xff]  }
 0x670   :  { %4794 = vpow2.f32 %v4152_v54  ;;  %v4618_v54 = vld [vmem:[%s6213_s2 + $0x28] ss:$16 sps:$4 sm:$0xff]   ;;  %v4623_v45 = vld [vmem:[%s6213_s2 + $0x4] ss:$16 sps:$4 sm:$0xff]  }
 0x671   :  { %4796 = vtanh.f32 %v2990_v34  ;;  %v4624_v34 = vld [vmem:[%s6213_s2 + $0x8] ss:$16 sps:$4 sm:$0xff]  }
 0x672   :  { %4798 = vpow2.f32 %v4153_v55  ;;  %v6295_v52 = vld [vmem:[#allocation34_spill] sm:$0xff] }
 0x677   :  { %v4789_v6 = vpop.eup %4788 }
 0x678   :  { %v3002_v46 = vadd.f32 1.0, %v4789_v6 }
 0x679   :  { %v4791_v8 = vpop.eup %4790 }
 0x67a   :  { %4800 = vrcp.f32 %v3002_v46  ;;  %v3014_v15 = vadd.f32 1.0, %v4791_v8  ;;  %v6296_v46 = vld [vmem:[#allocation36_spill] sm:$0xff] }
 0x67b   :  { %v4793_v17 = vpop.eup %4792  ;;  %4802 = vtanh.f32 %v2994_v58 }
 0x67c   :  { %4804 = vrcp.f32 %v3014_v15  ;;  %v3003_v20 = vadd.f32 1.0, %v4793_v17 }
 0x67d   :  { %v4795_v1 = vpop.eup %4794  ;;  %4806 = vpow2.f32 %v4154_v11 }
 0x67e   :  { %4808 = vrcp.f32 %v3003_v20  ;;  %v3015_v26 = vadd.f32 1.0, %v4795_v1  ;;  %v4797_v25 = vpop.eup %4796  ;;  %v6297_v20 = vld [vmem:[#allocation38_spill] sm:$0xff] }
 0x67f   :  { %v4799_v48 = vpop.eup %4798 }
 0x680   :  { %4810 = vrcp.f32 %v3015_v26  ;;  %v3028_v9 = vadd.f32 1.0, %v4799_v48  ;;  %v6298_v48 = vld [vmem:[#allocation40_spill] sm:$0xff] }
 0x682   :  { %4812 = vrcp.f32 %v3028_v9 }
 0x687   :  { %v4801_v57 = vpop.eup %4800 }
 0x688   :  { %v4803_v14 = vpop.eup %4802  ;;  %v3036_v0 = vmul.f32 %v4801_v57, %v4797_v25 }
 0x689   :  { %v4805_v44 = vpop.eup %4804 }
 0x68a   :  { %v4807_v21 = vpop.eup %4806  ;;  %v3034_v62 = vmul.f32 %v4805_v44, %v5993_v59  ;;  %v6299_v44 = vld [vmem:[#allocation37_spill] sm:$0xff] }
 0x68b   :  { %v4809_v4 = vpop.eup %4808  ;;  %v3029_v7 = vadd.f32 1.0, %v4807_v21 }
 0x68c   :  { %v6072_v2 = vadd.f32 %v3036_v0, %v3034_v62  ;;  %v3037_v51 = vmul.f32 %v4809_v4, %v4803_v14  ;;  %v6300_v4 = vld [vmem:[#allocation35_spill] sm:$0xff] }
 0x68d   :  { %v4811_v53 = vpop.eup %4810 }
 0x68e   :  { %v3035_v50 = vmul.f32 %v4811_v53, %v5997_v19  ;;  %4814 = vtanh.f32 %v6072_v2  ;;  %v6301_v53 = vld [vmem:[#allocation41_spill] sm:$0xff] }
 0x68f   :  { %4816 = vrcp.f32 %v3029_v7  ;;  %v4813_v56 = vpop.eup %4812 }
 0x690   :  { %v6076_v61 = vadd.f32 %v3037_v51, %v3035_v50 }
 0x692   :  { %4818 = vtanh.f32 %v6076_v61 }
 0x69b   :  { %v4815_v22 = vpop.eup %4814 }
 0x69c   :  { %v4817_v59 = vpop.eup %4816  ;;  %v3042_v33 = vmul.f32 %v4815_v22, %v4813_v56  ;;  %v6302_v56 = vld [vmem:[#allocation39_spill] sm:$0xff] }
 0x69f   :  { %v4819_v30 = vpop.eup %4818 }
 0x6a0   :  { %v3043_v32 = vmul.f32 %v4819_v30, %v4817_v59 }
 0x6a2   :  { %v4321_v37 = vpack.c.bf16 %v3043_v32, %v3042_v33 }
 0x6a4   :  { %4352 = vst [vmem:[%s6217_s6 + $0x28] sm:$0xff] %v4321_v37   ;;  %4327 = vst [vmem:[#allocation5] sm:$0xff] %v4321_v37  }
 0x6ab   :  { %v4587_v19 = vld [vmem:[#allocation5] sm:$0xff]  }
 0x6ac   :  { %3305 = vmatmul.mubr.bf16.vlgmr.msra.gmra.mxu0 %v4587_v19  ;;  %3348 = vmatmul.mubr.bf16.vlgmr.msra.gmra.mxu1 %v4587_v19 }
 0x6ad   :  { %3643 = vmatpush1.bf16.msra.mxu0 %v6026_v23  ;;  %3674 = vmatprep.mubr.bf16.mxu0 %v6266_v12  ;;  %v4588_v23 = vld [vmem:[%s6213_s2 + $0xe8] ss:$16 sps:$4 sm:$0xff]  }
 0x6ae   :  { %3644 = vmatprep.subr.bf16.mxu0 %v6032_v27  ;;  %3717 = vmatprep.mubr.bf16.mxu1 %v6266_v12  ;;  %v4593_v12 = vld [vmem:[%s6213_s2 + $0xcc] ss:$16 sps:$4 sm:$0xff]   ;;  %v4591_v27 = vld [vmem:[%s6213_s2 + $0xc8] ss:$16 sps:$4 sm:$0xff]  }
 0x6af   :  { %3686 = vmatpush1.bf16.msra.mxu1 %v4588_v23 }
 0x6b0   :  { %3687 = vmatprep.subr.bf16.mxu1 %v4593_v12 }
 0x6b1   :  { %3645 = vmatpush1.bf16.msra.mxu0 %v6037_v28  ;;  %v4596_v28 = vld [vmem:[%s6213_s2 + $0xac] ss:$16 sps:$4 sm:$0xff]  }
 0x6b2   :  { %3646 = vmatprep.subr.bf16.mxu0 %v6044_v29  ;;  %v4594_v29 = vld [vmem:[%s6213_s2 + $0xa8] ss:$16 sps:$4 sm:$0xff]  }
 0x6b3   :  { %3688 = vmatpush1.bf16.msra.mxu1 %v4591_v27 }
 0x6b4   :  { %3689 = vmatprep.subr.bf16.mxu1 %v4596_v28 }
 0x6b5   :  { %3647 = vmatpush1.bf16.msra.mxu0 %v6049_v31  ;;  %v4599_v31 = vld [vmem:[%s6213_s2 + $0x84] ss:$16 sps:$4 sm:$0xff]  }
 0x6b6   :  { %3648 = vmatprep.subr.bf16.mxu0 %v4599_v31 }
 0x6b7   :  { %3690 = vmatpush1.bf16.msra.mxu1 %v4594_v29 }
 0x6b8   :  { %3691 = vmatprep.subr.bf16.mxu1 %v4602_v39 }
 0x6b9   :  { %3649 = vmatpush1.bf16.msra.mxu0 %v4597_v38 }
 0x6ba   :  { %3650 = vmatprep.subr.bf16.mxu0 %v4605_v40 }
 0x6bb   :  { %3692 = vmatpush1.bf16.msra.mxu1 %v4600_v41 }
 0x6bc   :  { %3693 = vmatprep.subr.bf16.mxu1 %v4608_v42 }
 0x6bd   :  { %3651 = vmatpush1.bf16.msra.mxu0 %v4603_v43 }
 0x6be   :  { %3652 = vmatprep.subr.bf16.mxu0 %v4611_v36 }
 0x6bf   :  { %3694 = vmatpush1.bf16.msra.mxu1 %v4606_v13 }
 0x6c0   :  { %3695 = vmatprep.subr.bf16.mxu1 %v4614_v24 }
 0x6c1   :  { %3653 = vmatpush1.bf16.msra.mxu0 %v4609_v63 }
 0x6c2   :  { %3654 = vmatprep.subr.bf16.mxu0 %v4617_v47 }
 0x6c3   :  { %3696 = vmatpush1.bf16.msra.mxu1 %v4612_v5 }
 0x6c4   :  { %3697 = vmatprep.subr.bf16.mxu1 %v4620_v18 }
 0x6c5   :  { %3655 = vmatpush1.bf16.msra.mxu0 %v4615_v49 }
 0x6c6   :  { %3656 = vmatprep.subr.bf16.mxu0 %v4623_v45 }
 0x6c7   :  { %3698 = vmatpush1.bf16.msra.mxu1 %v4618_v54 }
 0x6c8   :  { %3699 = vmatprep.subr.bf16.mxu1 %v4626_v60 }
 0x6c9   :  { %3657 = vmatpush1.bf16.msra.mxu0 %v4621_v10 }
 0x6cb   :  { %3700 = vmatpush1.bf16.msra.mxu1 %v4624_v34  ;;  %v6303_v34 = vld [vmem:[#allocation42_spill] sm:$0xff] }
 0x76c   :  { %v3306_v55 = vpop.f32.mrf.mxu0  ;;  %v3349_v6 = vpop.f32.mrf.mxu1 }
 0x76d   :  { %v3358_v3 = vadd.f32 %v3306_v55, %v6295_v52  ;;  %v3360_v9 = vadd.f32 %v3349_v6, %v6300_v4 }
 0x76e   :  { %v3308_v16 = vpop.f32.mrf.mxu0  ;;  %v3351_v17 = vpop.f32.mrf.mxu1 }
 0x76f   :  { %v4192_v58 = vmul.f32 -1.442695, %v3358_v3  ;;  %v3359_v8 = vadd.f32 %v3308_v16, %v6296_v46  ;;  %v3361_v21 = vadd.f32 %v3351_v17, %v6299_v44  ;;  %v6304_v16 = vld [vmem:[#allocation44_spill] sm:$0xff] }
 0x770   :  { %v3310_v11 = vpop.f32.mrf.mxu0  ;;  %v3353_v14 = vpop.f32.mrf.mxu1 }
 0x771   :  { %4820 = vpow2.f32 %v4192_v58  ;;  %v4194_v15 = vmul.f32 -1.442695, %v3359_v8  ;;  %v3362_v1 = vadd.f32 %v3310_v11, %v6297_v20  ;;  %v4196_v51 = vmul.f32 -1.442695, %v3361_v21  ;;  %v6308_v21 = vld [vmem:[#allocation43_spill] sm:$0xff] }
 0x772   :  { %v3312_v26 = vpop.f32.mrf.mxu0  ;;  %v3355_v62 = vpop.f32.mrf.mxu1  ;;  %v3364_v22 = vadd.f32 %v3353_v14, %v6302_v56  ;;  %v6307_v14 = vld [vmem:[#allocation45_spill] sm:$0xff] }
 0x773   :  { %4822 = vpow2.f32 %v4194_v15  ;;  %v4193_v25 = vmul.f32 -1.442695, %v3362_v1  ;;  %v3363_v57 = vadd.f32 %v3312_v26, %v6298_v48  ;;  %v3365_v7 = vadd.f32 %v3355_v62, %v6301_v53  ;;  %v6305_v15 = vld [vmem:[#allocation46_spill] sm:$0xff]  ;;  %v6306_v26 = vld [vmem:[#allocation48_spill] sm:$0xff] }
 0x775   :  { %4824 = vpow2.f32 %v4193_v25  ;;  %v4195_v0 = vmul.f32 -1.442695, %v3363_v57  ;;  %v4197_v33 = vmul.f32 -1.442695, %v3365_v7  ;;  %v6310_v7 = vld [vmem:[#allocation47_spill] sm:$0xff] }
 0x777   :  { %4826 = vpow2.f32 %v4195_v0 }
 0x778   :  { %4828 = vtanh.f32 %v3360_v9  ;;  %v6309_v9 = vld [vmem:[#allocation49_spill] sm:$0xff] }
 0x779   :  { %4830 = vpow2.f32 %v4196_v51 }
 0x77e   :  { %v4821_v50 = vpop.eup %4820 }
 0x77f   :  { %v3372_v59 = vadd.f32 1.0, %v4821_v50 }
 0x780   :  { %v4823_v30 = vpop.eup %4822 }
 0x781   :  { %4832 = vrcp.f32 %v3372_v59  ;;  %v3384_v32 = vadd.f32 1.0, %v4823_v30 }
 0x782   :  { %v4825_v37 = vpop.eup %4824  ;;  %4834 = vtanh.f32 %v3364_v22 }
 0x783   :  { %4836 = vrcp.f32 %v3384_v32  ;;  %v3373_v19 = vadd.f32 1.0, %v4825_v37 }
 0x784   :  { %v4827_v35 = vpop.eup %4826  ;;  %4838 = vpow2.f32 %v4197_v33 }
 0x785   :  { %4840 = vrcp.f32 %v3373_v19  ;;  %v3385_v23 = vadd.f32 1.0, %v4827_v35  ;;  %v4829_v12 = vpop.eup %4828 }
 0x786   :  { %v4831_v27 = vpop.eup %4830 }
 0x787   :  { %4842 = vrcp.f32 %v3385_v23  ;;  %v3398_v42 = vadd.f32 1.0, %v4831_v27 }
 0x789   :  { %4844 = vrcp.f32 %v3398_v42 }
 0x78e   :  { %v4833_v28 = vpop.eup %4832 }
 0x78f   :  { %v4835_v29 = vpop.eup %4834  ;;  %v3406_v31 = vmul.f32 %v4833_v28, %v4829_v12 }
 0x790   :  { %v4837_v39 = vpop.eup %4836 }
 0x791   :  { %v4839_v38 = vpop.eup %4838  ;;  %v3404_v41 = vmul.f32 %v4837_v39, %v6072_v2 }
 0x792   :  { %v4841_v40 = vpop.eup %4840  ;;  %v3399_v24 = vadd.f32 1.0, %v4839_v38 }
 0x793   :  { %v6176_v43 = vadd.f32 %v3406_v31, %v3404_v41  ;;  %v3407_v13 = vmul.f32 %v4841_v40, %v4835_v29 }
 0x794   :  { %v4843_v36 = vpop.eup %4842 }
 0x795   :  { %v3405_v63 = vmul.f32 %v4843_v36, %v6076_v61  ;;  %4846 = vtanh.f32 %v6176_v43 }
 0x796   :  { %4848 = vrcp.f32 %v3399_v24  ;;  %v4845_v47 = vpop.eup %4844 }
 0x797   :  { %v6180_v5 = vadd.f32 %v3407_v13, %v3405_v63 }
 0x799   :  { %4850 = vtanh.f32 %v6180_v5 }
 0x7a2   :  { %v4847_v49 = vpop.eup %4846 }
 0x7a3   :  { %v4849_v2 = vpop.eup %4848  ;;  %v3412_v18 = vmul.f32 %v4847_v49, %v4845_v47 }
 0x7a6   :  { %v4851_v54 = vpop.eup %4850 }
 0x7a7   :  { %v3413_v45 = vmul.f32 %v4851_v54, %v4849_v2 }
 0x7a9   :  { %v4331_v60 = vpack.c.bf16 %v3413_v45, %v3412_v18 }
 0x7ab   :  { %4353 = vst [vmem:[%s6217_s6 + $0x30] sm:$0xff] %v4331_v60   ;;  %4337 = vst [vmem:[#allocation5] sm:$0xff] %v4331_v60  }
 0x7b2   :  { %v4627_v61 = vld [vmem:[#allocation5] sm:$0xff]  }
 0x7b3   :  { %3675 = vmatmul.mubr.bf16.vlgmr.msra.gmra.mxu0 %v4627_v61  ;;  %3718 = vmatmul.mubr.bf16.vlgmr.msra.gmra.mxu1 %v4627_v61 }
 0x873   :  { %v3676_v10 = vpop.f32.mrf.mxu0  ;;  %v3719_v52 = vpop.f32.mrf.mxu1 }
 0x874   :  { %v3728_v55 = vadd.f32 %v3676_v10, %v6303_v34  ;;  %v3730_v62 = vadd.f32 %v3719_v52, %v6308_v21 }
 0x875   :  { %v3678_v3 = vpop.f32.mrf.mxu0  ;;  %v3721_v11 = vpop.f32.mrf.mxu1 }
 0x876   :  { %v4235_v6 = vmul.f32 -1.442695, %v3728_v55  ;;  %v3729_v58 = vadd.f32 %v3678_v3, %v6304_v16  ;;  %v3731_v0 = vadd.f32 %v3721_v11, %v6307_v14 }
 0x877   :  { %v3680_v46 = vpop.f32.mrf.mxu0  ;;  %v3723_v48 = vpop.f32.mrf.mxu1 }
 0x878   :  { %4852 = vpow2.f32 %v4235_v6  ;;  %v4237_v8 = vmul.f32 -1.442695, %v3729_v58  ;;  %v3732_v17 = vadd.f32 %v3680_v46, %v6305_v15  ;;  %v4239_v4 = vmul.f32 -1.442695, %v3731_v0 }
 0x879   :  { %v3682_v20 = vpop.f32.mrf.mxu0  ;;  %v3725_v44 = vpop.f32.mrf.mxu1  ;;  %v3734_v50 = vadd.f32 %v3723_v48, %v6310_v7 }
 0x87a   :  { %4854 = vpow2.f32 %v4237_v8  ;;  %v4236_v1 = vmul.f32 -1.442695, %v3732_v17  ;;  %v3733_v25 = vadd.f32 %v3682_v20, %v6306_v26  ;;  %v3735_v51 = vadd.f32 %v3725_v44, %v6309_v9 }
 0x87c   :  { %4856 = vpow2.f32 %v4236_v1  ;;  %v4238_v57 = vmul.f32 -1.442695, %v3733_v25  ;;  %v4240_v59 = vmul.f32 -1.442695, %v3735_v51 }
 0x87e   :  { %4858 = vpow2.f32 %v4238_v57 }
 0x87f   :  { %4860 = vtanh.f32 %v3730_v62 }
 0x880   :  { %4862 = vpow2.f32 %v4239_v4 }
 0x885   :  { %v4853_v53 = vpop.eup %4852 }
 0x886   :  { %v3742_v56 = vadd.f32 1.0, %v4853_v53 }
 0x887   :  { %v4855_v22 = vpop.eup %4854 }
 0x888   :  { %4864 = vrcp.f32 %v3742_v56  ;;  %v3754_v30 = vadd.f32 1.0, %v4855_v22 }
 0x889   :  { %v4857_v33 = vpop.eup %4856  ;;  %4866 = vtanh.f32 %v3734_v50 }
 0x88a   :  { %4868 = vrcp.f32 %v3754_v30  ;;  %v3743_v32 = vadd.f32 1.0, %v4857_v33 }
 0x88b   :  { %v4859_v37 = vpop.eup %4858  ;;  %4870 = vpow2.f32 %v4240_v59 }
 0x88c   :  { %4872 = vrcp.f32 %v3743_v32  ;;  %v3755_v19 = vadd.f32 1.0, %v4859_v37  ;;  %v4861_v35 = vpop.eup %4860 }
 0x88d   :  { %v4863_v23 = vpop.eup %4862 }
 0x88e   :  { %4874 = vrcp.f32 %v3755_v19  ;;  %v3768_v31 = vadd.f32 1.0, %v4863_v23 }
 0x890   :  { %4876 = vrcp.f32 %v3768_v31 }
 0x895   :  { %v4865_v12 = vpop.eup %4864 }
 0x896   :  { %v4867_v27 = vpop.eup %4866  ;;  %v3776_v28 = vmul.f32 %v4865_v12, %v4861_v35 }
 0x897   :  { %v4869_v29 = vpop.eup %4868 }
 0x898   :  { %v4871_v39 = vpop.eup %4870  ;;  %v3774_v38 = vmul.f32 %v4869_v29, %v6176_v43 }
 0x899   :  { %v4873_v41 = vpop.eup %4872  ;;  %v3769_v36 = vadd.f32 1.0, %v4871_v39 }
 0x89a   :  { %v3778_v40 = vadd.f32 %v3776_v28, %v3774_v38  ;;  %v3777_v42 = vmul.f32 %v4873_v41, %v4867_v27 }
 0x89b   :  { %v4875_v13 = vpop.eup %4874 }
 0x89c   :  { %4878 = vtanh.f32 %v3778_v40  ;;  %3807 = vst [vmem:[%s6218_s8] sm:$0xff] %v3778_v40  ;;  %v3775_v24 = vmul.f32 %v4875_v13, %v6180_v5 }
 0x89d   :  { %4880 = vrcp.f32 %v3769_v36  ;;  %v4877_v43 = vpop.eup %4876 }
 0x89e   :  { %v3779_v63 = vadd.f32 %v3777_v42, %v3775_v24 }
 0x8a0   :  { %4882 = vtanh.f32 %v3779_v63  ;;  %3808 = vst [vmem:[%s6218_s8 + $0x8] sm:$0xff] %v3779_v63 }
 0x8a9   :  { %v4879_v47 = vpop.eup %4878 }
 0x8aa   :  { %v3782_v49 = vmul.f32 %v4879_v47, %v4877_v43  ;;  %v4881_v2 = vpop.eup %4880 }
 0x8ac   :  { %3803 = vst [vmem:[%s6219_s7] sm:$0xff] %v3782_v49 }
 0x8ad   :  { %v4883_v54 = vpop.eup %4882 }
 0x8ae   :  { %v3783_v18 = vmul.f32 %v4883_v54, %v4881_v2 }
 0x8b0   :  { %v4341_v45 = vpack.c.bf16 %v3783_v18, %v3782_v49  ;;  %3804 = vst [vmem:[%s6219_s7 + $0x8] sm:$0xff] %v3783_v18 }
 0x8b2   :  { %4354 = vst [vmem:[%s6217_s6 + $0x38] sm:$0xff] %v4341_v45   ;;  %4347 = vst [vmem:[#allocation5] sm:$0xff] %v4341_v45  }

</bundles_post_ra>
